<compile_context>
chip_gen: v7x
topology: tpu7x:2x2x1
jax: 0.10.0
libtpu: 0.0.40
codegen_flags: <defaults>
</compile_context>

<pallas_src>
import functools
import re

import jax
import jax.numpy as jnp
from jax.experimental import pallas as pl
from jax.experimental.pallas import tpu as pltpu

SCALE = 100.0  # default scale used inside compute_ecc


def _round_up(a, b):
    return (a + b - 1) // b * b


def _tpu_generation():
    """Best-effort TPU generation (e.g. 5, 6, 7); 0 if unknown."""
    try:
        kind = jax.devices()[0].device_kind
    except Exception:
        return 0
    m = re.search(r"v(\d+)", kind)
    return int(m.group(1)) if m else 0


def _ect_points_kernel(lin_ref, nh_ref, m_ref, out_ref, *, s_blk, bf16_tanh):
    """One grid step = (one S-block, one N-tile).

    lin_ref : SMEM [S]            f32   0.5*scale*lin (per-bump-step scalars)
    nh_ref  : VMEM [T, TILE_N]    f32   0.5*scale*(x @ v)^T  (nodes lane-minor)
    m_ref   : VMEM [TILE_N, B]    bf16  one-hot pointcloud membership
    out_ref : VMEM [s_blk*T, B]   f32   resident accumulator over the N tiles
    """
    sb = pl.program_id(0)
    ni = pl.program_id(1)

    @pl.when(ni == 0)
    def _():
        out_ref[...] = jnp.zeros_like(out_ref)

    t_dim = nh_ref.shape[0]

    # Static unroll over the bump steps of this S-block: no replicated nh copy
    # and no full-size f32 ecc temporary -- each [T, TILE_N] slab flows
    # VPU -> EUP -> MXU and is accumulated into a T-row slice of the output.
    for r in range(s_blk):
        lin_val = lin_ref[sb * s_blk + r]          # f32 scalar from SMEM
        z = lin_val - nh_ref[...]                  # f32 sub (no cancellation)
        if bf16_tanh:
            # v6e/v7x: bf16 EUP/VPU -> half the tanh pushes / affine ops, and
            # the MXU operand is bf16 anyway.
            ecc = 0.5 * jnp.tanh(z.astype(jnp.bfloat16)) + 0.5
        else:
            ecc = (0.5 * jnp.tanh(z) + 0.5).astype(jnp.bfloat16)
        # Segment-sum over this node tile: bf16 MXU contraction, f32 accumulate.
        out_ref[pl.ds(r * t_dim, t_dim), :] += jnp.dot(
            ecc, m_ref[...], preferred_element_type=jnp.float32)


@functools.partial(
    jax.jit,
    static_argnames=("num_batches", "n_sblk", "tile_n", "bf16_tanh"))
def _ect_points_pallas(x, batch_index, v, lin, *, num_batches, n_sblk, tile_n,
                       bf16_tanh):
    N = x.shape[0]
    T = v.shape[1]
    S = lin.shape[0]
    B = num_batches
    half_scale = 0.5 * SCALE

    # Node heights directly in [T, N] layout (K = 3 is far too small for an
    # in-kernel MXU tile), pre-scaled once.
    nh_t = half_scale * jnp.dot(v.T, x.T, preferred_element_type=jnp.float32)  # [T, N]
    lin_half = (half_scale * lin).astype(jnp.float32)                          # [S]

    # One-hot membership: segment_add_coo as a matmul. 0/1 values exact in bf16.
    m_t = (batch_index[:, None] ==
           jnp.arange(B, dtype=batch_index.dtype)[None, :]).astype(jnp.bfloat16)  # [N, B]

    # Pad the node (reduction) axis lane-dense (multiple of 128 / tile_n).
    # Padded nodes have zero membership rows, so they contribute nothing.
    n_pad = _round_up(N, tile_n)
    nh_t = jnp.pad(nh_t, ((0, 0), (0, n_pad - N)))
    m_t = jnp.pad(m_t, ((0, n_pad - N), (0, 0)))
    n_tiles = n_pad // tile_n

    s_blk = S // n_sblk
    rows = s_blk * T

    kernel = functools.partial(_ect_points_kernel, s_blk=s_blk,
                               bf16_tanh=bf16_tanh)

    grid_spec = pltpu.PrefetchScalarGridSpec(
        num_scalar_prefetch=0,
        grid=(n_sblk, n_tiles),                              # reduction axis last
        in_specs=[
            pl.BlockSpec(memory_space=pltpu.MemorySpace.SMEM),   # lin_half [S]
            pl.BlockSpec((T, tile_n), lambda sb, ni: (0, ni)),   # nh_t
            pl.BlockSpec((tile_n, B), lambda sb, ni: (ni, 0)),   # m_t
        ],
        out_specs=pl.BlockSpec((rows, B), lambda sb, ni: (sb, 0)),
    )

    cost = pl.CostEstimate(
        flops=2 * S * T * n_pad * B + 4 * S * T * n_pad,
        transcendentals=S * T * n_pad,
        bytes_accessed=(4 * T * n_pad + 2 * n_pad * B) * n_sblk
        + 4 * S * T * B + 4 * S,
    )

    ect_flat = pl.pallas_call(
        kernel,
        out_shape=jax.ShapeDtypeStruct((S * T, B), jnp.float32),
        grid_spec=grid_spec,
        compiler_params=pltpu.CompilerParams(
            dimension_semantics=("parallel", "arbitrary")),
        cost_estimate=cost,
    )(lin_half, nh_t, m_t)

    # [S*T, B] -> [B, S, T] to match the PyTorch squeezed output layout.
    # TODO(synk): for B == 1 PyTorch's ect.squeeze() would also drop the batch
    # dim; we always return [B, S, T].
    return jnp.transpose(ect_flat.reshape(S, T, B), (2, 0, 1))


def ect_layer_points(x, batch_index, v, lin, *, num_batches):
    """Pallas implementation of ECTLayer.forward for ect_type='points'.

    Args:
      x           : [N, F]  float32 node coordinates.
      batch_index : [N]     int32 pointcloud membership per node.
      v           : [F, T]  float32 direction vectors.
      lin         : [S]     float32 discretization of [-radius, radius].
      num_batches : B       number of point clouds in the batch (static).

    Returns:
      [B, S, T] float32 ECT (matches PyTorch `ect.squeeze()` for B > 1).
    """
    N = x.shape[0]
    T = v.shape[1]
    S = lin.shape[0]
    gen = _tpu_generation()

    # Node-tile size: big tiles amortize the ~0.35us/grid-step overhead; cap
    # lower on v7x (64 MiB VMEM) than on v5e/v6e (128 MiB).
    tile_n_cap = 2048 if gen >= 7 else 4096
    tile_n = min(tile_n_cap, _round_up(max(N, 1), 128))

    # Split the bump-step axis only where there are two TensorCores (v7x); on
    # single-TC v5e/v6e an extra S-block just re-streams nh/m from HBM.
    n_sblk = 1
    if gen >= 7 and S % 2 == 0 and ((S // 2) * T) % 8 == 0:
        n_sblk = 2

    # bf16 tanh where the EUP/VPU are bf16-capable (v6e+), f32 otherwise; fall
    # back to f32 transcendentals if the bf16 path fails to lower.
    if gen >= 6:
        try:
            return _ect_points_pallas(x, batch_index, v, lin,
                                      num_batches=num_batches, n_sblk=n_sblk,
                                      tile_n=tile_n, bf16_tanh=True)
        except Exception:
            pass
    return _ect_points_pallas(x, batch_index, v, lin,
                              num_batches=num_batches, n_sblk=n_sblk,
                              tile_n=tile_n, bf16_tanh=False)


def _reference_ect_points(x, batch_index, v, lin, num_batches):
    """Pure-JAX reference mirroring the PyTorch code path."""
    nh = x @ v                                                       # [N, T]
    ecc = jax.nn.sigmoid(SCALE * (lin[:, None, None] - nh[None]))    # [S, N, T]
    m = (batch_index[None, :] == jnp.arange(num_batches)[:, None]).astype(jnp.float32)
    return jnp.einsum("bn,snt->bst", m, ecc)                         # [B, S, T]


if __name__ == "__main__":
    # ECTConfig defaults: num_thetas=32, bump_steps=32, radius=1.1, num_features=3
    NUM_THETAS = 32
    BUMP_STEPS = 32
    RADIUS = 1.1
    NUM_FEATURES = 3

    B = 2                 # number of point clouds in the batch
    NODES_PER_CLOUD = 8
    N = B * NODES_PER_CLOUD

    key = jax.random.PRNGKey(0)
    kx, kv = jax.random.split(key)

    # Node coordinates, roughly inside the unit ball (as the reference assumes).
    x = jax.random.normal(kx, (N, NUM_FEATURES), dtype=jnp.float32)
    x = x / (jnp.linalg.norm(x, axis=-1, keepdims=True) + 1.0)

    # Batch index: first 8 nodes -> cloud 0, next 8 -> cloud 1.
    batch_index = jnp.repeat(jnp.arange(B, dtype=jnp.int32), NODES_PER_CLOUD)

    # Deterministic "parameters": V = unit direction vectors [F, T], lin = linspace.
    v = jax.random.normal(kv, (NUM_FEATURES, NUM_THETAS), dtype=jnp.float32)
    v = v / jnp.linalg.norm(v, axis=0, keepdims=True)
    lin = jnp.linspace(-RADIUS, RADIUS, BUMP_STEPS, dtype=jnp.float32)

    out = ect_layer_points(x, batch_index, v, lin, num_batches=B)
    out = jax.block_until_ready(out)

    ref = _reference_ect_points(x, batch_index, v, lin, B)
    assert out.shape == (B, BUMP_STEPS, NUM_THETAS), out.shape
    # bf16 tanh / bf16 MXU operands quantize the saturated sigmoid values ->
    # looser tolerance (relative error ~0.4% per node, covered by rtol).
    max_err = float(jnp.max(jnp.abs(out - ref)))
    assert jnp.allclose(out, ref, atol=5e-2, rtol=1e-2), max_err

    print("KERNEL_OK")
</pallas_src>

<mosaic_0001>
module attributes {stable_mosaic.version = 11 : i64} {
  func.func @_ect_points_kernel(%arg0: i32, %arg1: i32, %arg2: memref<32xf32, #tpu.memory_space<smem>>, %arg3: memref<32x128xf32, #tpu.memory_space<vmem>>, %arg4: memref<128x2xbf16, #tpu.memory_space<vmem>>, %arg5: memref<1024x2xf32, #tpu.memory_space<vmem>>) attributes {dimension_semantics = [#tpu.dimension_semantics<parallel>, #tpu.dimension_semantics<arbitrary>], iteration_bounds = array<i64: 1, 1>, scalar_prefetch = 0 : i64, scratch_operands = 0 : i64, tpu.core_type = #tpu.core_type<tc>, window_params = [{transform_indices = @transform_0, window_bounds = array<i64: 32>}, {transform_indices = @transform_1, window_bounds = array<i64: 32, 128>}, {transform_indices = @transform_2, window_bounds = array<i64: 128, 2>}, {transform_indices = @transform_3, window_bounds = array<i64: 1024, 2>}]} {
    %c0_i32 = arith.constant 0 : i32
    %0 = arith.cmpi eq, %arg1, %c0_i32 : i32
    %1 = arith.extui %0 : i1 to i32
    %c0_i32_0 = arith.constant 0 : i32
    %2 = arith.cmpi ne, %1, %c0_i32_0 : i32
    scf.if %2 {
      %cst_352 = arith.constant 0.000000e+00 : f32
      %579 = vector.broadcast %cst_352 : f32 to vector<1024x2xf32>
      %c0_353 = arith.constant 0 : index
      %c0_354 = arith.constant 0 : index
      %580 = vector.load %arg5[%c0_353, %c0_354] : memref<1024x2xf32, #tpu.memory_space<vmem>>, vector<1024x2xf32>
      tpu.vector_store %arg5[%c0_353, %c0_354], %579 {strides = array<i32>} : memref<1024x2xf32, #tpu.memory_space<vmem>>, vector<1024x2xf32>,
    } else {
    }
    %c32_i32 = arith.constant 32 : i32
    %3 = arith.muli %arg0, %c32_i32 : i32
    %c0_i32_1 = arith.constant 0 : i32
    %4 = arith.addi %3, %c0_i32_1 : i32
    %5 = arith.index_cast %4 : i32 to index
    %6 = memref.load %arg2[%5] : memref<32xf32, #tpu.memory_space<smem>>
    %c0 = arith.constant 0 : index
    %c0_2 = arith.constant 0 : index
    %7 = vector.load %arg3[%c0, %c0_2] : memref<32x128xf32, #tpu.memory_space<vmem>>, vector<32x128xf32>
    %8 = vector.broadcast %6 : f32 to vector<32x128xf32>
    %9 = arith.subf %8, %7 : vector<32x128xf32>
    %10 = math.tanh %9 : vector<32x128xf32>
    %cst = arith.constant 5.000000e-01 : f32
    %11 = vector.broadcast %cst : f32 to vector<32x128xf32>
    %12 = arith.mulf %11, %10 : vector<32x128xf32>
    %cst_3 = arith.constant 5.000000e-01 : f32
    %13 = vector.broadcast %cst_3 : f32 to vector<32x128xf32>
    %14 = arith.addf %12, %13 : vector<32x128xf32>
    %15 = arith.truncf %14 : vector<32x128xf32> to vector<32x128xbf16>
    %c0_4 = arith.constant 0 : index
    %c0_5 = arith.constant 0 : index
    %16 = vector.load %arg5[%c0_4, %c0_5] : memref<1024x2xf32, #tpu.memory_space<vmem>>, vector<32x2xf32>
    %c0_6 = arith.constant 0 : index
    %c0_7 = arith.constant 0 : index
    %17 = vector.load %arg4[%c0_6, %c0_7] : memref<128x2xbf16, #tpu.memory_space<vmem>>, vector<128x2xbf16>
    %cst_8 = arith.constant dense<0.000000e+00> : vector<32x2xf32>
    %18 = tpu.matmul %15, %17, %cst_8 {dimension_numbers = #tpu.dot_dimension_numbers<[1], [0], [0], [1], [0, 0, 1, 1], [], []>} : vector<32x128xbf16>, vector<128x2xbf16>, vector<32x2xf32> -> vector<32x2xf32>
    %19 = arith.addf %16, %18 : vector<32x2xf32>
    %c0_9 = arith.constant 0 : index
    %c0_10 = arith.constant 0 : index
    %20 = vector.load %arg5[%c0_9, %c0_10] : memref<1024x2xf32, #tpu.memory_space<vmem>>, vector<32x2xf32>
    tpu.vector_store %arg5[%c0_9, %c0_10], %19 {strides = array<i32>} : memref<1024x2xf32, #tpu.memory_space<vmem>>, vector<32x2xf32>,
    %c32_i32_11 = arith.constant 32 : i32
    %21 = arith.muli %arg0, %c32_i32_11 : i32
    %c1_i32 = arith.constant 1 : i32
    %22 = arith.addi %21, %c1_i32 : i32
    %23 = arith.index_cast %22 : i32 to index
    %24 = memref.load %arg2[%23] : memref<32xf32, #tpu.memory_space<smem>>
    %c0_12 = arith.constant 0 : index
    %c0_13 = arith.constant 0 : index
    %25 = vector.load %arg3[%c0_12, %c0_13] : memref<32x128xf32, #tpu.memory_space<vmem>>, vector<32x128xf32>
    %26 = vector.broadcast %24 : f32 to vector<32x128xf32>
    %27 = arith.subf %26, %25 : vector<32x128xf32>
    %28 = math.tanh %27 : vector<32x128xf32>
    %cst_14 = arith.constant 5.000000e-01 : f32
    %29 = vector.broadcast %cst_14 : f32 to vector<32x128xf32>
    %30 = arith.mulf %29, %28 : vector<32x128xf32>
    %cst_15 = arith.constant 5.000000e-01 : f32
    %31 = vector.broadcast %cst_15 : f32 to vector<32x128xf32>
    %32 = arith.addf %30, %31 : vector<32x128xf32>
    %33 = arith.truncf %32 : vector<32x128xf32> to vector<32x128xbf16>
    %c32 = arith.constant 32 : index
    %c0_16 = arith.constant 0 : index
    %34 = vector.load %arg5[%c32, %c0_16] : memref<1024x2xf32, #tpu.memory_space<vmem>>, vector<32x2xf32>
    %c0_17 = arith.constant 0 : index
    %c0_18 = arith.constant 0 : index
    %35 = vector.load %arg4[%c0_17, %c0_18] : memref<128x2xbf16, #tpu.memory_space<vmem>>, vector<128x2xbf16>
    %cst_19 = arith.constant dense<0.000000e+00> : vector<32x2xf32>
    %36 = tpu.matmul %33, %35, %cst_19 {dimension_numbers = #tpu.dot_dimension_numbers<[1], [0], [0], [1], [0, 0, 1, 1], [], []>} : vector<32x128xbf16>, vector<128x2xbf16>, vector<32x2xf32> -> vector<32x2xf32>
    %37 = arith.addf %34, %36 : vector<32x2xf32>
    %c32_20 = arith.constant 32 : index
    %c0_21 = arith.constant 0 : index
    %38 = vector.load %arg5[%c32_20, %c0_21] : memref<1024x2xf32, #tpu.memory_space<vmem>>, vector<32x2xf32>
    tpu.vector_store %arg5[%c32_20, %c0_21], %37 {strides = array<i32>} : memref<1024x2xf32, #tpu.memory_space<vmem>>, vector<32x2xf32>,
    %c32_i32_22 = arith.constant 32 : i32
    %39 = arith.muli %arg0, %c32_i32_22 : i32
    %c2_i32 = arith.constant 2 : i32
    %40 = arith.addi %39, %c2_i32 : i32
    %41 = arith.index_cast %40 : i32 to index
    %42 = memref.load %arg2[%41] : memref<32xf32, #tpu.memory_space<smem>>
    %c0_23 = arith.constant 0 : index
    %c0_24 = arith.constant 0 : index
    %43 = vector.load %arg3[%c0_23, %c0_24] : memref<32x128xf32, #tpu.memory_space<vmem>>, vector<32x128xf32>
    %44 = vector.broadcast %42 : f32 to vector<32x128xf32>
    %45 = arith.subf %44, %43 : vector<32x128xf32>
    %46 = math.tanh %45 : vector<32x128xf32>
    %cst_25 = arith.constant 5.000000e-01 : f32
    %47 = vector.broadcast %cst_25 : f32 to vector<32x128xf32>
    %48 = arith.mulf %47, %46 : vector<32x128xf32>
    %cst_26 = arith.constant 5.000000e-01 : f32
    %49 = vector.broadcast %cst_26 : f32 to vector<32x128xf32>
    %50 = arith.addf %48, %49 : vector<32x128xf32>
    %51 = arith.truncf %50 : vector<32x128xf32> to vector<32x128xbf16>
    %c64 = arith.constant 64 : index
    %c0_27 = arith.constant 0 : index
    %52 = vector.load %arg5[%c64, %c0_27] : memref<1024x2xf32, #tpu.memory_space<vmem>>, vector<32x2xf32>
    %c0_28 = arith.constant 0 : index
    %c0_29 = arith.constant 0 : index
    %53 = vector.load %arg4[%c0_28, %c0_29] : memref<128x2xbf16, #tpu.memory_space<vmem>>, vector<128x2xbf16>
    %cst_30 = arith.constant dense<0.000000e+00> : vector<32x2xf32>
    %54 = tpu.matmul %51, %53, %cst_30 {dimension_numbers = #tpu.dot_dimension_numbers<[1], [0], [0], [1], [0, 0, 1, 1], [], []>} : vector<32x128xbf16>, vector<128x2xbf16>, vector<32x2xf32> -> vector<32x2xf32>
    %55 = arith.addf %52, %54 : vector<32x2xf32>
    %c64_31 = arith.constant 64 : index
    %c0_32 = arith.constant 0 : index
    %56 = vector.load %arg5[%c64_31, %c0_32] : memref<1024x2xf32, #tpu.memory_space<vmem>>, vector<32x2xf32>
    tpu.vector_store %arg5[%c64_31, %c0_32], %55 {strides = array<i32>} : memref<1024x2xf32, #tpu.memory_space<vmem>>, vector<32x2xf32>,
    %c32_i32_33 = arith.constant 32 : i32
    %57 = arith.muli %arg0, %c32_i32_33 : i32
    %c3_i32 = arith.constant 3 : i32
    %58 = arith.addi %57, %c3_i32 : i32
    %59 = arith.index_cast %58 : i32 to index
    %60 = memref.load %arg2[%59] : memref<32xf32, #tpu.memory_space<smem>>
    %c0_34 = arith.constant 0 : index
    %c0_35 = arith.constant 0 : index
    %61 = vector.load %arg3[%c0_34, %c0_35] : memref<32x128xf32, #tpu.memory_space<vmem>>, vector<32x128xf32>
    %62 = vector.broadcast %60 : f32 to vector<32x128xf32>
    %63 = arith.subf %62, %61 : vector<32x128xf32>
    %64 = math.tanh %63 : vector<32x128xf32>
    %cst_36 = arith.constant 5.000000e-01 : f32
    %65 = vector.broadcast %cst_36 : f32 to vector<32x128xf32>
    %66 = arith.mulf %65, %64 : vector<32x128xf32>
    %cst_37 = arith.constant 5.000000e-01 : f32
    %67 = vector.broadcast %cst_37 : f32 to vector<32x128xf32>
    %68 = arith.addf %66, %67 : vector<32x128xf32>
    %69 = arith.truncf %68 : vector<32x128xf32> to vector<32x128xbf16>
    %c96 = arith.constant 96 : index
    %c0_38 = arith.constant 0 : index
    %70 = vector.load %arg5[%c96, %c0_38] : memref<1024x2xf32, #tpu.memory_space<vmem>>, vector<32x2xf32>
    %c0_39 = arith.constant 0 : index
    %c0_40 = arith.constant 0 : index
    %71 = vector.load %arg4[%c0_39, %c0_40] : memref<128x2xbf16, #tpu.memory_space<vmem>>, vector<128x2xbf16>
    %cst_41 = arith.constant dense<0.000000e+00> : vector<32x2xf32>
    %72 = tpu.matmul %69, %71, %cst_41 {dimension_numbers = #tpu.dot_dimension_numbers<[1], [0], [0], [1], [0, 0, 1, 1], [], []>} : vector<32x128xbf16>, vector<128x2xbf16>, vector<32x2xf32> -> vector<32x2xf32>
    %73 = arith.addf %70, %72 : vector<32x2xf32>
    %c96_42 = arith.constant 96 : index
    %c0_43 = arith.constant 0 : index
    %74 = vector.load %arg5[%c96_42, %c0_43] : memref<1024x2xf32, #tpu.memory_space<vmem>>, vector<32x2xf32>
    tpu.vector_store %arg5[%c96_42, %c0_43], %73 {strides = array<i32>} : memref<1024x2xf32, #tpu.memory_space<vmem>>, vector<32x2xf32>,
    %c32_i32_44 = arith.constant 32 : i32
    %75 = arith.muli %arg0, %c32_i32_44 : i32
    %c4_i32 = arith.constant 4 : i32
    %76 = arith.addi %75, %c4_i32 : i32
    %77 = arith.index_cast %76 : i32 to index
    %78 = memref.load %arg2[%77] : memref<32xf32, #tpu.memory_space<smem>>
    %c0_45 = arith.constant 0 : index
    %c0_46 = arith.constant 0 : index
    %79 = vector.load %arg3[%c0_45, %c0_46] : memref<32x128xf32, #tpu.memory_space<vmem>>, vector<32x128xf32>
    %80 = vector.broadcast %78 : f32 to vector<32x128xf32>
    %81 = arith.subf %80, %79 : vector<32x128xf32>
    %82 = math.tanh %81 : vector<32x128xf32>
    %cst_47 = arith.constant 5.000000e-01 : f32
    %83 = vector.broadcast %cst_47 : f32 to vector<32x128xf32>
    %84 = arith.mulf %83, %82 : vector<32x128xf32>
    %cst_48 = arith.constant 5.000000e-01 : f32
    %85 = vector.broadcast %cst_48 : f32 to vector<32x128xf32>
    %86 = arith.addf %84, %85 : vector<32x128xf32>
    %87 = arith.truncf %86 : vector<32x128xf32> to vector<32x128xbf16>
    %c128 = arith.constant 128 : index
    %c0_49 = arith.constant 0 : index
    %88 = vector.load %arg5[%c128, %c0_49] : memref<1024x2xf32, #tpu.memory_space<vmem>>, vector<32x2xf32>
    %c0_50 = arith.constant 0 : index
    %c0_51 = arith.constant 0 : index
    %89 = vector.load %arg4[%c0_50, %c0_51] : memref<128x2xbf16, #tpu.memory_space<vmem>>, vector<128x2xbf16>
    %cst_52 = arith.constant dense<0.000000e+00> : vector<32x2xf32>
    %90 = tpu.matmul %87, %89, %cst_52 {dimension_numbers = #tpu.dot_dimension_numbers<[1], [0], [0], [1], [0, 0, 1, 1], [], []>} : vector<32x128xbf16>, vector<128x2xbf16>, vector<32x2xf32> -> vector<32x2xf32>
    %91 = arith.addf %88, %90 : vector<32x2xf32>
    %c128_53 = arith.constant 128 : index
    %c0_54 = arith.constant 0 : index
    %92 = vector.load %arg5[%c128_53, %c0_54] : memref<1024x2xf32, #tpu.memory_space<vmem>>, vector<32x2xf32>
    tpu.vector_store %arg5[%c128_53, %c0_54], %91 {strides = array<i32>} : memref<1024x2xf32, #tpu.memory_space<vmem>>, vector<32x2xf32>,
    %c32_i32_55 = arith.constant 32 : i32
    %93 = arith.muli %arg0, %c32_i32_55 : i32
    %c5_i32 = arith.constant 5 : i32
    %94 = arith.addi %93, %c5_i32 : i32
    %95 = arith.index_cast %94 : i32 to index
    %96 = memref.load %arg2[%95] : memref<32xf32, #tpu.memory_space<smem>>
    %c0_56 = arith.constant 0 : index
    %c0_57 = arith.constant 0 : index
    %97 = vector.load %arg3[%c0_56, %c0_57] : memref<32x128xf32, #tpu.memory_space<vmem>>, vector<32x128xf32>
    %98 = vector.broadcast %96 : f32 to vector<32x128xf32>
    %99 = arith.subf %98, %97 : vector<32x128xf32>
    %100 = math.tanh %99 : vector<32x128xf32>
    %cst_58 = arith.constant 5.000000e-01 : f32
    %101 = vector.broadcast %cst_58 : f32 to vector<32x128xf32>
    %102 = arith.mulf %101, %100 : vector<32x128xf32>
    %cst_59 = arith.constant 5.000000e-01 : f32
    %103 = vector.broadcast %cst_59 : f32 to vector<32x128xf32>
    %104 = arith.addf %102, %103 : vector<32x128xf32>
    %105 = arith.truncf %104 : vector<32x128xf32> to vector<32x128xbf16>
    %c160 = arith.constant 160 : index
    %c0_60 = arith.constant 0 : index
    %106 = vector.load %arg5[%c160, %c0_60] : memref<1024x2xf32, #tpu.memory_space<vmem>>, vector<32x2xf32>
    %c0_61 = arith.constant 0 : index
    %c0_62 = arith.constant 0 : index
    %107 = vector.load %arg4[%c0_61, %c0_62] : memref<128x2xbf16, #tpu.memory_space<vmem>>, vector<128x2xbf16>
    %cst_63 = arith.constant dense<0.000000e+00> : vector<32x2xf32>
    %108 = tpu.matmul %105, %107, %cst_63 {dimension_numbers = #tpu.dot_dimension_numbers<[1], [0], [0], [1], [0, 0, 1, 1], [], []>} : vector<32x128xbf16>, vector<128x2xbf16>, vector<32x2xf32> -> vector<32x2xf32>
    %109 = arith.addf %106, %108 : vector<32x2xf32>
    %c160_64 = arith.constant 160 : index
    %c0_65 = arith.constant 0 : index
    %110 = vector.load %arg5[%c160_64, %c0_65] : memref<1024x2xf32, #tpu.memory_space<vmem>>, vector<32x2xf32>
    tpu.vector_store %arg5[%c160_64, %c0_65], %109 {strides = array<i32>} : memref<1024x2xf32, #tpu.memory_space<vmem>>, vector<32x2xf32>,
    %c32_i32_66 = arith.constant 32 : i32
    %111 = arith.muli %arg0, %c32_i32_66 : i32
    %c6_i32 = arith.constant 6 : i32
    %112 = arith.addi %111, %c6_i32 : i32
    %113 = arith.index_cast %112 : i32 to index
    %114 = memref.load %arg2[%113] : memref<32xf32, #tpu.memory_space<smem>>
    %c0_67 = arith.constant 0 : index
    %c0_68 = arith.constant 0 : index
    %115 = vector.load %arg3[%c0_67, %c0_68] : memref<32x128xf32, #tpu.memory_space<vmem>>, vector<32x128xf32>
    %116 = vector.broadcast %114 : f32 to vector<32x128xf32>
    %117 = arith.subf %116, %115 : vector<32x128xf32>
    %118 = math.tanh %117 : vector<32x128xf32>
    %cst_69 = arith.constant 5.000000e-01 : f32
    %119 = vector.broadcast %cst_69 : f32 to vector<32x128xf32>
    %120 = arith.mulf %119, %118 : vector<32x128xf32>
    %cst_70 = arith.constant 5.000000e-01 : f32
    %121 = vector.broadcast %cst_70 : f32 to vector<32x128xf32>
    %122 = arith.addf %120, %121 : vector<32x128xf32>
    %123 = arith.truncf %122 : vector<32x128xf32> to vector<32x128xbf16>
    %c192 = arith.constant 192 : index
    %c0_71 = arith.constant 0 : index
    %124 = vector.load %arg5[%c192, %c0_71] : memref<1024x2xf32, #tpu.memory_space<vmem>>, vector<32x2xf32>
    %c0_72 = arith.constant 0 : index
    %c0_73 = arith.constant 0 : index
    %125 = vector.load %arg4[%c0_72, %c0_73] : memref<128x2xbf16, #tpu.memory_space<vmem>>, vector<128x2xbf16>
    %cst_74 = arith.constant dense<0.000000e+00> : vector<32x2xf32>
    %126 = tpu.matmul %123, %125, %cst_74 {dimension_numbers = #tpu.dot_dimension_numbers<[1], [0], [0], [1], [0, 0, 1, 1], [], []>} : vector<32x128xbf16>, vector<128x2xbf16>, vector<32x2xf32> -> vector<32x2xf32>
    %127 = arith.addf %124, %126 : vector<32x2xf32>
    %c192_75 = arith.constant 192 : index
    %c0_76 = arith.constant 0 : index
    %128 = vector.load %arg5[%c192_75, %c0_76] : memref<1024x2xf32, #tpu.memory_space<vmem>>, vector<32x2xf32>
    tpu.vector_store %arg5[%c192_75, %c0_76], %127 {strides = array<i32>} : memref<1024x2xf32, #tpu.memory_space<vmem>>, vector<32x2xf32>,
    %c32_i32_77 = arith.constant 32 : i32
    %129 = arith.muli %arg0, %c32_i32_77 : i32
    %c7_i32 = arith.constant 7 : i32
    %130 = arith.addi %129, %c7_i32 : i32
    %131 = arith.index_cast %130 : i32 to index
    %132 = memref.load %arg2[%131] : memref<32xf32, #tpu.memory_space<smem>>
    %c0_78 = arith.constant 0 : index
    %c0_79 = arith.constant 0 : index
    %133 = vector.load %arg3[%c0_78, %c0_79] : memref<32x128xf32, #tpu.memory_space<vmem>>, vector<32x128xf32>
    %134 = vector.broadcast %132 : f32 to vector<32x128xf32>
    %135 = arith.subf %134, %133 : vector<32x128xf32>
    %136 = math.tanh %135 : vector<32x128xf32>
    %cst_80 = arith.constant 5.000000e-01 : f32
    %137 = vector.broadcast %cst_80 : f32 to vector<32x128xf32>
    %138 = arith.mulf %137, %136 : vector<32x128xf32>
    %cst_81 = arith.constant 5.000000e-01 : f32
    %139 = vector.broadcast %cst_81 : f32 to vector<32x128xf32>
    %140 = arith.addf %138, %139 : vector<32x128xf32>
    %141 = arith.truncf %140 : vector<32x128xf32> to vector<32x128xbf16>
    %c224 = arith.constant 224 : index
    %c0_82 = arith.constant 0 : index
    %142 = vector.load %arg5[%c224, %c0_82] : memref<1024x2xf32, #tpu.memory_space<vmem>>, vector<32x2xf32>
    %c0_83 = arith.constant 0 : index
    %c0_84 = arith.constant 0 : index
    %143 = vector.load %arg4[%c0_83, %c0_84] : memref<128x2xbf16, #tpu.memory_space<vmem>>, vector<128x2xbf16>
    %cst_85 = arith.constant dense<0.000000e+00> : vector<32x2xf32>
    %144 = tpu.matmul %141, %143, %cst_85 {dimension_numbers = #tpu.dot_dimension_numbers<[1], [0], [0], [1], [0, 0, 1, 1], [], []>} : vector<32x128xbf16>, vector<128x2xbf16>, vector<32x2xf32> -> vector<32x2xf32>
    %145 = arith.addf %142, %144 : vector<32x2xf32>
    %c224_86 = arith.constant 224 : index
    %c0_87 = arith.constant 0 : index
    %146 = vector.load %arg5[%c224_86, %c0_87] : memref<1024x2xf32, #tpu.memory_space<vmem>>, vector<32x2xf32>
    tpu.vector_store %arg5[%c224_86, %c0_87], %145 {strides = array<i32>} : memref<1024x2xf32, #tpu.memory_space<vmem>>, vector<32x2xf32>,
    %c32_i32_88 = arith.constant 32 : i32
    %147 = arith.muli %arg0, %c32_i32_88 : i32
    %c8_i32 = arith.constant 8 : i32
    %148 = arith.addi %147, %c8_i32 : i32
    %149 = arith.index_cast %148 : i32 to index
    %150 = memref.load %arg2[%149] : memref<32xf32, #tpu.memory_space<smem>>
    %c0_89 = arith.constant 0 : index
    %c0_90 = arith.constant 0 : index
    %151 = vector.load %arg3[%c0_89, %c0_90] : memref<32x128xf32, #tpu.memory_space<vmem>>, vector<32x128xf32>
    %152 = vector.broadcast %150 : f32 to vector<32x128xf32>
    %153 = arith.subf %152, %151 : vector<32x128xf32>
    %154 = math.tanh %153 : vector<32x128xf32>
    %cst_91 = arith.constant 5.000000e-01 : f32
    %155 = vector.broadcast %cst_91 : f32 to vector<32x128xf32>
    %156 = arith.mulf %155, %154 : vector<32x128xf32>
    %cst_92 = arith.constant 5.000000e-01 : f32
    %157 = vector.broadcast %cst_92 : f32 to vector<32x128xf32>
    %158 = arith.addf %156, %157 : vector<32x128xf32>
    %159 = arith.truncf %158 : vector<32x128xf32> to vector<32x128xbf16>
    %c256 = arith.constant 256 : index
    %c0_93 = arith.constant 0 : index
    %160 = vector.load %arg5[%c256, %c0_93] : memref<1024x2xf32, #tpu.memory_space<vmem>>, vector<32x2xf32>
    %c0_94 = arith.constant 0 : index
    %c0_95 = arith.constant 0 : index
    %161 = vector.load %arg4[%c0_94, %c0_95] : memref<128x2xbf16, #tpu.memory_space<vmem>>, vector<128x2xbf16>
    %cst_96 = arith.constant dense<0.000000e+00> : vector<32x2xf32>
    %162 = tpu.matmul %159, %161, %cst_96 {dimension_numbers = #tpu.dot_dimension_numbers<[1], [0], [0], [1], [0, 0, 1, 1], [], []>} : vector<32x128xbf16>, vector<128x2xbf16>, vector<32x2xf32> -> vector<32x2xf32>
    %163 = arith.addf %160, %162 : vector<32x2xf32>
    %c256_97 = arith.constant 256 : index
    %c0_98 = arith.constant 0 : index
    %164 = vector.load %arg5[%c256_97, %c0_98] : memref<1024x2xf32, #tpu.memory_space<vmem>>, vector<32x2xf32>
    tpu.vector_store %arg5[%c256_97, %c0_98], %163 {strides = array<i32>} : memref<1024x2xf32, #tpu.memory_space<vmem>>, vector<32x2xf32>,
    %c32_i32_99 = arith.constant 32 : i32
    %165 = arith.muli %arg0, %c32_i32_99 : i32
    %c9_i32 = arith.constant 9 : i32
    %166 = arith.addi %165, %c9_i32 : i32
    %167 = arith.index_cast %166 : i32 to index
    %168 = memref.load %arg2[%167] : memref<32xf32, #tpu.memory_space<smem>>
    %c0_100 = arith.constant 0 : index
    %c0_101 = arith.constant 0 : index
    %169 = vector.load %arg3[%c0_100, %c0_101] : memref<32x128xf32, #tpu.memory_space<vmem>>, vector<32x128xf32>
    %170 = vector.broadcast %168 : f32 to vector<32x128xf32>
    %171 = arith.subf %170, %169 : vector<32x128xf32>
    %172 = math.tanh %171 : vector<32x128xf32>
    %cst_102 = arith.constant 5.000000e-01 : f32
    %173 = vector.broadcast %cst_102 : f32 to vector<32x128xf32>
    %174 = arith.mulf %173, %172 : vector<32x128xf32>
    %cst_103 = arith.constant 5.000000e-01 : f32
    %175 = vector.broadcast %cst_103 : f32 to vector<32x128xf32>
    %176 = arith.addf %174, %175 : vector<32x128xf32>
    %177 = arith.truncf %176 : vector<32x128xf32> to vector<32x128xbf16>
    %c288 = arith.constant 288 : index
    %c0_104 = arith.constant 0 : index
    %178 = vector.load %arg5[%c288, %c0_104] : memref<1024x2xf32, #tpu.memory_space<vmem>>, vector<32x2xf32>
    %c0_105 = arith.constant 0 : index
    %c0_106 = arith.constant 0 : index
    %179 = vector.load %arg4[%c0_105, %c0_106] : memref<128x2xbf16, #tpu.memory_space<vmem>>, vector<128x2xbf16>
    %cst_107 = arith.constant dense<0.000000e+00> : vector<32x2xf32>
    %180 = tpu.matmul %177, %179, %cst_107 {dimension_numbers = #tpu.dot_dimension_numbers<[1], [0], [0], [1], [0, 0, 1, 1], [], []>} : vector<32x128xbf16>, vector<128x2xbf16>, vector<32x2xf32> -> vector<32x2xf32>
    %181 = arith.addf %178, %180 : vector<32x2xf32>
    %c288_108 = arith.constant 288 : index
    %c0_109 = arith.constant 0 : index
    %182 = vector.load %arg5[%c288_108, %c0_109] : memref<1024x2xf32, #tpu.memory_space<vmem>>, vector<32x2xf32>
    tpu.vector_store %arg5[%c288_108, %c0_109], %181 {strides = array<i32>} : memref<1024x2xf32, #tpu.memory_space<vmem>>, vector<32x2xf32>,
    %c32_i32_110 = arith.constant 32 : i32
    %183 = arith.muli %arg0, %c32_i32_110 : i32
    %c10_i32 = arith.constant 10 : i32
    %184 = arith.addi %183, %c10_i32 : i32
    %185 = arith.index_cast %184 : i32 to index
    %186 = memref.load %arg2[%185] : memref<32xf32, #tpu.memory_space<smem>>
    %c0_111 = arith.constant 0 : index
    %c0_112 = arith.constant 0 : index
    %187 = vector.load %arg3[%c0_111, %c0_112] : memref<32x128xf32, #tpu.memory_space<vmem>>, vector<32x128xf32>
    %188 = vector.broadcast %186 : f32 to vector<32x128xf32>
    %189 = arith.subf %188, %187 : vector<32x128xf32>
    %190 = math.tanh %189 : vector<32x128xf32>
    %cst_113 = arith.constant 5.000000e-01 : f32
    %191 = vector.broadcast %cst_113 : f32 to vector<32x128xf32>
    %192 = arith.mulf %191, %190 : vector<32x128xf32>
    %cst_114 = arith.constant 5.000000e-01 : f32
    %193 = vector.broadcast %cst_114 : f32 to vector<32x128xf32>
    %194 = arith.addf %192, %193 : vector<32x128xf32>
    %195 = arith.truncf %194 : vector<32x128xf32> to vector<32x128xbf16>
    %c320 = arith.constant 320 : index
    %c0_115 = arith.constant 0 : index
    %196 = vector.load %arg5[%c320, %c0_115] : memref<1024x2xf32, #tpu.memory_space<vmem>>, vector<32x2xf32>
    %c0_116 = arith.constant 0 : index
    %c0_117 = arith.constant 0 : index
    %197 = vector.load %arg4[%c0_116, %c0_117] : memref<128x2xbf16, #tpu.memory_space<vmem>>, vector<128x2xbf16>
    %cst_118 = arith.constant dense<0.000000e+00> : vector<32x2xf32>
    %198 = tpu.matmul %195, %197, %cst_118 {dimension_numbers = #tpu.dot_dimension_numbers<[1], [0], [0], [1], [0, 0, 1, 1], [], []>} : vector<32x128xbf16>, vector<128x2xbf16>, vector<32x2xf32> -> vector<32x2xf32>
    %199 = arith.addf %196, %198 : vector<32x2xf32>
    %c320_119 = arith.constant 320 : index
    %c0_120 = arith.constant 0 : index
    %200 = vector.load %arg5[%c320_119, %c0_120] : memref<1024x2xf32, #tpu.memory_space<vmem>>, vector<32x2xf32>
    tpu.vector_store %arg5[%c320_119, %c0_120], %199 {strides = array<i32>} : memref<1024x2xf32, #tpu.memory_space<vmem>>, vector<32x2xf32>,
    %c32_i32_121 = arith.constant 32 : i32
    %201 = arith.muli %arg0, %c32_i32_121 : i32
    %c11_i32 = arith.constant 11 : i32
    %202 = arith.addi %201, %c11_i32 : i32
    %203 = arith.index_cast %202 : i32 to index
    %204 = memref.load %arg2[%203] : memref<32xf32, #tpu.memory_space<smem>>
    %c0_122 = arith.constant 0 : index
    %c0_123 = arith.constant 0 : index
    %205 = vector.load %arg3[%c0_122, %c0_123] : memref<32x128xf32, #tpu.memory_space<vmem>>, vector<32x128xf32>
    %206 = vector.broadcast %204 : f32 to vector<32x128xf32>
    %207 = arith.subf %206, %205 : vector<32x128xf32>
    %208 = math.tanh %207 : vector<32x128xf32>
    %cst_124 = arith.constant 5.000000e-01 : f32
    %209 = vector.broadcast %cst_124 : f32 to vector<32x128xf32>
    %210 = arith.mulf %209, %208 : vector<32x128xf32>
    %cst_125 = arith.constant 5.000000e-01 : f32
    %211 = vector.broadcast %cst_125 : f32 to vector<32x128xf32>
    %212 = arith.addf %210, %211 : vector<32x128xf32>
    %213 = arith.truncf %212 : vector<32x128xf32> to vector<32x128xbf16>
    %c352 = arith.constant 352 : index
    %c0_126 = arith.constant 0 : index
    %214 = vector.load %arg5[%c352, %c0_126] : memref<1024x2xf32, #tpu.memory_space<vmem>>, vector<32x2xf32>
    %c0_127 = arith.constant 0 : index
    %c0_128 = arith.constant 0 : index
    %215 = vector.load %arg4[%c0_127, %c0_128] : memref<128x2xbf16, #tpu.memory_space<vmem>>, vector<128x2xbf16>
    %cst_129 = arith.constant dense<0.000000e+00> : vector<32x2xf32>
    %216 = tpu.matmul %213, %215, %cst_129 {dimension_numbers = #tpu.dot_dimension_numbers<[1], [0], [0], [1], [0, 0, 1, 1], [], []>} : vector<32x128xbf16>, vector<128x2xbf16>, vector<32x2xf32> -> vector<32x2xf32>
    %217 = arith.addf %214, %216 : vector<32x2xf32>
    %c352_130 = arith.constant 352 : index
    %c0_131 = arith.constant 0 : index
    %218 = vector.load %arg5[%c352_130, %c0_131] : memref<1024x2xf32, #tpu.memory_space<vmem>>, vector<32x2xf32>
    tpu.vector_store %arg5[%c352_130, %c0_131], %217 {strides = array<i32>} : memref<1024x2xf32, #tpu.memory_space<vmem>>, vector<32x2xf32>,
    %c32_i32_132 = arith.constant 32 : i32
    %219 = arith.muli %arg0, %c32_i32_132 : i32
    %c12_i32 = arith.constant 12 : i32
    %220 = arith.addi %219, %c12_i32 : i32
    %221 = arith.index_cast %220 : i32 to index
    %222 = memref.load %arg2[%221] : memref<32xf32, #tpu.memory_space<smem>>
    %c0_133 = arith.constant 0 : index
    %c0_134 = arith.constant 0 : index
    %223 = vector.load %arg3[%c0_133, %c0_134] : memref<32x128xf32, #tpu.memory_space<vmem>>, vector<32x128xf32>
    %224 = vector.broadcast %222 : f32 to vector<32x128xf32>
    %225 = arith.subf %224, %223 : vector<32x128xf32>
    %226 = math.tanh %225 : vector<32x128xf32>
    %cst_135 = arith.constant 5.000000e-01 : f32
    %227 = vector.broadcast %cst_135 : f32 to vector<32x128xf32>
    %228 = arith.mulf %227, %226 : vector<32x128xf32>
    %cst_136 = arith.constant 5.000000e-01 : f32
    %229 = vector.broadcast %cst_136 : f32 to vector<32x128xf32>
    %230 = arith.addf %228, %229 : vector<32x128xf32>
    %231 = arith.truncf %230 : vector<32x128xf32> to vector<32x128xbf16>
    %c384 = arith.constant 384 : index
    %c0_137 = arith.constant 0 : index
    %232 = vector.load %arg5[%c384, %c0_137] : memref<1024x2xf32, #tpu.memory_space<vmem>>, vector<32x2xf32>
    %c0_138 = arith.constant 0 : index
    %c0_139 = arith.constant 0 : index
    %233 = vector.load %arg4[%c0_138, %c0_139] : memref<128x2xbf16, #tpu.memory_space<vmem>>, vector<128x2xbf16>
    %cst_140 = arith.constant dense<0.000000e+00> : vector<32x2xf32>
    %234 = tpu.matmul %231, %233, %cst_140 {dimension_numbers = #tpu.dot_dimension_numbers<[1], [0], [0], [1], [0, 0, 1, 1], [], []>} : vector<32x128xbf16>, vector<128x2xbf16>, vector<32x2xf32> -> vector<32x2xf32>
    %235 = arith.addf %232, %234 : vector<32x2xf32>
    %c384_141 = arith.constant 384 : index
    %c0_142 = arith.constant 0 : index
    %236 = vector.load %arg5[%c384_141, %c0_142] : memref<1024x2xf32, #tpu.memory_space<vmem>>, vector<32x2xf32>
    tpu.vector_store %arg5[%c384_141, %c0_142], %235 {strides = array<i32>} : memref<1024x2xf32, #tpu.memory_space<vmem>>, vector<32x2xf32>,
    %c32_i32_143 = arith.constant 32 : i32
    %237 = arith.muli %arg0, %c32_i32_143 : i32
    %c13_i32 = arith.constant 13 : i32
    %238 = arith.addi %237, %c13_i32 : i32
    %239 = arith.index_cast %238 : i32 to index
    %240 = memref.load %arg2[%239] : memref<32xf32, #tpu.memory_space<smem>>
    %c0_144 = arith.constant 0 : index
    %c0_145 = arith.constant 0 : index
    %241 = vector.load %arg3[%c0_144, %c0_145] : memref<32x128xf32, #tpu.memory_space<vmem>>, vector<32x128xf32>
    %242 = vector.broadcast %240 : f32 to vector<32x128xf32>
    %243 = arith.subf %242, %241 : vector<32x128xf32>
    %244 = math.tanh %243 : vector<32x128xf32>
    %cst_146 = arith.constant 5.000000e-01 : f32
    %245 = vector.broadcast %cst_146 : f32 to vector<32x128xf32>
    %246 = arith.mulf %245, %244 : vector<32x128xf32>
    %cst_147 = arith.constant 5.000000e-01 : f32
    %247 = vector.broadcast %cst_147 : f32 to vector<32x128xf32>
    %248 = arith.addf %246, %247 : vector<32x128xf32>
    %249 = arith.truncf %248 : vector<32x128xf32> to vector<32x128xbf16>
    %c416 = arith.constant 416 : index
    %c0_148 = arith.constant 0 : index
    %250 = vector.load %arg5[%c416, %c0_148] : memref<1024x2xf32, #tpu.memory_space<vmem>>, vector<32x2xf32>
    %c0_149 = arith.constant 0 : index
    %c0_150 = arith.constant 0 : index
    %251 = vector.load %arg4[%c0_149, %c0_150] : memref<128x2xbf16, #tpu.memory_space<vmem>>, vector<128x2xbf16>
    %cst_151 = arith.constant dense<0.000000e+00> : vector<32x2xf32>
    %252 = tpu.matmul %249, %251, %cst_151 {dimension_numbers = #tpu.dot_dimension_numbers<[1], [0], [0], [1], [0, 0, 1, 1], [], []>} : vector<32x128xbf16>, vector<128x2xbf16>, vector<32x2xf32> -> vector<32x2xf32>
    %253 = arith.addf %250, %252 : vector<32x2xf32>
    %c416_152 = arith.constant 416 : index
    %c0_153 = arith.constant 0 : index
    %254 = vector.load %arg5[%c416_152, %c0_153] : memref<1024x2xf32, #tpu.memory_space<vmem>>, vector<32x2xf32>
    tpu.vector_store %arg5[%c416_152, %c0_153], %253 {strides = array<i32>} : memref<1024x2xf32, #tpu.memory_space<vmem>>, vector<32x2xf32>,
    %c32_i32_154 = arith.constant 32 : i32
    %255 = arith.muli %arg0, %c32_i32_154 : i32
    %c14_i32 = arith.constant 14 : i32
    %256 = arith.addi %255, %c14_i32 : i32
    %257 = arith.index_cast %256 : i32 to index
    %258 = memref.load %arg2[%257] : memref<32xf32, #tpu.memory_space<smem>>
    %c0_155 = arith.constant 0 : index
    %c0_156 = arith.constant 0 : index
    %259 = vector.load %arg3[%c0_155, %c0_156] : memref<32x128xf32, #tpu.memory_space<vmem>>, vector<32x128xf32>
    %260 = vector.broadcast %258 : f32 to vector<32x128xf32>
    %261 = arith.subf %260, %259 : vector<32x128xf32>
    %262 = math.tanh %261 : vector<32x128xf32>
    %cst_157 = arith.constant 5.000000e-01 : f32
    %263 = vector.broadcast %cst_157 : f32 to vector<32x128xf32>
    %264 = arith.mulf %263, %262 : vector<32x128xf32>
    %cst_158 = arith.constant 5.000000e-01 : f32
    %265 = vector.broadcast %cst_158 : f32 to vector<32x128xf32>
    %266 = arith.addf %264, %265 : vector<32x128xf32>
    %267 = arith.truncf %266 : vector<32x128xf32> to vector<32x128xbf16>
    %c448 = arith.constant 448 : index
    %c0_159 = arith.constant 0 : index
    %268 = vector.load %arg5[%c448, %c0_159] : memref<1024x2xf32, #tpu.memory_space<vmem>>, vector<32x2xf32>
    %c0_160 = arith.constant 0 : index
    %c0_161 = arith.constant 0 : index
    %269 = vector.load %arg4[%c0_160, %c0_161] : memref<128x2xbf16, #tpu.memory_space<vmem>>, vector<128x2xbf16>
    %cst_162 = arith.constant dense<0.000000e+00> : vector<32x2xf32>
    %270 = tpu.matmul %267, %269, %cst_162 {dimension_numbers = #tpu.dot_dimension_numbers<[1], [0], [0], [1], [0, 0, 1, 1], [], []>} : vector<32x128xbf16>, vector<128x2xbf16>, vector<32x2xf32> -> vector<32x2xf32>
    %271 = arith.addf %268, %270 : vector<32x2xf32>
    %c448_163 = arith.constant 448 : index
    %c0_164 = arith.constant 0 : index
    %272 = vector.load %arg5[%c448_163, %c0_164] : memref<1024x2xf32, #tpu.memory_space<vmem>>, vector<32x2xf32>
    tpu.vector_store %arg5[%c448_163, %c0_164], %271 {strides = array<i32>} : memref<1024x2xf32, #tpu.memory_space<vmem>>, vector<32x2xf32>,
    %c32_i32_165 = arith.constant 32 : i32
    %273 = arith.muli %arg0, %c32_i32_165 : i32
    %c15_i32 = arith.constant 15 : i32
    %274 = arith.addi %273, %c15_i32 : i32
    %275 = arith.index_cast %274 : i32 to index
    %276 = memref.load %arg2[%275] : memref<32xf32, #tpu.memory_space<smem>>
    %c0_166 = arith.constant 0 : index
    %c0_167 = arith.constant 0 : index
    %277 = vector.load %arg3[%c0_166, %c0_167] : memref<32x128xf32, #tpu.memory_space<vmem>>, vector<32x128xf32>
    %278 = vector.broadcast %276 : f32 to vector<32x128xf32>
    %279 = arith.subf %278, %277 : vector<32x128xf32>
    %280 = math.tanh %279 : vector<32x128xf32>
    %cst_168 = arith.constant 5.000000e-01 : f32
    %281 = vector.broadcast %cst_168 : f32 to vector<32x128xf32>
    %282 = arith.mulf %281, %280 : vector<32x128xf32>
    %cst_169 = arith.constant 5.000000e-01 : f32
    %283 = vector.broadcast %cst_169 : f32 to vector<32x128xf32>
    %284 = arith.addf %282, %283 : vector<32x128xf32>
    %285 = arith.truncf %284 : vector<32x128xf32> to vector<32x128xbf16>
    %c480 = arith.constant 480 : index
    %c0_170 = arith.constant 0 : index
    %286 = vector.load %arg5[%c480, %c0_170] : memref<1024x2xf32, #tpu.memory_space<vmem>>, vector<32x2xf32>
    %c0_171 = arith.constant 0 : index
    %c0_172 = arith.constant 0 : index
    %287 = vector.load %arg4[%c0_171, %c0_172] : memref<128x2xbf16, #tpu.memory_space<vmem>>, vector<128x2xbf16>
    %cst_173 = arith.constant dense<0.000000e+00> : vector<32x2xf32>
    %288 = tpu.matmul %285, %287, %cst_173 {dimension_numbers = #tpu.dot_dimension_numbers<[1], [0], [0], [1], [0, 0, 1, 1], [], []>} : vector<32x128xbf16>, vector<128x2xbf16>, vector<32x2xf32> -> vector<32x2xf32>
    %289 = arith.addf %286, %288 : vector<32x2xf32>
    %c480_174 = arith.constant 480 : index
    %c0_175 = arith.constant 0 : index
    %290 = vector.load %arg5[%c480_174, %c0_175] : memref<1024x2xf32, #tpu.memory_space<vmem>>, vector<32x2xf32>
    tpu.vector_store %arg5[%c480_174, %c0_175], %289 {strides = array<i32>} : memref<1024x2xf32, #tpu.memory_space<vmem>>, vector<32x2xf32>,
    %c32_i32_176 = arith.constant 32 : i32
    %291 = arith.muli %arg0, %c32_i32_176 : i32
    %c16_i32 = arith.constant 16 : i32
    %292 = arith.addi %291, %c16_i32 : i32
    %293 = arith.index_cast %292 : i32 to index
    %294 = memref.load %arg2[%293] : memref<32xf32, #tpu.memory_space<smem>>
    %c0_177 = arith.constant 0 : index
    %c0_178 = arith.constant 0 : index
    %295 = vector.load %arg3[%c0_177, %c0_178] : memref<32x128xf32, #tpu.memory_space<vmem>>, vector<32x128xf32>
    %296 = vector.broadcast %294 : f32 to vector<32x128xf32>
    %297 = arith.subf %296, %295 : vector<32x128xf32>
    %298 = math.tanh %297 : vector<32x128xf32>
    %cst_179 = arith.constant 5.000000e-01 : f32
    %299 = vector.broadcast %cst_179 : f32 to vector<32x128xf32>
    %300 = arith.mulf %299, %298 : vector<32x128xf32>
    %cst_180 = arith.constant 5.000000e-01 : f32
    %301 = vector.broadcast %cst_180 : f32 to vector<32x128xf32>
    %302 = arith.addf %300, %301 : vector<32x128xf32>
    %303 = arith.truncf %302 : vector<32x128xf32> to vector<32x128xbf16>
    %c512 = arith.constant 512 : index
    %c0_181 = arith.constant 0 : index
    %304 = vector.load %arg5[%c512, %c0_181] : memref<1024x2xf32, #tpu.memory_space<vmem>>, vector<32x2xf32>
    %c0_182 = arith.constant 0 : index
    %c0_183 = arith.constant 0 : index
    %305 = vector.load %arg4[%c0_182, %c0_183] : memref<128x2xbf16, #tpu.memory_space<vmem>>, vector<128x2xbf16>
    %cst_184 = arith.constant dense<0.000000e+00> : vector<32x2xf32>
    %306 = tpu.matmul %303, %305, %cst_184 {dimension_numbers = #tpu.dot_dimension_numbers<[1], [0], [0], [1], [0, 0, 1, 1], [], []>} : vector<32x128xbf16>, vector<128x2xbf16>, vector<32x2xf32> -> vector<32x2xf32>
    %307 = arith.addf %304, %306 : vector<32x2xf32>
    %c512_185 = arith.constant 512 : index
    %c0_186 = arith.constant 0 : index
    %308 = vector.load %arg5[%c512_185, %c0_186] : memref<1024x2xf32, #tpu.memory_space<vmem>>, vector<32x2xf32>
    tpu.vector_store %arg5[%c512_185, %c0_186], %307 {strides = array<i32>} : memref<1024x2xf32, #tpu.memory_space<vmem>>, vector<32x2xf32>,
    %c32_i32_187 = arith.constant 32 : i32
    %309 = arith.muli %arg0, %c32_i32_187 : i32
    %c17_i32 = arith.constant 17 : i32
    %310 = arith.addi %309, %c17_i32 : i32
    %311 = arith.index_cast %310 : i32 to index
    %312 = memref.load %arg2[%311] : memref<32xf32, #tpu.memory_space<smem>>
    %c0_188 = arith.constant 0 : index
    %c0_189 = arith.constant 0 : index
    %313 = vector.load %arg3[%c0_188, %c0_189] : memref<32x128xf32, #tpu.memory_space<vmem>>, vector<32x128xf32>
    %314 = vector.broadcast %312 : f32 to vector<32x128xf32>
    %315 = arith.subf %314, %313 : vector<32x128xf32>
    %316 = math.tanh %315 : vector<32x128xf32>
    %cst_190 = arith.constant 5.000000e-01 : f32
    %317 = vector.broadcast %cst_190 : f32 to vector<32x128xf32>
    %318 = arith.mulf %317, %316 : vector<32x128xf32>
    %cst_191 = arith.constant 5.000000e-01 : f32
    %319 = vector.broadcast %cst_191 : f32 to vector<32x128xf32>
    %320 = arith.addf %318, %319 : vector<32x128xf32>
    %321 = arith.truncf %320 : vector<32x128xf32> to vector<32x128xbf16>
    %c544 = arith.constant 544 : index
    %c0_192 = arith.constant 0 : index
    %322 = vector.load %arg5[%c544, %c0_192] : memref<1024x2xf32, #tpu.memory_space<vmem>>, vector<32x2xf32>
    %c0_193 = arith.constant 0 : index
    %c0_194 = arith.constant 0 : index
    %323 = vector.load %arg4[%c0_193, %c0_194] : memref<128x2xbf16, #tpu.memory_space<vmem>>, vector<128x2xbf16>
    %cst_195 = arith.constant dense<0.000000e+00> : vector<32x2xf32>
    %324 = tpu.matmul %321, %323, %cst_195 {dimension_numbers = #tpu.dot_dimension_numbers<[1], [0], [0], [1], [0, 0, 1, 1], [], []>} : vector<32x128xbf16>, vector<128x2xbf16>, vector<32x2xf32> -> vector<32x2xf32>
    %325 = arith.addf %322, %324 : vector<32x2xf32>
    %c544_196 = arith.constant 544 : index
    %c0_197 = arith.constant 0 : index
    %326 = vector.load %arg5[%c544_196, %c0_197] : memref<1024x2xf32, #tpu.memory_space<vmem>>, vector<32x2xf32>
    tpu.vector_store %arg5[%c544_196, %c0_197], %325 {strides = array<i32>} : memref<1024x2xf32, #tpu.memory_space<vmem>>, vector<32x2xf32>,
    %c32_i32_198 = arith.constant 32 : i32
    %327 = arith.muli %arg0, %c32_i32_198 : i32
    %c18_i32 = arith.constant 18 : i32
    %328 = arith.addi %327, %c18_i32 : i32
    %329 = arith.index_cast %328 : i32 to index
    %330 = memref.load %arg2[%329] : memref<32xf32, #tpu.memory_space<smem>>
    %c0_199 = arith.constant 0 : index
    %c0_200 = arith.constant 0 : index
    %331 = vector.load %arg3[%c0_199, %c0_200] : memref<32x128xf32, #tpu.memory_space<vmem>>, vector<32x128xf32>
    %332 = vector.broadcast %330 : f32 to vector<32x128xf32>
    %333 = arith.subf %332, %331 : vector<32x128xf32>
    %334 = math.tanh %333 : vector<32x128xf32>
    %cst_201 = arith.constant 5.000000e-01 : f32
    %335 = vector.broadcast %cst_201 : f32 to vector<32x128xf32>
    %336 = arith.mulf %335, %334 : vector<32x128xf32>
    %cst_202 = arith.constant 5.000000e-01 : f32
    %337 = vector.broadcast %cst_202 : f32 to vector<32x128xf32>
    %338 = arith.addf %336, %337 : vector<32x128xf32>
    %339 = arith.truncf %338 : vector<32x128xf32> to vector<32x128xbf16>
    %c576 = arith.constant 576 : index
    %c0_203 = arith.constant 0 : index
    %340 = vector.load %arg5[%c576, %c0_203] : memref<1024x2xf32, #tpu.memory_space<vmem>>, vector<32x2xf32>
    %c0_204 = arith.constant 0 : index
    %c0_205 = arith.constant 0 : index
    %341 = vector.load %arg4[%c0_204, %c0_205] : memref<128x2xbf16, #tpu.memory_space<vmem>>, vector<128x2xbf16>
    %cst_206 = arith.constant dense<0.000000e+00> : vector<32x2xf32>
    %342 = tpu.matmul %339, %341, %cst_206 {dimension_numbers = #tpu.dot_dimension_numbers<[1], [0], [0], [1], [0, 0, 1, 1], [], []>} : vector<32x128xbf16>, vector<128x2xbf16>, vector<32x2xf32> -> vector<32x2xf32>
    %343 = arith.addf %340, %342 : vector<32x2xf32>
    %c576_207 = arith.constant 576 : index
    %c0_208 = arith.constant 0 : index
    %344 = vector.load %arg5[%c576_207, %c0_208] : memref<1024x2xf32, #tpu.memory_space<vmem>>, vector<32x2xf32>
    tpu.vector_store %arg5[%c576_207, %c0_208], %343 {strides = array<i32>} : memref<1024x2xf32, #tpu.memory_space<vmem>>, vector<32x2xf32>,
    %c32_i32_209 = arith.constant 32 : i32
    %345 = arith.muli %arg0, %c32_i32_209 : i32
    %c19_i32 = arith.constant 19 : i32
    %346 = arith.addi %345, %c19_i32 : i32
    %347 = arith.index_cast %346 : i32 to index
    %348 = memref.load %arg2[%347] : memref<32xf32, #tpu.memory_space<smem>>
    %c0_210 = arith.constant 0 : index
    %c0_211 = arith.constant 0 : index
    %349 = vector.load %arg3[%c0_210, %c0_211] : memref<32x128xf32, #tpu.memory_space<vmem>>, vector<32x128xf32>
    %350 = vector.broadcast %348 : f32 to vector<32x128xf32>
    %351 = arith.subf %350, %349 : vector<32x128xf32>
    %352 = math.tanh %351 : vector<32x128xf32>
    %cst_212 = arith.constant 5.000000e-01 : f32
    %353 = vector.broadcast %cst_212 : f32 to vector<32x128xf32>
    %354 = arith.mulf %353, %352 : vector<32x128xf32>
    %cst_213 = arith.constant 5.000000e-01 : f32
    %355 = vector.broadcast %cst_213 : f32 to vector<32x128xf32>
    %356 = arith.addf %354, %355 : vector<32x128xf32>
    %357 = arith.truncf %356 : vector<32x128xf32> to vector<32x128xbf16>
    %c608 = arith.constant 608 : index
    %c0_214 = arith.constant 0 : index
    %358 = vector.load %arg5[%c608, %c0_214] : memref<1024x2xf32, #tpu.memory_space<vmem>>, vector<32x2xf32>
    %c0_215 = arith.constant 0 : index
    %c0_216 = arith.constant 0 : index
    %359 = vector.load %arg4[%c0_215, %c0_216] : memref<128x2xbf16, #tpu.memory_space<vmem>>, vector<128x2xbf16>
    %cst_217 = arith.constant dense<0.000000e+00> : vector<32x2xf32>
    %360 = tpu.matmul %357, %359, %cst_217 {dimension_numbers = #tpu.dot_dimension_numbers<[1], [0], [0], [1], [0, 0, 1, 1], [], []>} : vector<32x128xbf16>, vector<128x2xbf16>, vector<32x2xf32> -> vector<32x2xf32>
    %361 = arith.addf %358, %360 : vector<32x2xf32>
    %c608_218 = arith.constant 608 : index
    %c0_219 = arith.constant 0 : index
    %362 = vector.load %arg5[%c608_218, %c0_219] : memref<1024x2xf32, #tpu.memory_space<vmem>>, vector<32x2xf32>
    tpu.vector_store %arg5[%c608_218, %c0_219], %361 {strides = array<i32>} : memref<1024x2xf32, #tpu.memory_space<vmem>>, vector<32x2xf32>,
    %c32_i32_220 = arith.constant 32 : i32
    %363 = arith.muli %arg0, %c32_i32_220 : i32
    %c20_i32 = arith.constant 20 : i32
    %364 = arith.addi %363, %c20_i32 : i32
    %365 = arith.index_cast %364 : i32 to index
    %366 = memref.load %arg2[%365] : memref<32xf32, #tpu.memory_space<smem>>
    %c0_221 = arith.constant 0 : index
    %c0_222 = arith.constant 0 : index
    %367 = vector.load %arg3[%c0_221, %c0_222] : memref<32x128xf32, #tpu.memory_space<vmem>>, vector<32x128xf32>
    %368 = vector.broadcast %366 : f32 to vector<32x128xf32>
    %369 = arith.subf %368, %367 : vector<32x128xf32>
    %370 = math.tanh %369 : vector<32x128xf32>
    %cst_223 = arith.constant 5.000000e-01 : f32
    %371 = vector.broadcast %cst_223 : f32 to vector<32x128xf32>
    %372 = arith.mulf %371, %370 : vector<32x128xf32>
    %cst_224 = arith.constant 5.000000e-01 : f32
    %373 = vector.broadcast %cst_224 : f32 to vector<32x128xf32>
    %374 = arith.addf %372, %373 : vector<32x128xf32>
    %375 = arith.truncf %374 : vector<32x128xf32> to vector<32x128xbf16>
    %c640 = arith.constant 640 : index
    %c0_225 = arith.constant 0 : index
    %376 = vector.load %arg5[%c640, %c0_225] : memref<1024x2xf32, #tpu.memory_space<vmem>>, vector<32x2xf32>
    %c0_226 = arith.constant 0 : index
    %c0_227 = arith.constant 0 : index
    %377 = vector.load %arg4[%c0_226, %c0_227] : memref<128x2xbf16, #tpu.memory_space<vmem>>, vector<128x2xbf16>
    %cst_228 = arith.constant dense<0.000000e+00> : vector<32x2xf32>
    %378 = tpu.matmul %375, %377, %cst_228 {dimension_numbers = #tpu.dot_dimension_numbers<[1], [0], [0], [1], [0, 0, 1, 1], [], []>} : vector<32x128xbf16>, vector<128x2xbf16>, vector<32x2xf32> -> vector<32x2xf32>
    %379 = arith.addf %376, %378 : vector<32x2xf32>
    %c640_229 = arith.constant 640 : index
    %c0_230 = arith.constant 0 : index
    %380 = vector.load %arg5[%c640_229, %c0_230] : memref<1024x2xf32, #tpu.memory_space<vmem>>, vector<32x2xf32>
    tpu.vector_store %arg5[%c640_229, %c0_230], %379 {strides = array<i32>} : memref<1024x2xf32, #tpu.memory_space<vmem>>, vector<32x2xf32>,
    %c32_i32_231 = arith.constant 32 : i32
    %381 = arith.muli %arg0, %c32_i32_231 : i32
    %c21_i32 = arith.constant 21 : i32
    %382 = arith.addi %381, %c21_i32 : i32
    %383 = arith.index_cast %382 : i32 to index
    %384 = memref.load %arg2[%383] : memref<32xf32, #tpu.memory_space<smem>>
    %c0_232 = arith.constant 0 : index
    %c0_233 = arith.constant 0 : index
    %385 = vector.load %arg3[%c0_232, %c0_233] : memref<32x128xf32, #tpu.memory_space<vmem>>, vector<32x128xf32>
    %386 = vector.broadcast %384 : f32 to vector<32x128xf32>
    %387 = arith.subf %386, %385 : vector<32x128xf32>
    %388 = math.tanh %387 : vector<32x128xf32>
    %cst_234 = arith.constant 5.000000e-01 : f32
    %389 = vector.broadcast %cst_234 : f32 to vector<32x128xf32>
    %390 = arith.mulf %389, %388 : vector<32x128xf32>
    %cst_235 = arith.constant 5.000000e-01 : f32
    %391 = vector.broadcast %cst_235 : f32 to vector<32x128xf32>
    %392 = arith.addf %390, %391 : vector<32x128xf32>
    %393 = arith.truncf %392 : vector<32x128xf32> to vector<32x128xbf16>
    %c672 = arith.constant 672 : index
    %c0_236 = arith.constant 0 : index
    %394 = vector.load %arg5[%c672, %c0_236] : memref<1024x2xf32, #tpu.memory_space<vmem>>, vector<32x2xf32>
    %c0_237 = arith.constant 0 : index
    %c0_238 = arith.constant 0 : index
    %395 = vector.load %arg4[%c0_237, %c0_238] : memref<128x2xbf16, #tpu.memory_space<vmem>>, vector<128x2xbf16>
    %cst_239 = arith.constant dense<0.000000e+00> : vector<32x2xf32>
    %396 = tpu.matmul %393, %395, %cst_239 {dimension_numbers = #tpu.dot_dimension_numbers<[1], [0], [0], [1], [0, 0, 1, 1], [], []>} : vector<32x128xbf16>, vector<128x2xbf16>, vector<32x2xf32> -> vector<32x2xf32>
    %397 = arith.addf %394, %396 : vector<32x2xf32>
    %c672_240 = arith.constant 672 : index
    %c0_241 = arith.constant 0 : index
    %398 = vector.load %arg5[%c672_240, %c0_241] : memref<1024x2xf32, #tpu.memory_space<vmem>>, vector<32x2xf32>
    tpu.vector_store %arg5[%c672_240, %c0_241], %397 {strides = array<i32>} : memref<1024x2xf32, #tpu.memory_space<vmem>>, vector<32x2xf32>,
    %c32_i32_242 = arith.constant 32 : i32
    %399 = arith.muli %arg0, %c32_i32_242 : i32
    %c22_i32 = arith.constant 22 : i32
    %400 = arith.addi %399, %c22_i32 : i32
    %401 = arith.index_cast %400 : i32 to index
    %402 = memref.load %arg2[%401] : memref<32xf32, #tpu.memory_space<smem>>
    %c0_243 = arith.constant 0 : index
    %c0_244 = arith.constant 0 : index
    %403 = vector.load %arg3[%c0_243, %c0_244] : memref<32x128xf32, #tpu.memory_space<vmem>>, vector<32x128xf32>
    %404 = vector.broadcast %402 : f32 to vector<32x128xf32>
    %405 = arith.subf %404, %403 : vector<32x128xf32>
    %406 = math.tanh %405 : vector<32x128xf32>
    %cst_245 = arith.constant 5.000000e-01 : f32
    %407 = vector.broadcast %cst_245 : f32 to vector<32x128xf32>
    %408 = arith.mulf %407, %406 : vector<32x128xf32>
    %cst_246 = arith.constant 5.000000e-01 : f32
    %409 = vector.broadcast %cst_246 : f32 to vector<32x128xf32>
    %410 = arith.addf %408, %409 : vector<32x128xf32>
    %411 = arith.truncf %410 : vector<32x128xf32> to vector<32x128xbf16>
    %c704 = arith.constant 704 : index
    %c0_247 = arith.constant 0 : index
    %412 = vector.load %arg5[%c704, %c0_247] : memref<1024x2xf32, #tpu.memory_space<vmem>>, vector<32x2xf32>
    %c0_248 = arith.constant 0 : index
    %c0_249 = arith.constant 0 : index
    %413 = vector.load %arg4[%c0_248, %c0_249] : memref<128x2xbf16, #tpu.memory_space<vmem>>, vector<128x2xbf16>
    %cst_250 = arith.constant dense<0.000000e+00> : vector<32x2xf32>
    %414 = tpu.matmul %411, %413, %cst_250 {dimension_numbers = #tpu.dot_dimension_numbers<[1], [0], [0], [1], [0, 0, 1, 1], [], []>} : vector<32x128xbf16>, vector<128x2xbf16>, vector<32x2xf32> -> vector<32x2xf32>
    %415 = arith.addf %412, %414 : vector<32x2xf32>
    %c704_251 = arith.constant 704 : index
    %c0_252 = arith.constant 0 : index
    %416 = vector.load %arg5[%c704_251, %c0_252] : memref<1024x2xf32, #tpu.memory_space<vmem>>, vector<32x2xf32>
    tpu.vector_store %arg5[%c704_251, %c0_252], %415 {strides = array<i32>} : memref<1024x2xf32, #tpu.memory_space<vmem>>, vector<32x2xf32>,
    %c32_i32_253 = arith.constant 32 : i32
    %417 = arith.muli %arg0, %c32_i32_253 : i32
    %c23_i32 = arith.constant 23 : i32
    %418 = arith.addi %417, %c23_i32 : i32
    %419 = arith.index_cast %418 : i32 to index
    %420 = memref.load %arg2[%419] : memref<32xf32, #tpu.memory_space<smem>>
    %c0_254 = arith.constant 0 : index
    %c0_255 = arith.constant 0 : index
    %421 = vector.load %arg3[%c0_254, %c0_255] : memref<32x128xf32, #tpu.memory_space<vmem>>, vector<32x128xf32>
    %422 = vector.broadcast %420 : f32 to vector<32x128xf32>
    %423 = arith.subf %422, %421 : vector<32x128xf32>
    %424 = math.tanh %423 : vector<32x128xf32>
    %cst_256 = arith.constant 5.000000e-01 : f32
    %425 = vector.broadcast %cst_256 : f32 to vector<32x128xf32>
    %426 = arith.mulf %425, %424 : vector<32x128xf32>
    %cst_257 = arith.constant 5.000000e-01 : f32
    %427 = vector.broadcast %cst_257 : f32 to vector<32x128xf32>
    %428 = arith.addf %426, %427 : vector<32x128xf32>
    %429 = arith.truncf %428 : vector<32x128xf32> to vector<32x128xbf16>
    %c736 = arith.constant 736 : index
    %c0_258 = arith.constant 0 : index
    %430 = vector.load %arg5[%c736, %c0_258] : memref<1024x2xf32, #tpu.memory_space<vmem>>, vector<32x2xf32>
    %c0_259 = arith.constant 0 : index
    %c0_260 = arith.constant 0 : index
    %431 = vector.load %arg4[%c0_259, %c0_260] : memref<128x2xbf16, #tpu.memory_space<vmem>>, vector<128x2xbf16>
    %cst_261 = arith.constant dense<0.000000e+00> : vector<32x2xf32>
    %432 = tpu.matmul %429, %431, %cst_261 {dimension_numbers = #tpu.dot_dimension_numbers<[1], [0], [0], [1], [0, 0, 1, 1], [], []>} : vector<32x128xbf16>, vector<128x2xbf16>, vector<32x2xf32> -> vector<32x2xf32>
    %433 = arith.addf %430, %432 : vector<32x2xf32>
    %c736_262 = arith.constant 736 : index
    %c0_263 = arith.constant 0 : index
    %434 = vector.load %arg5[%c736_262, %c0_263] : memref<1024x2xf32, #tpu.memory_space<vmem>>, vector<32x2xf32>
    tpu.vector_store %arg5[%c736_262, %c0_263], %433 {strides = array<i32>} : memref<1024x2xf32, #tpu.memory_space<vmem>>, vector<32x2xf32>,
    %c32_i32_264 = arith.constant 32 : i32
    %435 = arith.muli %arg0, %c32_i32_264 : i32
    %c24_i32 = arith.constant 24 : i32
    %436 = arith.addi %435, %c24_i32 : i32
    %437 = arith.index_cast %436 : i32 to index
    %438 = memref.load %arg2[%437] : memref<32xf32, #tpu.memory_space<smem>>
    %c0_265 = arith.constant 0 : index
    %c0_266 = arith.constant 0 : index
    %439 = vector.load %arg3[%c0_265, %c0_266] : memref<32x128xf32, #tpu.memory_space<vmem>>, vector<32x128xf32>
    %440 = vector.broadcast %438 : f32 to vector<32x128xf32>
    %441 = arith.subf %440, %439 : vector<32x128xf32>
    %442 = math.tanh %441 : vector<32x128xf32>
    %cst_267 = arith.constant 5.000000e-01 : f32
    %443 = vector.broadcast %cst_267 : f32 to vector<32x128xf32>
    %444 = arith.mulf %443, %442 : vector<32x128xf32>
    %cst_268 = arith.constant 5.000000e-01 : f32
    %445 = vector.broadcast %cst_268 : f32 to vector<32x128xf32>
    %446 = arith.addf %444, %445 : vector<32x128xf32>
    %447 = arith.truncf %446 : vector<32x128xf32> to vector<32x128xbf16>
    %c768 = arith.constant 768 : index
    %c0_269 = arith.constant 0 : index
    %448 = vector.load %arg5[%c768, %c0_269] : memref<1024x2xf32, #tpu.memory_space<vmem>>, vector<32x2xf32>
    %c0_270 = arith.constant 0 : index
    %c0_271 = arith.constant 0 : index
    %449 = vector.load %arg4[%c0_270, %c0_271] : memref<128x2xbf16, #tpu.memory_space<vmem>>, vector<128x2xbf16>
    %cst_272 = arith.constant dense<0.000000e+00> : vector<32x2xf32>
    %450 = tpu.matmul %447, %449, %cst_272 {dimension_numbers = #tpu.dot_dimension_numbers<[1], [0], [0], [1], [0, 0, 1, 1], [], []>} : vector<32x128xbf16>, vector<128x2xbf16>, vector<32x2xf32> -> vector<32x2xf32>
    %451 = arith.addf %448, %450 : vector<32x2xf32>
    %c768_273 = arith.constant 768 : index
    %c0_274 = arith.constant 0 : index
    %452 = vector.load %arg5[%c768_273, %c0_274] : memref<1024x2xf32, #tpu.memory_space<vmem>>, vector<32x2xf32>
    tpu.vector_store %arg5[%c768_273, %c0_274], %451 {strides = array<i32>} : memref<1024x2xf32, #tpu.memory_space<vmem>>, vector<32x2xf32>,
    %c32_i32_275 = arith.constant 32 : i32
    %453 = arith.muli %arg0, %c32_i32_275 : i32
    %c25_i32 = arith.constant 25 : i32
    %454 = arith.addi %453, %c25_i32 : i32
    %455 = arith.index_cast %454 : i32 to index
    %456 = memref.load %arg2[%455] : memref<32xf32, #tpu.memory_space<smem>>
    %c0_276 = arith.constant 0 : index
    %c0_277 = arith.constant 0 : index
    %457 = vector.load %arg3[%c0_276, %c0_277] : memref<32x128xf32, #tpu.memory_space<vmem>>, vector<32x128xf32>
    %458 = vector.broadcast %456 : f32 to vector<32x128xf32>
    %459 = arith.subf %458, %457 : vector<32x128xf32>
    %460 = math.tanh %459 : vector<32x128xf32>
    %cst_278 = arith.constant 5.000000e-01 : f32
    %461 = vector.broadcast %cst_278 : f32 to vector<32x128xf32>
    %462 = arith.mulf %461, %460 : vector<32x128xf32>
    %cst_279 = arith.constant 5.000000e-01 : f32
    %463 = vector.broadcast %cst_279 : f32 to vector<32x128xf32>
    %464 = arith.addf %462, %463 : vector<32x128xf32>
    %465 = arith.truncf %464 : vector<32x128xf32> to vector<32x128xbf16>
    %c800 = arith.constant 800 : index
    %c0_280 = arith.constant 0 : index
    %466 = vector.load %arg5[%c800, %c0_280] : memref<1024x2xf32, #tpu.memory_space<vmem>>, vector<32x2xf32>
    %c0_281 = arith.constant 0 : index
    %c0_282 = arith.constant 0 : index
    %467 = vector.load %arg4[%c0_281, %c0_282] : memref<128x2xbf16, #tpu.memory_space<vmem>>, vector<128x2xbf16>
    %cst_283 = arith.constant dense<0.000000e+00> : vector<32x2xf32>
    %468 = tpu.matmul %465, %467, %cst_283 {dimension_numbers = #tpu.dot_dimension_numbers<[1], [0], [0], [1], [0, 0, 1, 1], [], []>} : vector<32x128xbf16>, vector<128x2xbf16>, vector<32x2xf32> -> vector<32x2xf32>
    %469 = arith.addf %466, %468 : vector<32x2xf32>
    %c800_284 = arith.constant 800 : index
    %c0_285 = arith.constant 0 : index
    %470 = vector.load %arg5[%c800_284, %c0_285] : memref<1024x2xf32, #tpu.memory_space<vmem>>, vector<32x2xf32>
    tpu.vector_store %arg5[%c800_284, %c0_285], %469 {strides = array<i32>} : memref<1024x2xf32, #tpu.memory_space<vmem>>, vector<32x2xf32>,
    %c32_i32_286 = arith.constant 32 : i32
    %471 = arith.muli %arg0, %c32_i32_286 : i32
    %c26_i32 = arith.constant 26 : i32
    %472 = arith.addi %471, %c26_i32 : i32
    %473 = arith.index_cast %472 : i32 to index
    %474 = memref.load %arg2[%473] : memref<32xf32, #tpu.memory_space<smem>>
    %c0_287 = arith.constant 0 : index
    %c0_288 = arith.constant 0 : index
    %475 = vector.load %arg3[%c0_287, %c0_288] : memref<32x128xf32, #tpu.memory_space<vmem>>, vector<32x128xf32>
    %476 = vector.broadcast %474 : f32 to vector<32x128xf32>
    %477 = arith.subf %476, %475 : vector<32x128xf32>
    %478 = math.tanh %477 : vector<32x128xf32>
    %cst_289 = arith.constant 5.000000e-01 : f32
    %479 = vector.broadcast %cst_289 : f32 to vector<32x128xf32>
    %480 = arith.mulf %479, %478 : vector<32x128xf32>
    %cst_290 = arith.constant 5.000000e-01 : f32
    %481 = vector.broadcast %cst_290 : f32 to vector<32x128xf32>
    %482 = arith.addf %480, %481 : vector<32x128xf32>
    %483 = arith.truncf %482 : vector<32x128xf32> to vector<32x128xbf16>
    %c832 = arith.constant 832 : index
    %c0_291 = arith.constant 0 : index
    %484 = vector.load %arg5[%c832, %c0_291] : memref<1024x2xf32, #tpu.memory_space<vmem>>, vector<32x2xf32>
    %c0_292 = arith.constant 0 : index
    %c0_293 = arith.constant 0 : index
    %485 = vector.load %arg4[%c0_292, %c0_293] : memref<128x2xbf16, #tpu.memory_space<vmem>>, vector<128x2xbf16>
    %cst_294 = arith.constant dense<0.000000e+00> : vector<32x2xf32>
    %486 = tpu.matmul %483, %485, %cst_294 {dimension_numbers = #tpu.dot_dimension_numbers<[1], [0], [0], [1], [0, 0, 1, 1], [], []>} : vector<32x128xbf16>, vector<128x2xbf16>, vector<32x2xf32> -> vector<32x2xf32>
    %487 = arith.addf %484, %486 : vector<32x2xf32>
    %c832_295 = arith.constant 832 : index
    %c0_296 = arith.constant 0 : index
    %488 = vector.load %arg5[%c832_295, %c0_296] : memref<1024x2xf32, #tpu.memory_space<vmem>>, vector<32x2xf32>
    tpu.vector_store %arg5[%c832_295, %c0_296], %487 {strides = array<i32>} : memref<1024x2xf32, #tpu.memory_space<vmem>>, vector<32x2xf32>,
    %c32_i32_297 = arith.constant 32 : i32
    %489 = arith.muli %arg0, %c32_i32_297 : i32
    %c27_i32 = arith.constant 27 : i32
    %490 = arith.addi %489, %c27_i32 : i32
    %491 = arith.index_cast %490 : i32 to index
    %492 = memref.load %arg2[%491] : memref<32xf32, #tpu.memory_space<smem>>
    %c0_298 = arith.constant 0 : index
    %c0_299 = arith.constant 0 : index
    %493 = vector.load %arg3[%c0_298, %c0_299] : memref<32x128xf32, #tpu.memory_space<vmem>>, vector<32x128xf32>
    %494 = vector.broadcast %492 : f32 to vector<32x128xf32>
    %495 = arith.subf %494, %493 : vector<32x128xf32>
    %496 = math.tanh %495 : vector<32x128xf32>
    %cst_300 = arith.constant 5.000000e-01 : f32
    %497 = vector.broadcast %cst_300 : f32 to vector<32x128xf32>
    %498 = arith.mulf %497, %496 : vector<32x128xf32>
    %cst_301 = arith.constant 5.000000e-01 : f32
    %499 = vector.broadcast %cst_301 : f32 to vector<32x128xf32>
    %500 = arith.addf %498, %499 : vector<32x128xf32>
    %501 = arith.truncf %500 : vector<32x128xf32> to vector<32x128xbf16>
    %c864 = arith.constant 864 : index
    %c0_302 = arith.constant 0 : index
    %502 = vector.load %arg5[%c864, %c0_302] : memref<1024x2xf32, #tpu.memory_space<vmem>>, vector<32x2xf32>
    %c0_303 = arith.constant 0 : index
    %c0_304 = arith.constant 0 : index
    %503 = vector.load %arg4[%c0_303, %c0_304] : memref<128x2xbf16, #tpu.memory_space<vmem>>, vector<128x2xbf16>
    %cst_305 = arith.constant dense<0.000000e+00> : vector<32x2xf32>
    %504 = tpu.matmul %501, %503, %cst_305 {dimension_numbers = #tpu.dot_dimension_numbers<[1], [0], [0], [1], [0, 0, 1, 1], [], []>} : vector<32x128xbf16>, vector<128x2xbf16>, vector<32x2xf32> -> vector<32x2xf32>
    %505 = arith.addf %502, %504 : vector<32x2xf32>
    %c864_306 = arith.constant 864 : index
    %c0_307 = arith.constant 0 : index
    %506 = vector.load %arg5[%c864_306, %c0_307] : memref<1024x2xf32, #tpu.memory_space<vmem>>, vector<32x2xf32>
    tpu.vector_store %arg5[%c864_306, %c0_307], %505 {strides = array<i32>} : memref<1024x2xf32, #tpu.memory_space<vmem>>, vector<32x2xf32>,
    %c32_i32_308 = arith.constant 32 : i32
    %507 = arith.muli %arg0, %c32_i32_308 : i32
    %c28_i32 = arith.constant 28 : i32
    %508 = arith.addi %507, %c28_i32 : i32
    %509 = arith.index_cast %508 : i32 to index
    %510 = memref.load %arg2[%509] : memref<32xf32, #tpu.memory_space<smem>>
    %c0_309 = arith.constant 0 : index
    %c0_310 = arith.constant 0 : index
    %511 = vector.load %arg3[%c0_309, %c0_310] : memref<32x128xf32, #tpu.memory_space<vmem>>, vector<32x128xf32>
    %512 = vector.broadcast %510 : f32 to vector<32x128xf32>
    %513 = arith.subf %512, %511 : vector<32x128xf32>
    %514 = math.tanh %513 : vector<32x128xf32>
    %cst_311 = arith.constant 5.000000e-01 : f32
    %515 = vector.broadcast %cst_311 : f32 to vector<32x128xf32>
    %516 = arith.mulf %515, %514 : vector<32x128xf32>
    %cst_312 = arith.constant 5.000000e-01 : f32
    %517 = vector.broadcast %cst_312 : f32 to vector<32x128xf32>
    %518 = arith.addf %516, %517 : vector<32x128xf32>
    %519 = arith.truncf %518 : vector<32x128xf32> to vector<32x128xbf16>
    %c896 = arith.constant 896 : index
    %c0_313 = arith.constant 0 : index
    %520 = vector.load %arg5[%c896, %c0_313] : memref<1024x2xf32, #tpu.memory_space<vmem>>, vector<32x2xf32>
    %c0_314 = arith.constant 0 : index
    %c0_315 = arith.constant 0 : index
    %521 = vector.load %arg4[%c0_314, %c0_315] : memref<128x2xbf16, #tpu.memory_space<vmem>>, vector<128x2xbf16>
    %cst_316 = arith.constant dense<0.000000e+00> : vector<32x2xf32>
    %522 = tpu.matmul %519, %521, %cst_316 {dimension_numbers = #tpu.dot_dimension_numbers<[1], [0], [0], [1], [0, 0, 1, 1], [], []>} : vector<32x128xbf16>, vector<128x2xbf16>, vector<32x2xf32> -> vector<32x2xf32>
    %523 = arith.addf %520, %522 : vector<32x2xf32>
    %c896_317 = arith.constant 896 : index
    %c0_318 = arith.constant 0 : index
    %524 = vector.load %arg5[%c896_317, %c0_318] : memref<1024x2xf32, #tpu.memory_space<vmem>>, vector<32x2xf32>
    tpu.vector_store %arg5[%c896_317, %c0_318], %523 {strides = array<i32>} : memref<1024x2xf32, #tpu.memory_space<vmem>>, vector<32x2xf32>,
    %c32_i32_319 = arith.constant 32 : i32
    %525 = arith.muli %arg0, %c32_i32_319 : i32
    %c29_i32 = arith.constant 29 : i32
    %526 = arith.addi %525, %c29_i32 : i32
    %527 = arith.index_cast %526 : i32 to index
    %528 = memref.load %arg2[%527] : memref<32xf32, #tpu.memory_space<smem>>
    %c0_320 = arith.constant 0 : index
    %c0_321 = arith.constant 0 : index
    %529 = vector.load %arg3[%c0_320, %c0_321] : memref<32x128xf32, #tpu.memory_space<vmem>>, vector<32x128xf32>
    %530 = vector.broadcast %528 : f32 to vector<32x128xf32>
    %531 = arith.subf %530, %529 : vector<32x128xf32>
    %532 = math.tanh %531 : vector<32x128xf32>
    %cst_322 = arith.constant 5.000000e-01 : f32
    %533 = vector.broadcast %cst_322 : f32 to vector<32x128xf32>
    %534 = arith.mulf %533, %532 : vector<32x128xf32>
    %cst_323 = arith.constant 5.000000e-01 : f32
    %535 = vector.broadcast %cst_323 : f32 to vector<32x128xf32>
    %536 = arith.addf %534, %535 : vector<32x128xf32>
    %537 = arith.truncf %536 : vector<32x128xf32> to vector<32x128xbf16>
    %c928 = arith.constant 928 : index
    %c0_324 = arith.constant 0 : index
    %538 = vector.load %arg5[%c928, %c0_324] : memref<1024x2xf32, #tpu.memory_space<vmem>>, vector<32x2xf32>
    %c0_325 = arith.constant 0 : index
    %c0_326 = arith.constant 0 : index
    %539 = vector.load %arg4[%c0_325, %c0_326] : memref<128x2xbf16, #tpu.memory_space<vmem>>, vector<128x2xbf16>
    %cst_327 = arith.constant dense<0.000000e+00> : vector<32x2xf32>
    %540 = tpu.matmul %537, %539, %cst_327 {dimension_numbers = #tpu.dot_dimension_numbers<[1], [0], [0], [1], [0, 0, 1, 1], [], []>} : vector<32x128xbf16>, vector<128x2xbf16>, vector<32x2xf32> -> vector<32x2xf32>
    %541 = arith.addf %538, %540 : vector<32x2xf32>
    %c928_328 = arith.constant 928 : index
    %c0_329 = arith.constant 0 : index
    %542 = vector.load %arg5[%c928_328, %c0_329] : memref<1024x2xf32, #tpu.memory_space<vmem>>, vector<32x2xf32>
    tpu.vector_store %arg5[%c928_328, %c0_329], %541 {strides = array<i32>} : memref<1024x2xf32, #tpu.memory_space<vmem>>, vector<32x2xf32>,
    %c32_i32_330 = arith.constant 32 : i32
    %543 = arith.muli %arg0, %c32_i32_330 : i32
    %c30_i32 = arith.constant 30 : i32
    %544 = arith.addi %543, %c30_i32 : i32
    %545 = arith.index_cast %544 : i32 to index
    %546 = memref.load %arg2[%545] : memref<32xf32, #tpu.memory_space<smem>>
    %c0_331 = arith.constant 0 : index
    %c0_332 = arith.constant 0 : index
    %547 = vector.load %arg3[%c0_331, %c0_332] : memref<32x128xf32, #tpu.memory_space<vmem>>, vector<32x128xf32>
    %548 = vector.broadcast %546 : f32 to vector<32x128xf32>
    %549 = arith.subf %548, %547 : vector<32x128xf32>
    %550 = math.tanh %549 : vector<32x128xf32>
    %cst_333 = arith.constant 5.000000e-01 : f32
    %551 = vector.broadcast %cst_333 : f32 to vector<32x128xf32>
    %552 = arith.mulf %551, %550 : vector<32x128xf32>
    %cst_334 = arith.constant 5.000000e-01 : f32
    %553 = vector.broadcast %cst_334 : f32 to vector<32x128xf32>
    %554 = arith.addf %552, %553 : vector<32x128xf32>
    %555 = arith.truncf %554 : vector<32x128xf32> to vector<32x128xbf16>
    %c960 = arith.constant 960 : index
    %c0_335 = arith.constant 0 : index
    %556 = vector.load %arg5[%c960, %c0_335] : memref<1024x2xf32, #tpu.memory_space<vmem>>, vector<32x2xf32>
    %c0_336 = arith.constant 0 : index
    %c0_337 = arith.constant 0 : index
    %557 = vector.load %arg4[%c0_336, %c0_337] : memref<128x2xbf16, #tpu.memory_space<vmem>>, vector<128x2xbf16>
    %cst_338 = arith.constant dense<0.000000e+00> : vector<32x2xf32>
    %558 = tpu.matmul %555, %557, %cst_338 {dimension_numbers = #tpu.dot_dimension_numbers<[1], [0], [0], [1], [0, 0, 1, 1], [], []>} : vector<32x128xbf16>, vector<128x2xbf16>, vector<32x2xf32> -> vector<32x2xf32>
    %559 = arith.addf %556, %558 : vector<32x2xf32>
    %c960_339 = arith.constant 960 : index
    %c0_340 = arith.constant 0 : index
    %560 = vector.load %arg5[%c960_339, %c0_340] : memref<1024x2xf32, #tpu.memory_space<vmem>>, vector<32x2xf32>
    tpu.vector_store %arg5[%c960_339, %c0_340], %559 {strides = array<i32>} : memref<1024x2xf32, #tpu.memory_space<vmem>>, vector<32x2xf32>,
    %c32_i32_341 = arith.constant 32 : i32
    %561 = arith.muli %arg0, %c32_i32_341 : i32
    %c31_i32 = arith.constant 31 : i32
    %562 = arith.addi %561, %c31_i32 : i32
    %563 = arith.index_cast %562 : i32 to index
    %564 = memref.load %arg2[%563] : memref<32xf32, #tpu.memory_space<smem>>
    %c0_342 = arith.constant 0 : index
    %c0_343 = arith.constant 0 : index
    %565 = vector.load %arg3[%c0_342, %c0_343] : memref<32x128xf32, #tpu.memory_space<vmem>>, vector<32x128xf32>
    %566 = vector.broadcast %564 : f32 to vector<32x128xf32>
    %567 = arith.subf %566, %565 : vector<32x128xf32>
    %568 = math.tanh %567 : vector<32x128xf32>
    %cst_344 = arith.constant 5.000000e-01 : f32
    %569 = vector.broadcast %cst_344 : f32 to vector<32x128xf32>
    %570 = arith.mulf %569, %568 : vector<32x128xf32>
    %cst_345 = arith.constant 5.000000e-01 : f32
    %571 = vector.broadcast %cst_345 : f32 to vector<32x128xf32>
    %572 = arith.addf %570, %571 : vector<32x128xf32>
    %573 = arith.truncf %572 : vector<32x128xf32> to vector<32x128xbf16>
    %c992 = arith.constant 992 : index
    %c0_346 = arith.constant 0 : index
    %574 = vector.load %arg5[%c992, %c0_346] : memref<1024x2xf32, #tpu.memory_space<vmem>>, vector<32x2xf32>
    %c0_347 = arith.constant 0 : index
    %c0_348 = arith.constant 0 : index
    %575 = vector.load %arg4[%c0_347, %c0_348] : memref<128x2xbf16, #tpu.memory_space<vmem>>, vector<128x2xbf16>
    %cst_349 = arith.constant dense<0.000000e+00> : vector<32x2xf32>
    %576 = tpu.matmul %573, %575, %cst_349 {dimension_numbers = #tpu.dot_dimension_numbers<[1], [0], [0], [1], [0, 0, 1, 1], [], []>} : vector<32x128xbf16>, vector<128x2xbf16>, vector<32x2xf32> -> vector<32x2xf32>
    %577 = arith.addf %574, %576 : vector<32x2xf32>
    %c992_350 = arith.constant 992 : index
    %c0_351 = arith.constant 0 : index
    %578 = vector.load %arg5[%c992_350, %c0_351] : memref<1024x2xf32, #tpu.memory_space<vmem>>, vector<32x2xf32>
    tpu.vector_store %arg5[%c992_350, %c0_351], %577 {strides = array<i32>} : memref<1024x2xf32, #tpu.memory_space<vmem>>, vector<32x2xf32>,
    return
  }
  func.func @transform_0(%arg0: i32, %arg1: i32) -> i32 {
    %c0_i32 = arith.constant 0 : i32
    %c0_i32_0 = arith.constant 0 : i32
    return %c0_i32 : i32
  }
  func.func @transform_1(%arg0: i32, %arg1: i32) -> (i32, i32) {
    %c0_i32 = arith.constant 0 : i32
    %c0_i32_0 = arith.constant 0 : i32
    return %c0_i32, %arg1 : i32, i32
  }
  func.func @transform_2(%arg0: i32, %arg1: i32) -> (i32, i32) {
    %c0_i32 = arith.constant 0 : i32
    %c0_i32_0 = arith.constant 0 : i32
    return %arg1, %c0_i32 : i32, i32
  }
  func.func @transform_3(%arg0: i32, %arg1: i32) -> (i32, i32) {
    %c0_i32 = arith.constant 0 : i32
    %c0_i32_0 = arith.constant 0 : i32
    return %arg0, %c0_i32 : i32, i32
  }
}

</mosaic_0001>

<bundles_post_ra>
// kernel: _ect_points_pallas.1
= control target key start
LH: loop header
LB: loop body
LE: loop exit
PB: predicated region body
PF: predicated region fallthrough
CT: control target
= control target key end

     0   :  { %8 = vsyncpa [#allocation3], 0  ;;  %s9601_s0 = inlined_call_operand.vmem [shape: f32[32], index: 0, kind: input, shape index: {}]   ;;  %s9602_s1 = inlined_call_operand.vmem [shape: f32[32,128], index: 1, kind: input, shape index: {}]   ;;  %s9603_s2 = inlined_call_operand.vmem [shape: bf16[128,2], index: 2, kind: input, shape index: {}]   ;;  %s9604_s3 = inlined_call_operand.vmem [shape: f32[1024,2], index: 3, kind: output, shape index: {}]  }
   0x1   :  { %s15_s14 = sshll.u32 %s9601_s0, 4  ;;  %s16_s14 = int_to_ptr.vmem [resolvable:$true] %s15_s14 }
   0x2   :  { %s6731_s15 = scalar_lea.vmem %s16_s14, 16  ;;  %p6736_p1 = scmp.lt.s32.totalorder %s16_s14, %s16_s14 }
   0x3   :  { %p6732_p0 = scmp.ne.s32.totalorder %s16_s14, %s6731_s15  ;;  %p6737_p2 = scmp.lt.s32.totalorder %s6731_s15, %s6731_s15 }
   0x5   :  { %p6738_p3 = por %p6737_p2, %p6736_p1 }
   0x7   :  { %p6739_p4 = pnand %p6738_p3, %p6732_p0 }
   0x9   :  { %6742 = shalt.err (!%p6739_p4)
}
   0xa   :  { %s6745_s16 = smov [#allocation2]  }
   0xb   :  { %18 = dma.vmem_to_smem %s16_s14, 16, %s6745_s16, [#allocation3]  }
   0xc   :  { %6743 = dma.done.wait [#allocation3], 16  }
   0xd   :  { %6744 = vsyncadd [#allocation3], 4294967280 }
   0xe   :  { %26 = sfence }
   0xf   :  { %v6216_v0 = vld [vmem:[%s9603_s2] sm:$0xff]   ;;  %v6218_v2 = vld [vmem:[%s9603_s2 + $0x8] sm:$0xff]   ;;  %v6220_v4 = vld [vmem:[%s9603_s2 + $0x10] sm:$0xff]   ;;  %s162_s11 = sld [smem:[#allocation2]]  ;;  %s4975_s12 = sld [smem:[#allocation2 + $0x1]]  ;;  %vm32_vm0 = vcmask 15360  }
  0x10   :  { %v6217_v1 = vld [vmem:[%s9603_s2] sm:$0xff]   ;;  %5574 = vmatprep.subr.bf16.mxu0 %v6216_v0  ;;  %v6219_v3 = vld [vmem:[%s9603_s2 + $0x8] sm:$0xff]   ;;  %v6221_v5 = vld [vmem:[%s9603_s2 + $0x10] sm:$0xff]   ;;  %s4984_s17 = sld [smem:[#allocation2 + $0x2]]  ;;  %s4993_s25 = sld [smem:[#allocation2 + $0x3]] }
  0x11   :  { %5594 = vmatprep.subr.bf16.mxu1 %v6217_v1  ;;  %5575 = vmatpush3.bf16.msra.mxu0 %v6216_v0  ;;  %v6222_v6 = vld [vmem:[%s9603_s2 + $0x18] sm:$0xff]   ;;  %v6224_v8 = vld [vmem:[%s9603_s2 + $0x20] sm:$0xff]   ;;  %v6226_v10 = vld [vmem:[%s9603_s2 + $0x28] sm:$0xff]   ;;  %s5002_s0 = sld [smem:[#allocation2 + $0x4]]  ;;  %s5011_s21 = sld [smem:[#allocation2 + $0x5]] }
  0x12   :  { %5595 = vmatpush3.bf16.msra.mxu1 %v6217_v1  ;;  %5576 = vmatprep.subr.bf16.mxu0 %v6218_v2  ;;  %v6223_v7 = vld [vmem:[%s9603_s2 + $0x18] sm:$0xff]   ;;  %v6225_v9 = vld [vmem:[%s9603_s2 + $0x20] sm:$0xff]   ;;  %v6227_v11 = vld [vmem:[%s9603_s2 + $0x28] sm:$0xff]   ;;  %s5020_s26 = sld [smem:[#allocation2 + $0x6]]  ;;  %s5038_s13 = sld [smem:[#allocation2 + $0x8]] }
  0x13   :  { %5596 = vmatprep.subr.bf16.mxu1 %v6219_v3  ;;  %v6228_v12 = vld [vmem:[%s9603_s2 + $0x30] sm:$0xff]   ;;  %v6812_v13 = vld [vmem:[%s9602_s1] sm:$0xff]  ;;  %v6817_v14 = vld [vmem:[%s9602_s1 + $0x8] sm:$0xff]  ;;  %s5047_s20 = sld [smem:[#allocation2 + $0x9]]  ;;  %s5074_s15 = sld [smem:[#allocation2 + $0xc]] }
  0x14   :  { %v6229_v15 = vld [vmem:[%s9603_s2 + $0x30] sm:$0xff]   ;;  %v6833_v22 = vld [vmem:[%s9602_s1 + $0x18] sm:$0xff]  ;;  %v6851_v31 = vld [vmem:[%s9603_s2] sm:$0xff]   ;;  %s5083_s16 = sld [smem:[#allocation2 + $0xd]]  ;;  %s7140_s7 = sld [smem:[#allocation2 + $0xa]] }
  0x15   :  { %5577 = vmatpush3.bf16.msra.mxu0 %v6218_v2  ;;  %v167_v16 = vstv %s162_s11  ;;  %v318_v17 = vstv %s4975_s12  ;;  %v6825_v18 = vld [vmem:[%s9602_s1 + $0x10] sm:$0xff]  ;;  %v6230_v23 = vld [vmem:[%s9603_s2 + $0x38] sm:$0xff]   ;;  %s5029_s12 = sld [smem:[#allocation2 + $0x7]]  ;;  %s5110_s10 = sld [smem:[#allocation2 + $0x10]] }
  0x16   :  { %5597 = vmatpush3.bf16.msra.mxu1 %v6219_v3  ;;  %5578 = vmatprep.subr.bf16.mxu0 %v6220_v4  ;;  %v168_v19 = vsub.f32 %v167_v16, %v6812_v13  ;;  %v169_v20 = vsub.f32 %v167_v16, %v6817_v14  ;;  %v319_v21 = vsub.f32 %v318_v17, %v6812_v13  ;;  %v6231_v25 = vld [vmem:[%s9603_s2 + $0x38] sm:$0xff]   ;;  %v6844_v28 = vstv %s4984_s17  ;;  %v6858_v33 = vld [vmem:[%s9603_s2] sm:$0xff]   ;;  %v6234_v1 = vld [vmem:[%s9603_s2 + $0x8] sm:$0xff]   ;;  %s5101_s29 = sld [smem:[#allocation2 + $0xf]]  ;;  %s8048_s17 = sld [smem:[#allocation2 + $0x11]] }
  0x17   :  { %5598 = vmatprep.subr.bf16.mxu1 %v6221_v5  ;;  %v320_v24 = vsub.f32 %v318_v17, %v6817_v14  ;;  %v170_v26 = vsub.f32 %v167_v16, %v6825_v18  ;;  %v171_v27 = vsub.f32 %v167_v16, %v6833_v22  ;;  %v321_v29 = vsub.f32 %v318_v17, %v6825_v18  ;;  %s5128_s18 = sld [smem:[#allocation2 + $0x12]]  ;;  %s5137_s22 = sld [smem:[#allocation2 + $0x13]] }
  0x18   :  { %6472 = vtanh.f32 %v168_v19  ;;  %v322_v30 = vsub.f32 %v318_v17, %v6833_v22  ;;  %v6853_v32 = vstv %s4993_s25  ;;  %v469_v34 = vsub.f32 %v6844_v28, %v6812_v13  ;;  %s5092_s25 = sld [smem:[#allocation2 + $0xe]]  ;;  %s5155_s6 = sld [smem:[#allocation2 + $0x15]] }
  0x19   :  { %5579 = vmatpush3.bf16.msra.mxu0 %v6220_v4  ;;  %6474 = vtanh.f32 %v169_v20  ;;  %v470_v35 = vsub.f32 %v6844_v28, %v6817_v14  ;;  %v619_v36 = vsub.f32 %v6853_v32, %v6812_v13  ;;  %v620_v37 = vsub.f32 %v6853_v32, %v6817_v14  ;;  %v6236_v20 = vld [vmem:[%s9603_s2 + $0x10] sm:$0xff]   ;;  %s8432_s19 = sld [smem:[#allocation2 + $0x17]]  ;;  %s8559_s27 = sld [smem:[#allocation2 + $0x18]] }
  0x1a   :  { %5599 = vmatpush3.bf16.msra.mxu1 %v6221_v5  ;;  %5580 = vmatprep.subr.bf16.mxu0 %v6222_v6  ;;  %6476 = vtanh.f32 %v319_v21  ;;  %v471_v16 = vsub.f32 %v6844_v28, %v6825_v18  ;;  %v472_v19 = vsub.f32 %v6844_v28, %v6833_v22  ;;  %v6238_v28 = vld [vmem:[%s9603_s2 + $0x18] sm:$0xff]   ;;  %s5191_s9 = sld [smem:[#allocation2 + $0x19]]  ;;  %s8696_s14 = sld [smem:[#allocation2 + $0x1a]] }
  0x1b   :  { %5600 = vmatprep.subr.bf16.mxu1 %v6223_v7  ;;  %6478 = vtanh.f32 %v320_v24  ;;  %v621_v24 = vsub.f32 %v6853_v32, %v6825_v18  ;;  %s8823_s23 = sld [smem:[#allocation2 + $0x1c]]  ;;  %s5227_s4 = sld [smem:[#allocation2 + $0x1d]] }
  0x1c   :  { %6480 = vtanh.f32 %v170_v26  ;;  %v6237_v26 = vld [vmem:[%s9603_s2 + $0x10] sm:$0xff]   ;;  %s8950_s5 = sld [smem:[#allocation2 + $0x1e]] }
  0x1d   :  { %5581 = vmatpush3.bf16.msra.mxu0 %v6222_v6  ;;  %6482 = vtanh.f32 %v171_v27 }
  0x1e   :  { %5601 = vmatpush3.bf16.msra.mxu1 %v6223_v7  ;;  %5582 = vmatprep.subr.bf16.mxu0 %v6224_v8  ;;  %6484 = vtanh.f32 %v321_v29  ;;  %v6239_v29 = vld [vmem:[%s9603_s2 + $0x18] sm:$0xff]  }
  0x1f   :  { %5602 = vmatprep.subr.bf16.mxu1 %v6225_v9  ;;  %6486 = vtanh.f32 %v322_v30  ;;  %v6240_v30 = vld [vmem:[%s9603_s2 + $0x20] sm:$0xff]  }
  0x20   :  { %6488 = vtanh.f32 %v469_v34 }
  0x21   :  { %5583 = vmatpush3.bf16.msra.mxu0 %v6224_v8  ;;  %6490 = vtanh.f32 %v470_v35  ;;  %v6235_v8 = vld [vmem:[%s9603_s2 + $0x8] sm:$0xff]  }
  0x22   :  { %5603 = vmatpush3.bf16.msra.mxu1 %v6225_v9  ;;  %5584 = vmatprep.subr.bf16.mxu0 %v6226_v10  ;;  %v6473_v38 = vpop.eup %6472  ;;  %6492 = vtanh.f32 %v619_v36 }
  0x23   :  { %5604 = vmatprep.subr.bf16.mxu1 %v6227_v11  ;;  %v6475_v39 = vpop.eup %6474  ;;  %v176_v40 = vmul.f32 0.5, %v6473_v38  ;;  %6494 = vtanh.f32 %v620_v37  ;;  %v6242_v38 = vld [vmem:[%s9603_s2 + $0x28] sm:$0xff]  }
  0x24   :  { %v6477_v41 = vpop.eup %6476  ;;  %v177_v42 = vmul.f32 0.5, %v6475_v39  ;;  %6496 = vtanh.f32 %v471_v16  ;;  %v1218_v16 = vstv %s5029_s12 }
  0x25   :  { %5585 = vmatpush3.bf16.msra.mxu0 %v6226_v10  ;;  %v6479_v43 = vpop.eup %6478  ;;  %v180_v44 = vadd.f32 0.5, %v176_v40  ;;  %v327_v45 = vmul.f32 0.5, %v6477_v41  ;;  %6498 = vtanh.f32 %v472_v19 }
  0x26   :  { %5605 = vmatpush3.bf16.msra.mxu1 %v6227_v11  ;;  %5586 = vmatprep.subr.bf16.mxu0 %v6228_v12  ;;  %v6481_v46 = vpop.eup %6480  ;;  %v181_v47 = vadd.f32 0.5, %v177_v42  ;;  %v328_v48 = vmul.f32 0.5, %v6479_v43  ;;  %6500 = vtanh.f32 %v621_v24  ;;  %v6243_v43 = vld [vmem:[%s9603_s2 + $0x28] sm:$0xff]  }
  0x27   :  { %5606 = vmatprep.subr.bf16.mxu1 %v6229_v15  ;;  %v6483_v49 = vpop.eup %6482  ;;  %v331_v50 = vadd.f32 0.5, %v327_v45  ;;  %v178_v51 = vmul.f32 0.5, %v6481_v46 }
  0x28   :  { %v6485_v52 = vpop.eup %6484  ;;  %v184_v53 = vpack.c.bf16 %v181_v47, %v180_v44  ;;  %v332_v54 = vadd.f32 0.5, %v328_v48  ;;  %v179_v55 = vmul.f32 0.5, %v6483_v49  ;;  %v6244_v48 = vld [vmem:[%s9603_s2 + $0x30] sm:$0xff]  }
  0x29   :  { %5587 = vmatpush3.bf16.msra.mxu0 %v6228_v12  ;;  %v6487_v56 = vpop.eup %6486  ;;  %v182_v57 = vadd.f32 0.5, %v178_v51  ;;  %v329_v58 = vmul.f32 0.5, %v6485_v52  ;;  %v1068_v51 = vstv %s5020_s26  ;;  %v6245_v52 = vld [vmem:[%s9603_s2 + $0x30] sm:$0xff]  }
  0x2a   :  { %5607 = vmatpush3.bf16.msra.mxu1 %v6229_v15  ;;  %5588 = vmatprep.subr.bf16.mxu0 %v6230_v23  ;;  %v6489_v59 = vpop.eup %6488  ;;  %v335_v60 = vpack.c.bf16 %v332_v54, %v331_v50  ;;  %v183_v61 = vadd.f32 0.5, %v179_v55  ;;  %v330_v62 = vmul.f32 0.5, %v6487_v56  ;;  %v1070_v56 = vsub.f32 %v1068_v51, %v6817_v14 }
  0x2b   :  { %5608 = vmatprep.subr.bf16.mxu1 %v6231_v25  ;;  %5590 = vmatprep.mubr.bf16.mxu0 %v184_v53  ;;  %v6491_v63 = vpop.eup %6490  ;;  %v333_v0 = vadd.f32 0.5, %v329_v58  ;;  %v477_v2 = vmul.f32 0.5, %v6489_v59  ;;  %v1069_v53 = vsub.f32 %v1068_v51, %v6812_v13  ;;  %v1071_v58 = vsub.f32 %v1068_v51, %v6825_v18  ;;  %v6247_v59 = vld [vmem:[%s9603_s2 + $0x38] sm:$0xff]  }
  0x2c   :  { %v6493_v3 = vpop.eup %6492  ;;  %5610 = vmatprep.mubr.bf16.mxu1 %v335_v60  ;;  %v185_v4 = vpack.c.bf16 %v183_v61, %v182_v57  ;;  %v334_v5 = vadd.f32 0.5, %v330_v62  ;;  %v478_v6 = vmul.f32 0.5, %v6491_v63  ;;  %v6246_v57 = vld [vmem:[%s9603_s2 + $0x38] sm:$0xff]   ;;  %v1072_v62 = vsub.f32 %v1068_v51, %v6833_v22 }
  0x2d   :  { %5589 = vmatpush3.bf16.msra.mxu0 %v6230_v23  ;;  %v6495_v7 = vpop.eup %6494  ;;  %v481_v9 = vadd.f32 0.5, %v477_v2  ;;  %v627_v10 = vmul.f32 0.5, %v6493_v3  ;;  %v6248_v3 = vld [vmem:[%s9603_s2] sm:$0xff]  }
  0x2e   :  { %5609 = vmatpush3.bf16.msra.mxu1 %v6231_v25  ;;  %5614 = vmatprep.subr.bf16.mxu0 %v6851_v31  ;;  %v336_v11 = vpack.c.bf16 %v334_v5, %v333_v0  ;;  %v482_v12 = vadd.f32 0.5, %v478_v6  ;;  %v628_v15 = vmul.f32 0.5, %v6495_v7  ;;  %v622_v25 = vsub.f32 %v6853_v32, %v6833_v22  ;;  %v6497_v37 = vpop.eup %6496 }
  0x2f   :  { %5634 = vmatprep.subr.bf16.mxu1 %v6858_v33  ;;  %v631_v17 = vadd.f32 0.5, %v627_v10  ;;  %v768_v32 = vstv %s5002_s0  ;;  %v6499_v40 = vpop.eup %6498  ;;  %v479_v46 = vmul.f32 0.5, %v6497_v37  ;;  %v6249_v10 = vld [vmem:[%s9603_s2] sm:$0xff]   ;;  %s7785_s0 = sld [smem:[#allocation2 + $0xb]] }
  0x30   :  { %5591 = vmatmul.mubr.bf16.vlgmr.msra.gmra.mrb[0].mxu0 %v185_v4  ;;  %v485_v21 = vpack.c.bf16 %v482_v12, %v481_v9  ;;  %v632_v23 = vadd.f32 0.5, %v628_v15  ;;  %6502 = vtanh.f32 %v622_v25  ;;  %v769_v34 = vsub.f32 %v768_v32, %v6812_v13  ;;  %v6501_v42 = vpop.eup %6500 }
  0x31   :  { %5615 = vmatpush3.bf16.msra.mxu0 %v6851_v31  ;;  %5611 = vmatmul.mubr.bf16.vlgmr.msra.gmra.mrb[0].mxu1 %v336_v11  ;;  %v6241_v31 = vld [vmem:[%s9603_s2 + $0x20] sm:$0xff]   ;;  %v770_v35 = vsub.f32 %v768_v32, %v6817_v14  ;;  %v771_v41 = vsub.f32 %v768_v32, %v6825_v18  ;;  %v772_v44 = vsub.f32 %v768_v32, %v6833_v22  ;;  %v480_v49 = vmul.f32 0.5, %v6499_v40  ;;  %v6250_v11 = vld [vmem:[%s9603_s2 + $0x8] sm:$0xff]  }
  0x32   :  { %5616 = vmatprep.subr.bf16.mxu0 %v6234_v1  ;;  %5635 = vmatpush3.bf16.msra.mxu1 %v6858_v33  ;;  %v635_v27 = vpack.c.bf16 %v632_v23, %v631_v17  ;;  %v918_v33 = vstv %s5011_s21  ;;  %6504 = vtanh.f32 %v769_v34  ;;  %v629_v54 = vmul.f32 0.5, %v6501_v42 }
  0x33   :  { %5636 = vmatprep.subr.bf16.mxu1 %v6235_v8  ;;  %5630 = vmatprep.mubr.bf16.mxu0 %v485_v21  ;;  %v919_v36 = vsub.f32 %v918_v33, %v6812_v13  ;;  %v920_v39 = vsub.f32 %v918_v33, %v6817_v14  ;;  %6506 = vtanh.f32 %v770_v35  ;;  %v921_v47 = vsub.f32 %v918_v33, %v6825_v18 }
  0x34   :  { %5650 = vmatprep.mubr.bf16.mxu1 %v635_v27  ;;  %v922_v50 = vsub.f32 %v918_v33, %v6833_v22  ;;  %v483_v60 = vadd.f32 0.5, %v479_v46  ;;  %v484_v61 = vadd.f32 0.5, %v480_v49  ;;  %v633_v63 = vadd.f32 0.5, %v629_v54  ;;  %v6253_v46 = vld [vmem:[%s9603_s2 + $0x10] sm:$0xff]  }
  0x35   :  { %5617 = vmatpush3.bf16.msra.mxu0 %v6234_v1  ;;  %6508 = vtanh.f32 %v919_v36  ;;  %v1219_v21 = vsub.f32 %v1218_v16, %v6812_v13  ;;  %v1220_v23 = vsub.f32 %v1218_v16, %v6817_v14  ;;  %v1221_v27 = vsub.f32 %v1218_v16, %v6825_v18 }
  0x36   :  { %5618 = vmatprep.subr.bf16.mxu0 %v6236_v20  ;;  %5637 = vmatpush3.bf16.msra.mxu1 %v6235_v8  ;;  %6510 = vtanh.f32 %v920_v39  ;;  %v486_v6 = vpack.c.bf16 %v484_v61, %v483_v60  ;;  %v6256_v60 = vld [vmem:[%s9603_s2 + $0x20] sm:$0xff]  }
  0x37   :  { %5638 = vmatprep.subr.bf16.mxu1 %v6237_v26  ;;  %6512 = vtanh.f32 %v771_v41 }
  0x38   :  { %6514 = vtanh.f32 %v772_v44 }
  0x39   :  { %5619 = vmatpush3.bf16.msra.mxu0 %v6236_v20  ;;  %6516 = vtanh.f32 %v921_v47 }
  0x3a   :  { %5620 = vmatprep.subr.bf16.mxu0 %v6238_v28  ;;  %5639 = vmatpush3.bf16.msra.mxu1 %v6237_v26  ;;  %v6503_v45 = vpop.eup %6502  ;;  %6518 = vtanh.f32 %v922_v50 }
  0x3b   :  { %5640 = vmatprep.subr.bf16.mxu1 %v6239_v29  ;;  %v630_v55 = vmul.f32 0.5, %v6503_v45  ;;  %6520 = vtanh.f32 %v1069_v53 }
  0x3c   :  { %6522 = vtanh.f32 %v1070_v56  ;;  %v6505_v1 = vpop.eup %6504  ;;  %v6255_v56 = vld [vmem:[%s9603_s2 + $0x18] sm:$0xff]  }
  0x3d   :  { %5621 = vmatpush3.bf16.msra.mxu0 %v6238_v28  ;;  %v634_v0 = vadd.f32 0.5, %v630_v55  ;;  %6524 = vtanh.f32 %v1071_v58  ;;  %v6507_v2 = vpop.eup %6506  ;;  %v777_v4 = vmul.f32 0.5, %v6505_v1  ;;  %v1222_v28 = vsub.f32 %v1218_v16, %v6833_v22  ;;  %v6252_v22 = vld [vmem:[%s9603_s2 + $0x10] sm:$0xff]   ;;  %v6262_v16 = vld [vmem:[%s9603_s2 + $0x38] sm:$0xff]  }
  0x3e   :  { %5622 = vmatprep.subr.bf16.mxu0 %v6240_v30  ;;  %5641 = vmatpush3.bf16.msra.mxu1 %v6239_v29  ;;  %6526 = vtanh.f32 %v1072_v62  ;;  %v778_v7 = vmul.f32 0.5, %v6507_v2 }
  0x3f   :  { %5642 = vmatprep.subr.bf16.mxu1 %v6241_v31  ;;  %v6509_v5 = vpop.eup %6508  ;;  %v636_v9 = vpack.c.bf16 %v634_v0, %v633_v63  ;;  %v781_v12 = vadd.f32 0.5, %v777_v4  ;;  %6528 = vtanh.f32 %v1219_v21  ;;  %v6257_v63 = vld [vmem:[%s9603_s2 + $0x20] sm:$0xff]  }
  0x40   :  { %v6511_v8 = vpop.eup %6510  ;;  %v927_v15 = vmul.f32 0.5, %v6509_v5  ;;  %v782_v19 = vadd.f32 0.5, %v778_v7  ;;  %6530 = vtanh.f32 %v1220_v23  ;;  %v7025_v21 = vld [vmem:[%s9602_s1] sm:$0xff]  ;;  %v7027_v23 = vstv %s5038_s13 }
  0x41   :  { %5623 = vmatpush3.bf16.msra.mxu0 %v6240_v30  ;;  %v6513_v17 = vpop.eup %6512  ;;  %v928_v20 = vmul.f32 0.5, %v6511_v8  ;;  %v6251_v30 = vld [vmem:[%s9603_s2 + $0x8] sm:$0xff]   ;;  %6532 = vtanh.f32 %v1221_v27  ;;  %v1369_v27 = vsub.f32 %v7027_v23, %v7025_v21 }
  0x42   :  { %5624 = vmatprep.subr.bf16.mxu0 %v6242_v38  ;;  %5643 = vmatpush3.bf16.msra.mxu1 %v6241_v31  ;;  %v6515_v24 = vpop.eup %6514  ;;  %v931_v25 = vadd.f32 0.5, %v927_v15  ;;  %v779_v26 = vmul.f32 0.5, %v6513_v17  ;;  %v785_v31 = vpack.c.bf16 %v782_v19, %v781_v12  ;;  %6534 = vtanh.f32 %v1222_v28  ;;  %v6259_v8 = vld [vmem:[%s9603_s2 + $0x28] sm:$0xff]   ;;  %v6260_v12 = vld [vmem:[%s9603_s2 + $0x30] sm:$0xff]   ;;  %v6263_v17 = vld [vmem:[%s9603_s2 + $0x38] sm:$0xff]  }
  0x43   :  { %5644 = vmatprep.subr.bf16.mxu1 %v6243_v43  ;;  %v6517_v29 = vpop.eup %6516  ;;  %v932_v32 = vadd.f32 0.5, %v928_v20  ;;  %v780_v33 = vmul.f32 0.5, %v6515_v24  ;;  %v6261_v15 = vld [vmem:[%s9603_s2 + $0x30] sm:$0xff]   ;;  %v6264_v19 = vld [vmem:[%s9603_s2] sm:$0xff]   ;;  %v6266_v24 = vld [vmem:[%s9603_s2 + $0x8] sm:$0xff]   ;;  %6536 = vtanh.f32 %v1369_v27 }
  0x44   :  { %v6519_v13 = vpop.eup %6518  ;;  %v6950_v14 = vadd.f32 0.5, %v779_v26  ;;  %v929_v34 = vmul.f32 0.5, %v6517_v29  ;;  %v6265_v20 = vld [vmem:[%s9603_s2] sm:$0xff]   ;;  %v6267_v26 = vld [vmem:[%s9603_s2 + $0x8] sm:$0xff]   ;;  %v6268_v28 = vld [vmem:[%s9603_s2 + $0x10] sm:$0xff]  }
  0x45   :  { %5625 = vmatpush3.bf16.msra.mxu0 %v6242_v38  ;;  %v6521_v18 = vpop.eup %6520  ;;  %v935_v35 = vpack.c.bf16 %v932_v32, %v931_v25  ;;  %v6955_v36 = vadd.f32 0.5, %v780_v33  ;;  %v930_v37 = vmul.f32 0.5, %v6519_v13  ;;  %v7035_v25 = vld [vmem:[%s9602_s1 + $0x8] sm:$0xff]  ;;  %v6270_v32 = vld [vmem:[%s9603_s2 + $0x18] sm:$0xff]  }
  0x46   :  { %5626 = vmatprep.subr.bf16.mxu0 %v6244_v48  ;;  %5645 = vmatpush3.bf16.msra.mxu1 %v6243_v43  ;;  %v6523_v38 = vpop.eup %6522  ;;  %v6957_v39 = vadd.f32 0.5, %v929_v34  ;;  %v1077_v40 = vmul.f32 0.5, %v6521_v18  ;;  %v1370_v29 = vsub.f32 %v7027_v23, %v7035_v25  ;;  %v6272_v34 = vld [vmem:[%s9603_s2 + $0x20] sm:$0xff]  }
  0x47   :  { %5646 = vmatprep.subr.bf16.mxu1 %v6245_v52  ;;  %v6525_v41 = vpop.eup %6524  ;;  %v786_v42 = vpack.c.bf16 %v6955_v36, %v6950_v14  ;;  %v6961_v43 = vadd.f32 0.5, %v930_v37  ;;  %v1078_v44 = vmul.f32 0.5, %v6523_v38  ;;  %v6271_v14 = vld [vmem:[%s9603_s2 + $0x18] sm:$0xff]   ;;  %v6273_v18 = vld [vmem:[%s9603_s2 + $0x20] sm:$0xff]   ;;  %v6275_v37 = vld [vmem:[%s9603_s2 + $0x28] sm:$0xff]  }
  0x48   :  { %v6527_v45 = vpop.eup %6526  ;;  %v6966_v47 = vadd.f32 0.5, %v1077_v40  ;;  %6538 = vtanh.f32 %v1370_v29  ;;  %v6276_v40 = vld [vmem:[%s9603_s2 + $0x30] sm:$0xff]  }
  0x49   :  { %5627 = vmatpush3.bf16.msra.mxu0 %v6244_v48  ;;  %v1079_v48 = vmul.f32 0.5, %v6525_v41  ;;  %v936_v49 = vpack.c.bf16 %v6961_v43, %v6957_v39  ;;  %v6970_v50 = vadd.f32 0.5, %v1078_v44  ;;  %v1080_v51 = vmul.f32 0.5, %v6527_v45  ;;  %v7092_v44 = vld [vmem:[%s9603_s2 + $0x30] sm:$0xff]  }
  0x4a   :  { %5628 = vmatprep.subr.bf16.mxu0 %v6246_v57  ;;  %5647 = vmatpush3.bf16.msra.mxu1 %v6245_v52  ;;  %v6254_v52 = vld [vmem:[%s9603_s2 + $0x18] sm:$0xff]   ;;  %v7080_v39 = vstv %s5074_s15  ;;  %s5245_s15 = sld [smem:[#allocation2 + $0x1f]] }
  0x4b   :  { %5648 = vmatprep.subr.bf16.mxu1 %v6247_v59  ;;  %v6975_v53 = vadd.f32 0.5, %v1079_v48  ;;  %v1085_v54 = vpack.c.bf16 %v6970_v50, %v6966_v47  ;;  %v6979_v55 = vadd.f32 0.5, %v1080_v51  ;;  %v1969_v41 = vsub.f32 %v7080_v39, %v7025_v21  ;;  %v7099_v48 = vld [vmem:[%s9603_s2 + $0x38] sm:$0xff]   ;;  %v7108_v51 = vld [vmem:[%s9602_s1 + $0x10] sm:$0xff] }
  0x4d   :  { %5629 = vmatpush3.bf16.msra.mxu0 %v6246_v57  ;;  %v6529_v57 = vpop.eup %6528  ;;  %v1086_v58 = vpack.c.bf16 %v6979_v55, %v6975_v53 }
  0x4e   :  { %5654 = vmatprep.subr.bf16.mxu0 %v6248_v3  ;;  %5649 = vmatpush3.bf16.msra.mxu1 %v6247_v59  ;;  %v6531_v59 = vpop.eup %6530  ;;  %v1227_v61 = vmul.f32 0.5, %v6529_v57 }
  0x4f   :  { %5674 = vmatprep.subr.bf16.mxu1 %v6249_v10  ;;  %v6533_v62 = vpop.eup %6532  ;;  %v1228_v0 = vmul.f32 0.5, %v6531_v59  ;;  %v1971_v59 = vsub.f32 %v7080_v39, %v7108_v51 }
  0x50   :  { %5631 = vmatmul.mubr.bf16.vlgmr.msra.gmra.mrb[4].mxu0 %v486_v6  ;;  %v6535_v1 = vpop.eup %6534  ;;  %v1231_v2 = vadd.f32 0.5, %v1227_v61  ;;  %v6258_v6 = vld [vmem:[%s9603_s2 + $0x28] sm:$0xff]  }
  0x51   :  { %5655 = vmatpush3.bf16.msra.mxu0 %v6248_v3  ;;  %5670 = vmatprep.mubr.bf16.mxu0 %v785_v31  ;;  %v1229_v3 = vmul.f32 0.5, %v6533_v62  ;;  %v1232_v4 = vadd.f32 0.5, %v1228_v0  ;;  %v1230_v5 = vmul.f32 0.5, %v6535_v1  ;;  %v6269_v31 = vld [vmem:[%s9603_s2 + $0x10] sm:$0xff]   ;;  %v7138_v0 = vld [vmem:[%s9603_s2] sm:$0xff]  }
  0x52   :  { %5651 = vmatmul.mubr.bf16.vlgmr.msra.gmra.mrb[4].mxu1 %v636_v9  ;;  %5656 = vmatprep.subr.bf16.mxu0 %v6250_v11 }
  0x53   :  { %5675 = vmatpush3.bf16.msra.mxu1 %v6249_v10  ;;  %5690 = vmatprep.mubr.bf16.mxu1 %v935_v35  ;;  %v6995_v7 = vadd.f32 0.5, %v1229_v3  ;;  %v1235_v9 = vpack.c.bf16 %v1232_v4, %v1231_v2  ;;  %v7000_v10 = vadd.f32 0.5, %v1230_v5  ;;  %v6274_v35 = vld [vmem:[%s9603_s2 + $0x28] sm:$0xff]   ;;  %v6746_v2 = vmov 0.0   ;;  %v6281_v5 = vld [vmem:[%s9603_s2] sm:$0xff]  }
  0x54   :  { %5676 = vmatprep.subr.bf16.mxu1 %v6251_v30  ;;  %35 = vst.msk [vmem:[%s9604_s3 + $0x10] sm:$0xff] %vm32_vm0, %v6746_v2  ;;  %33 = vst.msk [vmem:[%s9604_s3] sm:$0xff] %vm32_vm0, %v6746_v2 }
  0x55   :  { %5657 = vmatpush3.bf16.msra.mxu0 %v6250_v11  ;;  %v1236_v11 = vpack.c.bf16 %v7000_v10, %v6995_v7  ;;  %34 = vst.msk [vmem:[%s9604_s3 + $0x8] sm:$0xff] %vm32_vm0, %v6746_v2  ;;  %36 = vst.msk [vmem:[%s9604_s3 + $0x18] sm:$0xff] %vm32_vm0, %v6746_v2 }
  0x56   :  { %5658 = vmatprep.subr.bf16.mxu0 %v6252_v22  ;;  %37 = vst.msk [vmem:[%s9604_s3 + $0x20] sm:$0xff] %vm32_vm0, %v6746_v2  ;;  %38 = vst.msk [vmem:[%s9604_s3 + $0x28] sm:$0xff] %vm32_vm0, %v6746_v2 }
  0x57   :  { %5677 = vmatpush3.bf16.msra.mxu1 %v6251_v30  ;;  %v7053_v30 = vstv %s5047_s20  ;;  %39 = vst.msk [vmem:[%s9604_s3 + $0x30] sm:$0xff] %vm32_vm0, %v6746_v2  ;;  %40 = vst.msk [vmem:[%s9604_s3 + $0x38] sm:$0xff] %vm32_vm0, %v6746_v2 }
  0x58   :  { %5678 = vmatprep.subr.bf16.mxu1 %v6253_v46  ;;  %v1519_v33 = vsub.f32 %v7053_v30, %v7025_v21  ;;  %v1520_v13 = vsub.f32 %v7053_v30, %v7035_v25  ;;  %41 = vst.msk [vmem:[%s9604_s3 + $0x40] sm:$0xff] %vm32_vm0, %v6746_v2  ;;  %42 = vst.msk [vmem:[%s9604_s3 + $0x48] sm:$0xff] %vm32_vm0, %v6746_v2 }
  0x59   :  { %5659 = vmatpush3.bf16.msra.mxu0 %v6252_v22  ;;  %v6537_v22 = vpop.eup %6536  ;;  %43 = vst.msk [vmem:[%s9604_s3 + $0x50] sm:$0xff] %vm32_vm0, %v6746_v2  ;;  %44 = vst.msk [vmem:[%s9604_s3 + $0x58] sm:$0xff] %vm32_vm0, %v6746_v2 }
  0x5a   :  { %5660 = vmatprep.subr.bf16.mxu0 %v6254_v52  ;;  %6540 = vtanh.f32 %v1519_v33  ;;  %v6539_v36 = vpop.eup %6538  ;;  %v1377_v38 = vmul.f32 0.5, %v6537_v22  ;;  %45 = vst.msk [vmem:[%s9604_s3 + $0x60] sm:$0xff] %vm32_vm0, %v6746_v2  ;;  %46 = vst.msk [vmem:[%s9604_s3 + $0x68] sm:$0xff] %vm32_vm0, %v6746_v2 }
  0x5b   :  { %5679 = vmatpush3.bf16.msra.mxu1 %v6253_v46  ;;  %6542 = vtanh.f32 %v1520_v13  ;;  %v1378_v45 = vmul.f32 0.5, %v6539_v36  ;;  %v7094_v46 = vstv %s5083_s16  ;;  %47 = vst.msk [vmem:[%s9604_s3 + $0x70] sm:$0xff] %vm32_vm0, %v6746_v2  ;;  %48 = vst.msk [vmem:[%s9604_s3 + $0x78] sm:$0xff] %vm32_vm0, %v6746_v2  ;;  %v6285_v13 = vld [vmem:[%s9603_s2 + $0x10] sm:$0xff]  }
  0x5c   :  { %5680 = vmatprep.subr.bf16.mxu1 %v6255_v56  ;;  %6544 = vtanh.f32 %v1969_v41  ;;  %v7103_v50 = vadd.f32 0.5, %v1377_v38  ;;  %v2120_v57 = vsub.f32 %v7094_v46, %v7035_v25  ;;  %49 = vst.msk [vmem:[%s9604_s3 + $0x80] sm:$0xff] %vm32_vm0, %v6746_v2  ;;  %50 = vst.msk [vmem:[%s9604_s3 + $0x88] sm:$0xff] %vm32_vm0, %v6746_v2 }
  0x5d   :  { %5661 = vmatpush3.bf16.msra.mxu0 %v6254_v52  ;;  %v7113_v52 = vld [vmem:[%s9603_s2 + $0x38] sm:$0xff]   ;;  %51 = vst.msk [vmem:[%s9604_s3 + $0x90] sm:$0xff] %vm32_vm0, %v6746_v2  ;;  %52 = vst.msk [vmem:[%s9604_s3 + $0x98] sm:$0xff] %vm32_vm0, %v6746_v2 }
  0x5e   :  { %5662 = vmatprep.subr.bf16.mxu0 %v6256_v60  ;;  %53 = vst.msk [vmem:[%s9604_s3 + $0xa0] sm:$0xff] %vm32_vm0, %v6746_v2  ;;  %54 = vst.msk [vmem:[%s9604_s3 + $0xa8] sm:$0xff] %vm32_vm0, %v6746_v2 }
  0x5f   :  { %5681 = vmatpush3.bf16.msra.mxu1 %v6255_v56  ;;  %v7120_v56 = vld [vmem:[%s9602_s1 + $0x18] sm:$0xff]  ;;  %55 = vst.msk [vmem:[%s9604_s3 + $0xb0] sm:$0xff] %vm32_vm0, %v6746_v2  ;;  %56 = vst.msk [vmem:[%s9604_s3 + $0xb8] sm:$0xff] %vm32_vm0, %v6746_v2 }
  0x60   :  { %5682 = vmatprep.subr.bf16.mxu1 %v6257_v63  ;;  %v1972_v62 = vsub.f32 %v7080_v39, %v7120_v56  ;;  %v2122_v1 = vsub.f32 %v7094_v46, %v7120_v56  ;;  %57 = vst.msk [vmem:[%s9604_s3 + $0xc0] sm:$0xff] %vm32_vm0, %v6746_v2  ;;  %58 = vst.msk [vmem:[%s9604_s3 + $0xc8] sm:$0xff] %vm32_vm0, %v6746_v2  ;;  %v1522_v29 = vsub.f32 %v7053_v30, %v7120_v56 }
  0x61   :  { %5663 = vmatpush3.bf16.msra.mxu0 %v6256_v60  ;;  %v7126_v60 = vadd.f32 0.5, %v1378_v45  ;;  %59 = vst.msk [vmem:[%s9604_s3 + $0xd0] sm:$0xff] %vm32_vm0, %v6746_v2  ;;  %60 = vst.msk [vmem:[%s9604_s3 + $0xd8] sm:$0xff] %vm32_vm0, %v6746_v2  ;;  %v6287_v45 = vld [vmem:[%s9603_s2 + $0x18] sm:$0xff]  }
  0x62   :  { %5664 = vmatprep.subr.bf16.mxu0 %v6258_v6  ;;  %61 = vst.msk [vmem:[%s9604_s3 + $0xe0] sm:$0xff] %vm32_vm0, %v6746_v2  ;;  %62 = vst.msk [vmem:[%s9604_s3 + $0xe8] sm:$0xff] %vm32_vm0, %v6746_v2 }
  0x63   :  { %5683 = vmatpush3.bf16.msra.mxu1 %v6257_v63  ;;  %v2121_v63 = vsub.f32 %v7094_v46, %v7108_v51  ;;  %63 = vst.msk [vmem:[%s9604_s3 + $0xf0] sm:$0xff] %vm32_vm0, %v6746_v2  ;;  %64 = vst.msk [vmem:[%s9604_s3 + $0xf8] sm:$0xff] %vm32_vm0, %v6746_v2 }
  0x64   :  { %5684 = vmatprep.subr.bf16.mxu1 %v6259_v8  ;;  %v6541_v43 = vpop.eup %6540  ;;  %65 = vst.msk [vmem:[%s9604_s3 + $0x100] sm:$0xff] %vm32_vm0, %v6746_v2  ;;  %66 = vst.msk [vmem:[%s9604_s3 + $0x108] sm:$0xff] %vm32_vm0, %v6746_v2 }
  0x65   :  { %5665 = vmatpush3.bf16.msra.mxu0 %v6258_v6  ;;  %v6543_v47 = vpop.eup %6542  ;;  %67 = vst.msk [vmem:[%s9604_s3 + $0x110] sm:$0xff] %vm32_vm0, %v6746_v2  ;;  %68 = vst.msk [vmem:[%s9604_s3 + $0x118] sm:$0xff] %vm32_vm0, %v6746_v2  ;;  %v1385_v6 = vpack.c.bf16 %v7126_v60, %v7103_v50  ;;  %v6291_v60 = vld [vmem:[%s9603_s2 + $0x28] sm:$0xff]  }
  0x66   :  { %5666 = vmatprep.subr.bf16.mxu0 %v6260_v12  ;;  %v7128_v61 = vmul.f32 0.5, %v6543_v47  ;;  %69 = vst.msk [vmem:[%s9604_s3 + $0x120] sm:$0xff] %vm32_vm0, %v6746_v2  ;;  %70 = vst.msk [vmem:[%s9604_s3 + $0x128] sm:$0xff] %vm32_vm0, %v6746_v2 }
  0x67   :  { %5685 = vmatpush3.bf16.msra.mxu1 %v6259_v8  ;;  %71 = vst.msk [vmem:[%s9604_s3 + $0x130] sm:$0xff] %vm32_vm0, %v6746_v2  ;;  %72 = vst.msk [vmem:[%s9604_s3 + $0x138] sm:$0xff] %vm32_vm0, %v6746_v2  ;;  %v6545_v8 = vpop.eup %6544 }
  0x68   :  { %5686 = vmatprep.subr.bf16.mxu1 %v6261_v15  ;;  %73 = vst.msk [vmem:[%s9604_s3 + $0x140] sm:$0xff] %vm32_vm0, %v6746_v2  ;;  %74 = vst.msk [vmem:[%s9604_s3 + $0x148] sm:$0xff] %vm32_vm0, %v6746_v2  ;;  %v1532_v4 = vadd.f32 0.5, %v7128_v61 }
  0x69   :  { %5667 = vmatpush3.bf16.msra.mxu0 %v6260_v12  ;;  %75 = vst.msk [vmem:[%s9604_s3 + $0x150] sm:$0xff] %vm32_vm0, %v6746_v2  ;;  %76 = vst.msk [vmem:[%s9604_s3 + $0x158] sm:$0xff] %vm32_vm0, %v6746_v2 }
  0x6a   :  { %5668 = vmatprep.subr.bf16.mxu0 %v6262_v16  ;;  %77 = vst.msk [vmem:[%s9604_s3 + $0x160] sm:$0xff] %vm32_vm0, %v6746_v2  ;;  %78 = vst.msk [vmem:[%s9604_s3 + $0x168] sm:$0xff] %vm32_vm0, %v6746_v2 }
  0x6b   :  { %5687 = vmatpush3.bf16.msra.mxu1 %v6261_v15  ;;  %79 = vst.msk [vmem:[%s9604_s3 + $0x170] sm:$0xff] %vm32_vm0, %v6746_v2  ;;  %80 = vst.msk [vmem:[%s9604_s3 + $0x178] sm:$0xff] %vm32_vm0, %v6746_v2 }
  0x6c   :  { %5688 = vmatprep.subr.bf16.mxu1 %v6263_v17  ;;  %81 = vst.msk [vmem:[%s9604_s3 + $0x180] sm:$0xff] %vm32_vm0, %v6746_v2  ;;  %82 = vst.msk [vmem:[%s9604_s3 + $0x188] sm:$0xff] %vm32_vm0, %v6746_v2 }
  0x6d   :  { %5669 = vmatpush3.bf16.msra.mxu0 %v6262_v16  ;;  %83 = vst.msk [vmem:[%s9604_s3 + $0x190] sm:$0xff] %vm32_vm0, %v6746_v2  ;;  %84 = vst.msk [vmem:[%s9604_s3 + $0x198] sm:$0xff] %vm32_vm0, %v6746_v2  ;;  %v1371_v16 = vsub.f32 %v7027_v23, %v7108_v51 }
  0x6e   :  { %5694 = vmatprep.subr.bf16.mxu0 %v6264_v19  ;;  %85 = vst.msk [vmem:[%s9604_s3 + $0x1a0] sm:$0xff] %vm32_vm0, %v6746_v2  ;;  %86 = vst.msk [vmem:[%s9604_s3 + $0x1a8] sm:$0xff] %vm32_vm0, %v6746_v2 }
  0x6f   :  { %5689 = vmatpush3.bf16.msra.mxu1 %v6263_v17  ;;  %87 = vst.msk [vmem:[%s9604_s3 + $0x1b0] sm:$0xff] %vm32_vm0, %v6746_v2  ;;  %88 = vst.msk [vmem:[%s9604_s3 + $0x1b8] sm:$0xff] %vm32_vm0, %v6746_v2  ;;  %v1977_v17 = vmul.f32 0.5, %v6545_v8 }
  0x70   :  { %5671 = vmatmul.mubr.bf16.vlgmr.msra.gmra.mrb[8].mxu0 %v786_v42  ;;  %5714 = vmatprep.subr.bf16.mxu1 %v6265_v20  ;;  %v1970_v42 = vsub.f32 %v7080_v39, %v7035_v25  ;;  %89 = vst.msk [vmem:[%s9604_s3 + $0x1c0] sm:$0xff] %vm32_vm0, %v6746_v2  ;;  %90 = vst.msk [vmem:[%s9604_s3 + $0x1c8] sm:$0xff] %vm32_vm0, %v6746_v2 }
  0x71   :  { %5695 = vmatpush3.bf16.msra.mxu0 %v6264_v19  ;;  %5710 = vmatprep.mubr.bf16.mxu0 %v1085_v54  ;;  %v7115_v54 = vmul.f32 0.5, %v6541_v43  ;;  %91 = vst.msk [vmem:[%s9604_s3 + $0x1d0] sm:$0xff] %vm32_vm0, %v6746_v2  ;;  %92 = vst.msk [vmem:[%s9604_s3 + $0x1d8] sm:$0xff] %vm32_vm0, %v6746_v2  ;;  %v7827_v53 = vadd.f32 0.5, %v1977_v17 }
  0x72   :  { %5691 = vmatmul.mubr.bf16.vlgmr.msra.gmra.mrb[8].mxu1 %v936_v49  ;;  %5696 = vmatprep.subr.bf16.mxu0 %v6266_v24  ;;  %v2119_v49 = vsub.f32 %v7094_v46, %v7025_v21  ;;  %6546 = vtanh.f32 %v1970_v42  ;;  %93 = vst.msk [vmem:[%s9604_s3 + $0x1e0] sm:$0xff] %vm32_vm0, %v6746_v2  ;;  %94 = vst.msk [vmem:[%s9604_s3 + $0x1e8] sm:$0xff] %vm32_vm0, %v6746_v2 }
  0x73   :  { %5715 = vmatpush3.bf16.msra.mxu1 %v6265_v20  ;;  %5730 = vmatprep.mubr.bf16.mxu1 %v1235_v9  ;;  %95 = vst.msk [vmem:[%s9604_s3 + $0x1f0] sm:$0xff] %vm32_vm0, %v6746_v2  ;;  %96 = vst.msk [vmem:[%s9604_s3 + $0x1f8] sm:$0xff] %vm32_vm0, %v6746_v2  ;;  %v1531_v3 = vadd.f32 0.5, %v7115_v54  ;;  %v6282_v9 = vld [vmem:[%s9603_s2 + $0x8] sm:$0xff]  }
  0x74   :  { %5716 = vmatprep.subr.bf16.mxu1 %v6267_v26  ;;  %6548 = vtanh.f32 %v2119_v49  ;;  %97 = vst.msk [vmem:[%s9604_s3 + $0x200] sm:$0xff] %vm32_vm0, %v6746_v2  ;;  %98 = vst.msk [vmem:[%s9604_s3 + $0x208] sm:$0xff] %vm32_vm0, %v6746_v2  ;;  %v6283_v20 = vld [vmem:[%s9603_s2 + $0x8] sm:$0xff]   ;;  %v6289_v49 = vld [vmem:[%s9603_s2 + $0x20] sm:$0xff]  }
  0x75   :  { %5697 = vmatpush3.bf16.msra.mxu0 %v6266_v24  ;;  %6550 = vtanh.f32 %v2120_v57  ;;  %99 = vst.msk [vmem:[%s9604_s3 + $0x210] sm:$0xff] %vm32_vm0, %v6746_v2  ;;  %100 = vst.msk [vmem:[%s9604_s3 + $0x218] sm:$0xff] %vm32_vm0, %v6746_v2  ;;  %v1535_v15 = vpack.c.bf16 %v1532_v4, %v1531_v3  ;;  %v1372_v24 = vsub.f32 %v7027_v23, %v7120_v56  ;;  %v6284_v23 = vld [vmem:[%s9603_s2 + $0x10] sm:$0xff]  }
  0x76   :  { %5698 = vmatprep.subr.bf16.mxu0 %v6268_v28  ;;  %6552 = vtanh.f32 %v1971_v59  ;;  %101 = vst.msk [vmem:[%s9604_s3 + $0x220] sm:$0xff] %vm32_vm0, %v6746_v2  ;;  %102 = vst.msk [vmem:[%s9604_s3 + $0x228] sm:$0xff] %vm32_vm0, %v6746_v2  ;;  %v6293_v3 = vld [vmem:[%s9603_s2 + $0x30] sm:$0xff]  }
  0x77   :  { %5717 = vmatpush3.bf16.msra.mxu1 %v6267_v26  ;;  %103 = vst.msk [vmem:[%s9604_s3 + $0x230] sm:$0xff] %vm32_vm0, %v6746_v2  ;;  %104 = vst.msk [vmem:[%s9604_s3 + $0x238] sm:$0xff] %vm32_vm0, %v6746_v2  ;;  %6554 = vtanh.f32 %v1972_v62  ;;  %v7822_v26 = vstv %s7140_s7 }
  0x78   :  { %5718 = vmatprep.subr.bf16.mxu1 %v6269_v31  ;;  %105 = vst.msk [vmem:[%s9604_s3 + $0x240] sm:$0xff] %vm32_vm0, %v6746_v2  ;;  %106 = vst.msk [vmem:[%s9604_s3 + $0x248] sm:$0xff] %vm32_vm0, %v6746_v2  ;;  %6556 = vtanh.f32 %v2121_v63  ;;  %v1669_v7 = vsub.f32 %v7822_v26, %v7025_v21 }
  0x79   :  { %5699 = vmatpush3.bf16.msra.mxu0 %v6268_v28  ;;  %107 = vst.msk [vmem:[%s9604_s3 + $0x250] sm:$0xff] %vm32_vm0, %v6746_v2  ;;  %108 = vst.msk [vmem:[%s9604_s3 + $0x258] sm:$0xff] %vm32_vm0, %v6746_v2  ;;  %6558 = vtanh.f32 %v2122_v1  ;;  %v1521_v28 = vsub.f32 %v7053_v30, %v7108_v51  ;;  %v6286_v30 = vld [vmem:[%s9603_s2 + $0x18] sm:$0xff]  }
  0x7a   :  { %5700 = vmatprep.subr.bf16.mxu0 %v6270_v32  ;;  %109 = vst.msk [vmem:[%s9604_s3 + $0x260] sm:$0xff] %vm32_vm0, %v6746_v2  ;;  %110 = vst.msk [vmem:[%s9604_s3 + $0x268] sm:$0xff] %vm32_vm0, %v6746_v2  ;;  %6560 = vtanh.f32 %v1371_v16 }
  0x7b   :  { %5719 = vmatpush3.bf16.msra.mxu1 %v6269_v31  ;;  %111 = vst.msk [vmem:[%s9604_s3 + $0x270] sm:$0xff] %vm32_vm0, %v6746_v2  ;;  %112 = vst.msk [vmem:[%s9604_s3 + $0x278] sm:$0xff] %vm32_vm0, %v6746_v2  ;;  %v7838_v31 = vstv %s7785_s0  ;;  %6562 = vtanh.f32 %v1372_v24 }
  0x7c   :  { %5720 = vmatprep.subr.bf16.mxu1 %v6271_v14  ;;  %113 = vst.msk [vmem:[%s9604_s3 + $0x280] sm:$0xff] %vm32_vm0, %v6746_v2  ;;  %114 = vst.msk [vmem:[%s9604_s3 + $0x288] sm:$0xff] %vm32_vm0, %v6746_v2  ;;  %v6547_v12 = vpop.eup %6546  ;;  %6564 = vtanh.f32 %v1521_v28  ;;  %v1819_v36 = vsub.f32 %v7838_v31, %v7025_v21 }
  0x7d   :  { %5701 = vmatpush3.bf16.msra.mxu0 %v6270_v32  ;;  %115 = vst.msk [vmem:[%s9604_s3 + $0x290] sm:$0xff] %vm32_vm0, %v6746_v2  ;;  %116 = vst.msk [vmem:[%s9604_s3 + $0x298] sm:$0xff] %vm32_vm0, %v6746_v2  ;;  %v1978_v27 = vmul.f32 0.5, %v6547_v12  ;;  %6566 = vtanh.f32 %v1522_v29  ;;  %v6297_v29 = vld [vmem:[%s9603_s2] sm:$0xff]  }
  0x7e   :  { %5702 = vmatprep.subr.bf16.mxu0 %v6272_v34  ;;  %117 = vst.msk [vmem:[%s9604_s3 + $0x2a0] sm:$0xff] %vm32_vm0, %v6746_v2  ;;  %118 = vst.msk [vmem:[%s9604_s3 + $0x2a8] sm:$0xff] %vm32_vm0, %v6746_v2  ;;  %v6549_v19 = vpop.eup %6548  ;;  %6568 = vtanh.f32 %v1669_v7 }
  0x7f   :  { %5721 = vmatpush3.bf16.msra.mxu1 %v6271_v14  ;;  %119 = vst.msk [vmem:[%s9604_s3 + $0x2b0] sm:$0xff] %vm32_vm0, %v6746_v2  ;;  %120 = vst.msk [vmem:[%s9604_s3 + $0x2b8] sm:$0xff] %vm32_vm0, %v6746_v2  ;;  %v2127_v55 = vmul.f32 0.5, %v6549_v19  ;;  %v7840_v32 = vadd.f32 0.5, %v1978_v27  ;;  %v6295_v19 = vld [vmem:[%s9603_s2 + $0x38] sm:$0xff]   ;;  %v6296_v27 = vld [vmem:[%s9603_s2] sm:$0xff]  }
  0x80   :  { %5722 = vmatprep.subr.bf16.mxu1 %v6273_v18  ;;  %121 = vst.msk [vmem:[%s9604_s3 + $0x2c0] sm:$0xff] %vm32_vm0, %v6746_v2  ;;  %122 = vst.msk [vmem:[%s9604_s3 + $0x2c8] sm:$0xff] %vm32_vm0, %v6746_v2 }
  0x81   :  { %5703 = vmatpush3.bf16.msra.mxu0 %v6272_v34  ;;  %123 = vst.msk [vmem:[%s9604_s3 + $0x2d0] sm:$0xff] %vm32_vm0, %v6746_v2  ;;  %124 = vst.msk [vmem:[%s9604_s3 + $0x2d8] sm:$0xff] %vm32_vm0, %v6746_v2  ;;  %v1670_v34 = vsub.f32 %v7822_v26, %v7035_v25 }
  0x82   :  { %5704 = vmatprep.subr.bf16.mxu0 %v6274_v35  ;;  %125 = vst.msk [vmem:[%s9604_s3 + $0x2e0] sm:$0xff] %vm32_vm0, %v6746_v2  ;;  %126 = vst.msk [vmem:[%s9604_s3 + $0x2e8] sm:$0xff] %vm32_vm0, %v6746_v2 }
  0x83   :  { %5723 = vmatpush3.bf16.msra.mxu1 %v6273_v18  ;;  %127 = vst.msk [vmem:[%s9604_s3 + $0x2f0] sm:$0xff] %vm32_vm0, %v6746_v2  ;;  %128 = vst.msk [vmem:[%s9604_s3 + $0x2f8] sm:$0xff] %vm32_vm0, %v6746_v2  ;;  %v1985_v18 = vpack.c.bf16 %v7840_v32, %v7827_v53  ;;  %6570 = vtanh.f32 %v1670_v34  ;;  %v6318_v32 = vld [vmem:[%s9603_s2 + $0x18] sm:$0xff]  }
  0x84   :  { %5724 = vmatprep.subr.bf16.mxu1 %v6275_v37  ;;  %129 = vst.msk [vmem:[%s9604_s3 + $0x300] sm:$0xff] %vm32_vm0, %v6746_v2  ;;  %130 = vst.msk [vmem:[%s9604_s3 + $0x308] sm:$0xff] %vm32_vm0, %v6746_v2  ;;  %6572 = vtanh.f32 %v1819_v36  ;;  %v1672_v36 = vsub.f32 %v7822_v26, %v7120_v56 }
  0x85   :  { %5705 = vmatpush3.bf16.msra.mxu0 %v6274_v35  ;;  %131 = vst.msk [vmem:[%s9604_s3 + $0x310] sm:$0xff] %vm32_vm0, %v6746_v2  ;;  %132 = vst.msk [vmem:[%s9604_s3 + $0x318] sm:$0xff] %vm32_vm0, %v6746_v2 }
  0x86   :  { %5706 = vmatprep.subr.bf16.mxu0 %v6276_v40  ;;  %133 = vst.msk [vmem:[%s9604_s3 + $0x320] sm:$0xff] %vm32_vm0, %v6746_v2  ;;  %134 = vst.msk [vmem:[%s9604_s3 + $0x328] sm:$0xff] %vm32_vm0, %v6746_v2 }
  0x87   :  { %5725 = vmatpush3.bf16.msra.mxu1 %v6275_v37  ;;  %135 = vst.msk [vmem:[%s9604_s3 + $0x330] sm:$0xff] %vm32_vm0, %v6746_v2  ;;  %136 = vst.msk [vmem:[%s9604_s3 + $0x338] sm:$0xff] %vm32_vm0, %v6746_v2 }
  0x88   :  { %5726 = vmatprep.subr.bf16.mxu1 %v7092_v44  ;;  %137 = vst.msk [vmem:[%s9604_s3 + $0x340] sm:$0xff] %vm32_vm0, %v6746_v2  ;;  %138 = vst.msk [vmem:[%s9604_s3 + $0x348] sm:$0xff] %vm32_vm0, %v6746_v2 }
  0x89   :  { %5707 = vmatpush3.bf16.msra.mxu0 %v6276_v40  ;;  %139 = vst.msk [vmem:[%s9604_s3 + $0x350] sm:$0xff] %vm32_vm0, %v6746_v2  ;;  %140 = vst.msk [vmem:[%s9604_s3 + $0x358] sm:$0xff] %vm32_vm0, %v6746_v2  ;;  %v1820_v40 = vsub.f32 %v7838_v31, %v7035_v25  ;;  %v6288_v25 = vld [vmem:[%s9603_s2 + $0x20] sm:$0xff]  }
  0x8a   :  { %141 = vst.msk [vmem:[%s9604_s3 + $0x360] sm:$0xff] %vm32_vm0, %v6746_v2  ;;  %142 = vst.msk [vmem:[%s9604_s3 + $0x368] sm:$0xff] %vm32_vm0, %v6746_v2  ;;  %5708 = vmatprep.subr.bf16.mxu0 %v7099_v48 }
  0x8b   :  { %143 = vst.msk [vmem:[%s9604_s3 + $0x370] sm:$0xff] %vm32_vm0, %v6746_v2  ;;  %144 = vst.msk [vmem:[%s9604_s3 + $0x378] sm:$0xff] %vm32_vm0, %v6746_v2  ;;  %5727 = vmatpush3.bf16.msra.mxu1 %v7092_v44  ;;  %6574 = vtanh.f32 %v1820_v40  ;;  %v1822_v40 = vsub.f32 %v7838_v31, %v7120_v56  ;;  %v6304_v56 = vld [vmem:[%s9603_s2 + $0x20] sm:$0xff]  }
  0x8c   :  { %145 = vst.msk [vmem:[%s9604_s3 + $0x380] sm:$0xff] %vm32_vm0, %v6746_v2  ;;  %146 = vst.msk [vmem:[%s9604_s3 + $0x388] sm:$0xff] %vm32_vm0, %v6746_v2  ;;  %5728 = vmatprep.subr.bf16.mxu1 %v7113_v52 }
  0x8d   :  { %147 = vst.msk [vmem:[%s9604_s3 + $0x390] sm:$0xff] %vm32_vm0, %v6746_v2  ;;  %148 = vst.msk [vmem:[%s9604_s3 + $0x398] sm:$0xff] %vm32_vm0, %v6746_v2  ;;  %5709 = vmatpush3.bf16.msra.mxu0 %v7099_v48 }
  0x8e   :  { %149 = vst.msk [vmem:[%s9604_s3 + $0x3a0] sm:$0xff] %vm32_vm0, %v6746_v2  ;;  %150 = vst.msk [vmem:[%s9604_s3 + $0x3a8] sm:$0xff] %vm32_vm0, %v6746_v2  ;;  %5734 = vmatprep.subr.bf16.mxu0 %v7138_v0 }
  0x8f   :  { %151 = vst.msk [vmem:[%s9604_s3 + $0x3b0] sm:$0xff] %vm32_vm0, %v6746_v2  ;;  %152 = vst.msk [vmem:[%s9604_s3 + $0x3b8] sm:$0xff] %vm32_vm0, %v6746_v2  ;;  %5729 = vmatpush3.bf16.msra.mxu1 %v7113_v52  ;;  %v6290_v52 = vld [vmem:[%s9603_s2 + $0x28] sm:$0xff]  }
  0x90   :  { %153 = vst.msk [vmem:[%s9604_s3 + $0x3c0] sm:$0xff] %vm32_vm0, %v6746_v2  ;;  %154 = vst.msk [vmem:[%s9604_s3 + $0x3c8] sm:$0xff] %vm32_vm0, %v6746_v2  ;;  %5711 = vmatmul.mubr.bf16.vlgmr.msra.gmra.mrb[12].mxu0 %v1086_v58  ;;  %5754 = vmatprep.subr.bf16.mxu1 %v6281_v5  ;;  %v6551_v58 = vpop.eup %6550 }
  0x91   :  { %155 = vst.msk [vmem:[%s9604_s3 + $0x3d0] sm:$0xff] %vm32_vm0, %v6746_v2  ;;  %156 = vst.msk [vmem:[%s9604_s3 + $0x3d8] sm:$0xff] %vm32_vm0, %v6746_v2  ;;  %5735 = vmatpush3.bf16.msra.mxu0 %v7138_v0  ;;  %5750 = vmatprep.mubr.bf16.mxu0 %v1385_v6  ;;  %v6553_v33 = vpop.eup %6552  ;;  %v2128_v10 = vmul.f32 0.5, %v6551_v58  ;;  %v6292_v0 = vld [vmem:[%s9603_s2 + $0x30] sm:$0xff]  }
  0x92   :  { %157 = vst.msk [vmem:[%s9604_s3 + $0x3e0] sm:$0xff] %vm32_vm0, %v6746_v2  ;;  %158 = vst.msk [vmem:[%s9604_s3 + $0x3e8] sm:$0xff] %vm32_vm0, %v6746_v2  ;;  %5731 = vmatmul.mubr.bf16.vlgmr.msra.gmra.mrb[12].mxu1 %v1236_v11  ;;  %5736 = vmatprep.subr.bf16.mxu0 %v6282_v9  ;;  %v7847_v11 = vadd.f32 0.5, %v2127_v55  ;;  %v6555_v14 = vpop.eup %6554  ;;  %v1979_v22 = vmul.f32 0.5, %v6553_v33 }
  0x93   :  { %159 = vst.msk [vmem:[%s9604_s3 + $0x3f0] sm:$0xff] %vm32_vm0, %v6746_v2  ;;  %160 = vst.msk [vmem:[%s9604_s3 + $0x3f8] sm:$0xff] %vm32_vm0, %v6746_v2  ;;  %5755 = vmatpush3.bf16.msra.mxu1 %v6281_v5  ;;  %5770 = vmatprep.mubr.bf16.mxu1 %v1535_v15  ;;  %v6557_v35 = vpop.eup %6556  ;;  %v7858_v37 = vadd.f32 0.5, %v2128_v10  ;;  %v1980_v38 = vmul.f32 0.5, %v6555_v14  ;;  %v6298_v10 = vld [vmem:[%s9603_s2 + $0x8] sm:$0xff]  }
  0x94   :  { %5756 = vmatprep.subr.bf16.mxu1 %v6283_v20  ;;  %v6559_v39 = vpop.eup %6558  ;;  %v7862_v41 = vadd.f32 0.5, %v1979_v22  ;;  %v2129_v42 = vmul.f32 0.5, %v6557_v35  ;;  %v6299_v22 = vld [vmem:[%s9603_s2 + $0x8] sm:$0xff]   ;;  %v1671_v35 = vsub.f32 %v7822_v26, %v7108_v51  ;;  %v6302_v26 = vld [vmem:[%s9603_s2 + $0x18] sm:$0xff]  }
  0x95   :  { %5737 = vmatpush3.bf16.msra.mxu0 %v6282_v9  ;;  %v2135_v43 = vpack.c.bf16 %v7858_v37, %v7847_v11  ;;  %v7866_v44 = vadd.f32 0.5, %v1980_v38  ;;  %v2130_v21 = vmul.f32 0.5, %v6559_v39  ;;  %v6561_v54 = vpop.eup %6560  ;;  %v6294_v9 = vld [vmem:[%s9603_s2 + $0x38] sm:$0xff]   ;;  %v6300_v38 = vld [vmem:[%s9603_s2 + $0x10] sm:$0xff]   ;;  %v1821_v39 = vsub.f32 %v7838_v31, %v7108_v51  ;;  %v6305_v31 = vld [vmem:[%s9603_s2 + $0x20] sm:$0xff]  }
  0x96   :  { %5738 = vmatprep.subr.bf16.mxu0 %v6284_v23  ;;  %v7871_v46 = vadd.f32 0.5, %v2129_v42  ;;  %v6563_v57 = vpop.eup %6562  ;;  %v1379_v4 = vmul.f32 0.5, %v6561_v54  ;;  %v6301_v42 = vld [vmem:[%s9603_s2 + $0x10] sm:$0xff]   ;;  %6576 = vtanh.f32 %v1671_v35  ;;  %v6303_v51 = vld [vmem:[%s9603_s2 + $0x18] sm:$0xff]   ;;  %v6320_v37 = vld [vmem:[%s9603_s2 + $0x20] sm:$0xff]  }
  0x97   :  { %5757 = vmatpush3.bf16.msra.mxu1 %v6283_v20  ;;  %v1986_v47 = vpack.c.bf16 %v7866_v44, %v7862_v41  ;;  %v7878_v48 = vadd.f32 0.5, %v2130_v21  ;;  %v6565_v59 = vpop.eup %6564  ;;  %v1380_v5 = vmul.f32 0.5, %v6563_v57  ;;  %6578 = vtanh.f32 %v1672_v36  ;;  %v6306_v21 = vld [vmem:[%s9603_s2 + $0x28] sm:$0xff]   ;;  %v6308_v54 = vld [vmem:[%s9603_s2 + $0x30] sm:$0xff]   ;;  %v6319_v11 = vld [vmem:[%s9603_s2 + $0x18] sm:$0xff]  }
  0x98   :  { %5758 = vmatprep.subr.bf16.mxu1 %v6285_v13  ;;  %v6567_v61 = vpop.eup %6566  ;;  %v1529_v12 = vmul.f32 0.5, %v6565_v59  ;;  %v1383_v20 = vadd.f32 0.5, %v1379_v4  ;;  %6580 = vtanh.f32 %v1821_v39  ;;  %v6309_v59 = vld [vmem:[%s9603_s2 + $0x30] sm:$0xff]   ;;  %v6326_v35 = vld [vmem:[%s9603_s2 + $0x38] sm:$0xff]  }
  0x99   :  { %5739 = vmatpush3.bf16.msra.mxu0 %v6284_v23  ;;  %v2136_v50 = vpack.c.bf16 %v7878_v48, %v7871_v46  ;;  %v6569_v62 = vpop.eup %6568  ;;  %v1530_v15 = vmul.f32 0.5, %v6567_v61  ;;  %v1384_v24 = vadd.f32 0.5, %v1380_v5  ;;  %6582 = vtanh.f32 %v1822_v40  ;;  %v6327_v36 = vld [vmem:[%s9603_s2 + $0x38] sm:$0xff]   ;;  %v6328_v40 = vld [vmem:[%s9603_s2] sm:$0xff]   ;;  %v6332_v41 = vld [vmem:[%s9603_s2 + $0x10] sm:$0xff]  }
  0x9a   :  { %5740 = vmatprep.subr.bf16.mxu0 %v6286_v30  ;;  %v6571_v63 = vpop.eup %6570  ;;  %v1677_v6 = vmul.f32 0.5, %v6569_v62  ;;  %v1533_v58 = vadd.f32 0.5, %v1529_v12  ;;  %v6334_v48 = vld [vmem:[%s9603_s2 + $0x18] sm:$0xff]  }
  0x9b   :  { %5759 = vmatpush3.bf16.msra.mxu1 %v6285_v13  ;;  %v6573_v1 = vpop.eup %6572  ;;  %v1678_v8 = vmul.f32 0.5, %v6571_v63  ;;  %v1534_v23 = vadd.f32 0.5, %v1530_v15  ;;  %v1386_v7 = vpack.c.bf16 %v1384_v24, %v1383_v20  ;;  %v6314_v15 = vld [vmem:[%s9603_s2 + $0x8] sm:$0xff]   ;;  %v6316_v24 = vld [vmem:[%s9603_s2 + $0x10] sm:$0xff]  }
  0x9c   :  { %5760 = vmatprep.subr.bf16.mxu1 %v6287_v45  ;;  %v6575_v2 = vpop.eup %6574  ;;  %v1827_v16 = vmul.f32 0.5, %v6573_v1  ;;  %v1681_v28 = vadd.f32 0.5, %v1677_v6  ;;  %v6311_v1 = vld [vmem:[%s9603_s2 + $0x38] sm:$0xff]   ;;  %v6312_v6 = vld [vmem:[%s9603_s2] sm:$0xff]   ;;  %v7981_v20 = vld [vmem:[%s9602_s1 + $0x8] sm:$0xff] }
  0x9d   :  { %5741 = vmatpush3.bf16.msra.mxu0 %v6286_v30  ;;  %v1828_v17 = vmul.f32 0.5, %v6575_v2  ;;  %v1682_v55 = vadd.f32 0.5, %v1678_v8  ;;  %v1536_v30 = vpack.c.bf16 %v1534_v23, %v1533_v58  ;;  %v6322_v23 = vld [vmem:[%s9603_s2 + $0x28] sm:$0xff]  }
  0x9e   :  { %5742 = vmatprep.subr.bf16.mxu0 %v6288_v25  ;;  %v1831_v33 = vadd.f32 0.5, %v1827_v16  ;;  %v7971_v16 = vld [vmem:[%s9602_s1] sm:$0xff] }
  0x9f   :  { %5761 = vmatpush3.bf16.msra.mxu1 %v6287_v45  ;;  %v1832_v13 = vadd.f32 0.5, %v1828_v17  ;;  %v1685_v14 = vpack.c.bf16 %v1682_v55, %v1681_v28  ;;  %v7973_v17 = vstv %s5092_s25  ;;  %v7991_v28 = vstv %s5101_s29  ;;  %v6317_v55 = vld [vmem:[%s9603_s2 + $0x10] sm:$0xff]   ;;  %s8286_s25 = sld [smem:[#allocation2 + $0x14]] }
  0xa0   :  { %5762 = vmatprep.subr.bf16.mxu1 %v6289_v49  ;;  %v6577_v45 = vpop.eup %6576  ;;  %v2270_v53 = vsub.f32 %v7973_v17, %v7981_v20  ;;  %v2420_v58 = vsub.f32 %v7991_v28, %v7981_v20 }
  0xa1   :  { %5743 = vmatpush3.bf16.msra.mxu0 %v6288_v25  ;;  %v1835_v34 = vpack.c.bf16 %v1832_v13, %v1831_v33  ;;  %v6579_v25 = vpop.eup %6578  ;;  %v6324_v13 = vld [vmem:[%s9603_s2 + $0x30] sm:$0xff]  }
  0xa2   :  { %5744 = vmatprep.subr.bf16.mxu0 %v6290_v52  ;;  %v1680_v61 = vmul.f32 0.5, %v6579_v25 }
  0xa3   :  { %5763 = vmatpush3.bf16.msra.mxu1 %v6289_v49  ;;  %v6307_v49 = vld [vmem:[%s9603_s2 + $0x28] sm:$0xff]  }
  0xa4   :  { %5764 = vmatprep.subr.bf16.mxu1 %v6291_v60 }
  0xa5   :  { %5745 = vmatpush3.bf16.msra.mxu0 %v6290_v52  ;;  %v6581_v52 = vpop.eup %6580 }
  0xa6   :  { %5746 = vmatprep.subr.bf16.mxu0 %v6292_v0  ;;  %v6583_v57 = vpop.eup %6582  ;;  %v1829_v62 = vmul.f32 0.5, %v6581_v52 }
  0xa7   :  { %5765 = vmatpush3.bf16.msra.mxu1 %v6291_v60  ;;  %v1679_v60 = vmul.f32 0.5, %v6577_v45  ;;  %v1830_v63 = vmul.f32 0.5, %v6583_v57  ;;  %v6329_v45 = vld [vmem:[%s9603_s2] sm:$0xff]  }
  0xa8   :  { %5766 = vmatprep.subr.bf16.mxu1 %v6293_v3  ;;  %v1833_v4 = vadd.f32 0.5, %v1829_v62 }
  0xa9   :  { %5747 = vmatpush3.bf16.msra.mxu0 %v6292_v0  ;;  %v6310_v0 = vld [vmem:[%s9603_s2 + $0x38] sm:$0xff]   ;;  %v1683_v2 = vadd.f32 0.5, %v1679_v60  ;;  %v1834_v5 = vadd.f32 0.5, %v1830_v63  ;;  %v8062_v60 = vstv %s5110_s10  ;;  %v6333_v63 = vld [vmem:[%s9603_s2 + $0x10] sm:$0xff]   ;;  %s8415_s10 = sld [smem:[#allocation2 + $0x16]] }
  0xaa   :  { %5748 = vmatprep.subr.bf16.mxu0 %v6294_v9  ;;  %v2569_v44 = vsub.f32 %v8062_v60, %v7971_v16  ;;  %v2570_v46 = vsub.f32 %v8062_v60, %v7981_v20 }
  0xab   :  { %5767 = vmatpush3.bf16.msra.mxu1 %v6293_v3  ;;  %v1684_v3 = vadd.f32 0.5, %v1680_v61  ;;  %v1836_v12 = vpack.c.bf16 %v1834_v5, %v1833_v4  ;;  %v6331_v61 = vld [vmem:[%s9603_s2 + $0x8] sm:$0xff]   ;;  %v6337_v5 = vld [vmem:[%s9603_s2 + $0x20] sm:$0xff]  }
  0xac   :  { %5768 = vmatprep.subr.bf16.mxu1 %v6295_v19 }
  0xad   :  { %5749 = vmatpush3.bf16.msra.mxu0 %v6294_v9  ;;  %v1686_v8 = vpack.c.bf16 %v1684_v3, %v1683_v2  ;;  %v6313_v9 = vld [vmem:[%s9603_s2] sm:$0xff]  }
  0xae   :  { %5774 = vmatprep.subr.bf16.mxu0 %v6296_v27  ;;  %v6336_v2 = vld [vmem:[%s9603_s2 + $0x20] sm:$0xff]  }
  0xaf   :  { %5769 = vmatpush3.bf16.msra.mxu1 %v6295_v19  ;;  %v6315_v19 = vld [vmem:[%s9603_s2 + $0x8] sm:$0xff]  }
  0xb0   :  { %5751 = vmatmul.mubr.bf16.vlgmr.msra.gmra.mrb[16].mxu0 %v1386_v7  ;;  %5794 = vmatprep.subr.bf16.mxu1 %v6297_v29 }
  0xb1   :  { %5775 = vmatpush3.bf16.msra.mxu0 %v6296_v27  ;;  %5790 = vmatprep.mubr.bf16.mxu0 %v1685_v14  ;;  %v2269_v27 = vsub.f32 %v7973_v17, %v7971_v16 }
  0xb2   :  { %5771 = vmatmul.mubr.bf16.vlgmr.msra.gmra.mrb[16].mxu1 %v1536_v30  ;;  %5776 = vmatprep.subr.bf16.mxu0 %v6298_v10  ;;  %v6325_v30 = vld [vmem:[%s9603_s2 + $0x30] sm:$0xff]  }
  0xb3   :  { %5795 = vmatpush3.bf16.msra.mxu1 %v6297_v29  ;;  %5810 = vmatprep.mubr.bf16.mxu1 %v1835_v34  ;;  %6584 = vtanh.f32 %v2269_v27  ;;  %v6323_v29 = vld [vmem:[%s9603_s2 + $0x28] sm:$0xff]  }
  0xb4   :  { %5796 = vmatprep.subr.bf16.mxu1 %v6299_v22  ;;  %6586 = vtanh.f32 %v2270_v53 }
  0xb5   :  { %5777 = vmatpush3.bf16.msra.mxu0 %v6298_v10 }
  0xb6   :  { %5778 = vmatprep.subr.bf16.mxu0 %v6300_v38 }
  0xb7   :  { %5797 = vmatpush3.bf16.msra.mxu1 %v6299_v22 }
  0xb8   :  { %5798 = vmatprep.subr.bf16.mxu1 %v6301_v42 }
  0xb9   :  { %5779 = vmatpush3.bf16.msra.mxu0 %v6300_v38 }
  0xba   :  { %5780 = vmatprep.subr.bf16.mxu0 %v6302_v26 }
  0xbb   :  { %5799 = vmatpush3.bf16.msra.mxu1 %v6301_v42  ;;  %v8041_v42 = vld [vmem:[%s9602_s1 + $0x10] sm:$0xff] }
  0xbc   :  { %5800 = vmatprep.subr.bf16.mxu1 %v6303_v51  ;;  %v2271_v25 = vsub.f32 %v7973_v17, %v8041_v42  ;;  %v2421_v57 = vsub.f32 %v7991_v28, %v8041_v42 }
  0xbd   :  { %5781 = vmatpush3.bf16.msra.mxu0 %v6302_v26  ;;  %v6585_v33 = vpop.eup %6584  ;;  %v8046_v26 = vld [vmem:[%s9602_s1 + $0x18] sm:$0xff] }
  0xbe   :  { %5782 = vmatprep.subr.bf16.mxu0 %v6304_v56  ;;  %v6587_v7 = vpop.eup %6586  ;;  %v2277_v34 = vmul.f32 0.5, %v6585_v33  ;;  %v2272_v52 = vsub.f32 %v7973_v17, %v8046_v26  ;;  %v2422_v62 = vsub.f32 %v7991_v28, %v8046_v26 }
  0xbf   :  { %5801 = vmatpush3.bf16.msra.mxu1 %v6303_v51  ;;  %v2278_v22 = vmul.f32 0.5, %v6587_v7 }
  0xc0   :  { %5802 = vmatprep.subr.bf16.mxu1 %v6305_v31  ;;  %v2281_v51 = vadd.f32 0.5, %v2277_v34 }
  0xc1   :  { %5783 = vmatpush3.bf16.msra.mxu0 %v6304_v56  ;;  %v2282_v56 = vadd.f32 0.5, %v2278_v22 }
  0xc2   :  { %5784 = vmatprep.subr.bf16.mxu0 %v6306_v21 }
  0xc3   :  { %5803 = vmatpush3.bf16.msra.mxu1 %v6305_v31 }
  0xc4   :  { %5804 = vmatprep.subr.bf16.mxu1 %v6307_v49 }
  0xc5   :  { %5785 = vmatpush3.bf16.msra.mxu0 %v6306_v21 }
  0xc6   :  { %5786 = vmatprep.subr.bf16.mxu0 %v6308_v54 }
  0xc7   :  { %5805 = vmatpush3.bf16.msra.mxu1 %v6307_v49  ;;  %v2285_v49 = vpack.c.bf16 %v2282_v56, %v2281_v51  ;;  %v338_v56 = vld [vmem:[%s9604_s3 + $0x28] sm:$0xff] }
  0xc8   :  { %5806 = vmatprep.subr.bf16.mxu1 %v6309_v59 }
  0xc9   :  { %5787 = vmatpush3.bf16.msra.mxu0 %v6308_v54  ;;  %v6330_v54 = vld [vmem:[%s9603_s2 + $0x8] sm:$0xff]  }
  0xca   :  { %5788 = vmatprep.subr.bf16.mxu0 %v6310_v0 }
  0xcb   :  { %5807 = vmatpush3.bf16.msra.mxu1 %v6309_v59 }
  0xcc   :  { %5808 = vmatprep.subr.bf16.mxu1 %v6311_v1 }
  0xcd   :  { %5789 = vmatpush3.bf16.msra.mxu0 %v6310_v0 }
  0xce   :  { %5814 = vmatprep.subr.bf16.mxu0 %v6312_v6 }
  0xcf   :  { %5809 = vmatpush3.bf16.msra.mxu1 %v6311_v1  ;;  %v6335_v1 = vld [vmem:[%s9603_s2 + $0x18] sm:$0xff]  }
  0xd0   :  { %5791 = vmatmul.mubr.bf16.vlgmr.msra.gmra.mrb[20].mxu0 %v1686_v8  ;;  %5834 = vmatprep.subr.bf16.mxu1 %v6313_v9  ;;  %v6338_v8 = vld [vmem:[%s9603_s2 + $0x28] sm:$0xff]  }
  0xd1   :  { %5815 = vmatpush3.bf16.msra.mxu0 %v6312_v6  ;;  %5830 = vmatprep.mubr.bf16.mxu0 %v1985_v18  ;;  %v2419_v18 = vsub.f32 %v7991_v28, %v7971_v16  ;;  %v186_v28 = vld [vmem:[%s9604_s3] sm:$0xff] }
  0xd2   :  { %5811 = vmatmul.mubr.bf16.vlgmr.msra.gmra.mrb[20].mxu1 %v1836_v12  ;;  %5816 = vmatprep.subr.bf16.mxu0 %v6314_v15 }
  0xd3   :  { %5835 = vmatpush3.bf16.msra.mxu1 %v6313_v9  ;;  %5850 = vmatprep.mubr.bf16.mxu1 %v2135_v43  ;;  %6588 = vtanh.f32 %v2419_v18  ;;  %v6321_v43 = vld [vmem:[%s9603_s2 + $0x20] sm:$0xff]   ;;  %v6339_v9 = vld [vmem:[%s9603_s2 + $0x28] sm:$0xff]   ;;  %v189_v18 = vld [vmem:[%s9604_s3 + $0x18] sm:$0xff] }
  0xd4   :  { %5836 = vmatprep.subr.bf16.mxu1 %v6315_v19  ;;  %6590 = vtanh.f32 %v2420_v58  ;;  %v337_v58 = vld [vmem:[%s9604_s3 + $0x20] sm:$0xff] }
  0xd5   :  { %5817 = vmatpush3.bf16.msra.mxu0 %v6314_v15  ;;  %6592 = vtanh.f32 %v2271_v25  ;;  %v188_v15 = vld [vmem:[%s9604_s3 + $0x10] sm:$0xff] }
  0xd6   :  { %5818 = vmatprep.subr.bf16.mxu0 %v6316_v24  ;;  %6594 = vtanh.f32 %v2272_v52 }
  0xd7   :  { %5837 = vmatpush3.bf16.msra.mxu1 %v6315_v19  ;;  %6596 = vtanh.f32 %v2421_v57 }
  0xd8   :  { %5838 = vmatprep.subr.bf16.mxu1 %v6317_v55  ;;  %6598 = vtanh.f32 %v2422_v62 }
  0xd9   :  { %5819 = vmatpush3.bf16.msra.mxu0 %v6316_v24  ;;  %6600 = vtanh.f32 %v2569_v44  ;;  %v6344_v44 = vld [vmem:[%s9603_s2] sm:$0xff]  }
  0xda   :  { %5820 = vmatprep.subr.bf16.mxu0 %v6318_v32  ;;  %6602 = vtanh.f32 %v2570_v46 }
  0xdb   :  { %5839 = vmatpush3.bf16.msra.mxu1 %v6317_v55  ;;  %v6340_v55 = vld [vmem:[%s9603_s2 + $0x30] sm:$0xff]  }
  0xdc   :  { %5840 = vmatprep.subr.bf16.mxu1 %v6319_v11 }
  0xdd   :  { %5821 = vmatpush3.bf16.msra.mxu0 %v6318_v32  ;;  %v6589_v10 = vpop.eup %6588  ;;  %v339_v32 = vld [vmem:[%s9604_s3 + $0x30] sm:$0xff] }
  0xde   :  { %5822 = vmatprep.subr.bf16.mxu0 %v6320_v37  ;;  %v6591_v14 = vpop.eup %6590  ;;  %v2427_v38 = vmul.f32 0.5, %v6589_v10 }
  0xdf   :  { %5841 = vmatpush3.bf16.msra.mxu1 %v6319_v11  ;;  %v2428_v39 = vmul.f32 0.5, %v6591_v14  ;;  %v6593_v3 = vpop.eup %6592  ;;  %v187_v11 = vld [vmem:[%s9604_s3 + $0x8] sm:$0xff] }
  0xe0   :  { %5842 = vmatprep.subr.bf16.mxu1 %v6321_v43  ;;  %v2431_v31 = vadd.f32 0.5, %v2427_v38  ;;  %v6595_v4 = vpop.eup %6594  ;;  %v2279_v17 = vmul.f32 0.5, %v6593_v3 }
  0xe1   :  { %5823 = vmatpush3.bf16.msra.mxu0 %v6320_v37  ;;  %v2432_v21 = vadd.f32 0.5, %v2428_v39  ;;  %v6597_v6 = vpop.eup %6596  ;;  %v2280_v19 = vmul.f32 0.5, %v6595_v4  ;;  %v6341_v37 = vld [vmem:[%s9603_s2 + $0x30] sm:$0xff]  }
  0xe2   :  { %5824 = vmatprep.subr.bf16.mxu0 %v6322_v23  ;;  %v6599_v12 = vpop.eup %6598  ;;  %v2429_v24 = vmul.f32 0.5, %v6597_v6  ;;  %v2283_v33 = vadd.f32 0.5, %v2279_v17 }
  0xe3   :  { %5843 = vmatpush3.bf16.msra.mxu1 %v6321_v43  ;;  %v2435_v59 = vpack.c.bf16 %v2432_v21, %v2431_v31  ;;  %v6601_v27 = vpop.eup %6600  ;;  %v2430_v14 = vmul.f32 0.5, %v6599_v12  ;;  %v6342_v31 = vld [vmem:[%s9603_s2 + $0x38] sm:$0xff]   ;;  %v2284_v21 = vadd.f32 0.5, %v2280_v19  ;;  %v2572_v12 = vsub.f32 %v8062_v60, %v8046_v26  ;;  %v6348_v19 = vld [vmem:[%s9603_s2 + $0x10] sm:$0xff]  }
  0xe4   :  { %5844 = vmatprep.subr.bf16.mxu1 %v6323_v29  ;;  %v6603_v53 = vpop.eup %6602 }
  0xe5   :  { %5825 = vmatpush3.bf16.msra.mxu0 %v6322_v23  ;;  %v2578_v34 = vmul.f32 0.5, %v6603_v53 }
  0xe6   :  { %5826 = vmatprep.subr.bf16.mxu0 %v6324_v13 }
  0xe7   :  { %5845 = vmatpush3.bf16.msra.mxu1 %v6323_v29  ;;  %v340_v29 = vld [vmem:[%s9604_s3 + $0x38] sm:$0xff]  ;;  %v2582_v46 = vadd.f32 0.5, %v2578_v34  ;;  %v6356_v34 = vld [vmem:[%s9603_s2 + $0x30] sm:$0xff]  }
  0xe8   :  { %5846 = vmatprep.subr.bf16.mxu1 %v6325_v30 }
  0xe9   :  { %5827 = vmatpush3.bf16.msra.mxu0 %v6324_v13 }
  0xea   :  { %5828 = vmatprep.subr.bf16.mxu0 %v6326_v35 }
  0xeb   :  { %5847 = vmatpush3.bf16.msra.mxu1 %v6325_v30  ;;  %v2577_v30 = vmul.f32 0.5, %v6601_v27  ;;  %v8203_v27 = vstv %s5137_s22  ;;  %s5209_s22 = sld [smem:[#allocation2 + $0x1b]] }
  0xec   :  { %5848 = vmatprep.subr.bf16.mxu1 %v6327_v36  ;;  %v3019_v53 = vsub.f32 %v8203_v27, %v7971_v16 }
  0xed   :  { %5829 = vmatpush3.bf16.msra.mxu0 %v6326_v35 }
  0xee   :  { %5854 = vmatprep.subr.bf16.mxu0 %v6328_v40 }
  0xef   :  { %5849 = vmatpush3.bf16.msra.mxu1 %v6327_v36 }
  0xf0   :  { %5831 = vmatmul.mubr.bf16.vlgmr.msra.gmra.mrb[24].mxu0 %v1986_v47  ;;  %5874 = vmatprep.subr.bf16.mxu1 %v6329_v45  ;;  %v8081_v47 = vstv %s8048_s17 }
  0xf1   :  { %5855 = vmatpush3.bf16.msra.mxu0 %v6328_v40  ;;  %5870 = vmatprep.mubr.bf16.mxu0 %v2285_v49  ;;  %v2720_v0 = vsub.f32 %v8081_v47, %v7981_v20  ;;  %v2721_v17 = vsub.f32 %v8081_v47, %v8041_v42 }
  0xf2   :  { %5851 = vmatmul.mubr.bf16.vlgmr.msra.gmra.mrb[24].mxu1 %v2136_v50  ;;  %5856 = vmatprep.subr.bf16.mxu0 %v6330_v54  ;;  %v2719_v50 = vsub.f32 %v8081_v47, %v7971_v16 }
  0xf3   :  { %5875 = vmatpush3.bf16.msra.mxu1 %v6329_v45  ;;  %5890 = vmatprep.mubr.bf16.mxu1 %v2435_v59  ;;  %v2433_v45 = vadd.f32 0.5, %v2429_v24  ;;  %v2722_v24 = vsub.f32 %v8081_v47, %v8046_v26 }
  0xf4   :  { %5876 = vmatprep.subr.bf16.mxu1 %v6331_v61  ;;  %6604 = vtanh.f32 %v2719_v50 }
  0xf5   :  { %5857 = vmatpush3.bf16.msra.mxu0 %v6330_v54  ;;  %6606 = vtanh.f32 %v2720_v0  ;;  %v6343_v54 = vld [vmem:[%s9603_s2 + $0x38] sm:$0xff]  }
  0xf6   :  { %5858 = vmatprep.subr.bf16.mxu0 %v6332_v41 }
  0xf7   :  { %5877 = vmatpush3.bf16.msra.mxu1 %v6331_v61 }
  0xf8   :  { %5878 = vmatprep.subr.bf16.mxu1 %v6333_v63 }
  0xf9   :  { %5859 = vmatpush3.bf16.msra.mxu0 %v6332_v41  ;;  %v2434_v41 = vadd.f32 0.5, %v2430_v14 }
  0xfa   :  { %5860 = vmatprep.subr.bf16.mxu0 %v6334_v48 }
  0xfb   :  { %5879 = vmatpush3.bf16.msra.mxu1 %v6333_v63  ;;  %v2581_v63 = vadd.f32 0.5, %v2577_v30  ;;  %v2436_v4 = vpack.c.bf16 %v2434_v41, %v2433_v45  ;;  %v487_v30 = vld [vmem:[%s9604_s3 + $0x40] sm:$0xff] }
  0xfc   :  { %5880 = vmatprep.subr.bf16.mxu1 %v6335_v1 }
  0xfd   :  { %5861 = vmatpush3.bf16.msra.mxu0 %v6334_v48  ;;  %v2585_v3 = vpack.c.bf16 %v2582_v46, %v2581_v63  ;;  %v638_v46 = vld [vmem:[%s9604_s3 + $0x68] sm:$0xff] }
  0xfe   :  { %5862 = vmatprep.subr.bf16.mxu0 %v6336_v2  ;;  %v6605_v43 = vpop.eup %6604 }
  0xff   :  { %5881 = vmatpush3.bf16.msra.mxu1 %v6335_v1  ;;  %v6607_v13 = vpop.eup %6606  ;;  %v2727_v57 = vmul.f32 0.5, %v6605_v43  ;;  %v2286_v1 = vpack.c.bf16 %v2284_v21, %v2283_v33  ;;  %v6357_v21 = vld [vmem:[%s9603_s2 + $0x30] sm:$0xff]  }
 0x100   :  { %5882 = vmatprep.subr.bf16.mxu1 %v6337_v5  ;;  %v2728_v59 = vmul.f32 0.5, %v6607_v13  ;;  %v6355_v13 = vld [vmem:[%s9603_s2 + $0x28] sm:$0xff]  }
 0x101   :  { %5863 = vmatpush3.bf16.msra.mxu0 %v6336_v2  ;;  %v2731_v50 = vadd.f32 0.5, %v2727_v57  ;;  %v6345_v2 = vld [vmem:[%s9603_s2] sm:$0xff]   ;;  %v640_v57 = vld [vmem:[%s9604_s3 + $0x78] sm:$0xff] }
 0x102   :  { %5864 = vmatprep.subr.bf16.mxu0 %v6338_v8  ;;  %v2732_v0 = vadd.f32 0.5, %v2728_v59 }
 0x103   :  { %5883 = vmatpush3.bf16.msra.mxu1 %v6337_v5  ;;  %v5592_v23 = vpop.f32.mrb[0].mxu0  ;;  %v6346_v5 = vld [vmem:[%s9603_s2 + $0x8] sm:$0xff]  }
 0x104   :  { %v305_v7 = vadd.f32 %v5592_v23, %v188_v15  ;;  %v288_v10 = vpop.f32.mrb[1].mxu0  ;;  %5884 = vmatprep.subr.bf16.mxu1 %v6339_v9  ;;  %v5612_v22 = vpop.f32.mrb[0].mxu1  ;;  %v2735_v6 = vpack.c.bf16 %v2732_v0, %v2731_v50  ;;  %v8194_v15 = vstv %s5128_s18  ;;  %v6354_v23 = vld [vmem:[%s9603_s2 + $0x28] sm:$0xff]  }
 0x105   :  { %v303_v35 = vadd.f32 %v288_v10, %v186_v28  ;;  %v5593_v36 = vpop.f32.mrb[2].mxu0  ;;  %5865 = vmatpush3.bf16.msra.mxu0 %v6338_v8  ;;  %v456_v38 = vadd.f32 %v5612_v22, %v339_v32  ;;  %v439_v39 = vpop.f32.mrb[1].mxu1  ;;  %v2571_v8 = vsub.f32 %v8062_v60, %v8041_v42  ;;  %v6349_v60 = vld [vmem:[%s9603_s2 + $0x10] sm:$0xff]   ;;  %v2869_v28 = vsub.f32 %v8194_v15, %v7971_v16 }
 0x106   :  { %310 = vst.msk [vmem:[%s9604_s3 + $0x10] sm:$0xff] %vm32_vm0, %v305_v7  ;;  %v306_v40 = vadd.f32 %v5593_v36, %v189_v18  ;;  %v291_v51 = vpop.f32.mrb[3].mxu0  ;;  %5866 = vmatprep.subr.bf16.mxu0 %v6340_v55  ;;  %v454_v25 = vadd.f32 %v439_v39, %v337_v58  ;;  %v5613_v49 = vpop.f32.mrb[2].mxu1  ;;  %v2870_v47 = vsub.f32 %v8194_v15, %v7981_v20  ;;  %v6351_v18 = vld [vmem:[%s9603_s2 + $0x18] sm:$0xff]   ;;  %v6352_v58 = vld [vmem:[%s9603_s2 + $0x20] sm:$0xff]   ;;  %v489_v10 = vld [vmem:[%s9604_s3 + $0x50] sm:$0xff] }
 0x107   :  { %308 = vst.msk [vmem:[%s9604_s3] sm:$0xff] %vm32_vm0, %v303_v35  ;;  %5885 = vmatpush3.bf16.msra.mxu1 %v6339_v9  ;;  %v304_v52 = vadd.f32 %v291_v51, %v187_v11  ;;  %460 = vst.msk [vmem:[%s9604_s3 + $0x30] sm:$0xff] %vm32_vm0, %v456_v38  ;;  %v457_v61 = vadd.f32 %v5613_v49, %v340_v29  ;;  %v442_v62 = vpop.f32.mrb[3].mxu1  ;;  %v6347_v9 = vld [vmem:[%s9603_s2 + $0x8] sm:$0xff]   ;;  %6608 = vtanh.f32 %v2571_v8  ;;  %v6353_v11 = vld [vmem:[%s9603_s2 + $0x20] sm:$0xff]  }
 0x108   :  { %311 = vst.msk [vmem:[%s9604_s3 + $0x18] sm:$0xff] %vm32_vm0, %v306_v40  ;;  %5886 = vmatprep.subr.bf16.mxu1 %v6341_v37  ;;  %458 = vst.msk [vmem:[%s9604_s3 + $0x20] sm:$0xff] %vm32_vm0, %v454_v25  ;;  %v455_v48 = vadd.f32 %v442_v62, %v338_v56  ;;  %6610 = vtanh.f32 %v2572_v12  ;;  %v3020_v32 = vsub.f32 %v8203_v27, %v7981_v20  ;;  %v639_v36 = vld [vmem:[%s9604_s3 + $0x70] sm:$0xff]  ;;  %v490_v38 = vld [vmem:[%s9604_s3 + $0x58] sm:$0xff] }
 0x109   :  { %309 = vst.msk [vmem:[%s9604_s3 + $0x8] sm:$0xff] %vm32_vm0, %v304_v52  ;;  %5867 = vmatpush3.bf16.msra.mxu0 %v6340_v55  ;;  %461 = vst.msk [vmem:[%s9604_s3 + $0x38] sm:$0xff] %vm32_vm0, %v457_v61  ;;  %v6350_v55 = vld [vmem:[%s9603_s2 + $0x18] sm:$0xff]   ;;  %6612 = vtanh.f32 %v2721_v17  ;;  %v637_v56 = vld [vmem:[%s9604_s3 + $0x60] sm:$0xff] }
 0x10a   :  { %5868 = vmatprep.subr.bf16.mxu0 %v6342_v31  ;;  %459 = vst.msk [vmem:[%s9604_s3 + $0x28] sm:$0xff] %vm32_vm0, %v455_v48  ;;  %6614 = vtanh.f32 %v2722_v24  ;;  %v6358_v48 = vld [vmem:[%s9603_s2 + $0x38] sm:$0xff]  }
 0x10b   :  { %5887 = vmatpush3.bf16.msra.mxu1 %v6341_v37  ;;  %6616 = vtanh.f32 %v2869_v28 }
 0x10c   :  { %5888 = vmatprep.subr.bf16.mxu1 %v6343_v54  ;;  %6618 = vtanh.f32 %v2870_v47  ;;  %v6360_v47 = vld [vmem:[%s9603_s2] sm:$0xff]  }
 0x10d   :  { %5869 = vmatpush3.bf16.msra.mxu0 %v6342_v31  ;;  %6620 = vtanh.f32 %v3019_v53  ;;  %v488_v31 = vld [vmem:[%s9604_s3 + $0x48] sm:$0xff] }
 0x10e   :  { %5894 = vmatprep.subr.bf16.mxu0 %v6344_v44  ;;  %6622 = vtanh.f32 %v3020_v32 }
 0x10f   :  { %5889 = vmatpush3.bf16.msra.mxu1 %v6343_v54 }
 0x110   :  { %5871 = vmatmul.mubr.bf16.vlgmr.msra.gmra.mrb[28].mxu0 %v2286_v1  ;;  %5914 = vmatprep.subr.bf16.mxu1 %v6345_v2 }
 0x111   :  { %5895 = vmatpush3.bf16.msra.mxu0 %v6344_v44  ;;  %5910 = vmatprep.mubr.bf16.mxu0 %v2585_v3  ;;  %v6609_v37 = vpop.eup %6608 }
 0x112   :  { %5891 = vmatmul.mubr.bf16.vlgmr.msra.gmra.mrb[28].mxu1 %v2436_v4  ;;  %5896 = vmatprep.subr.bf16.mxu0 %v6346_v5  ;;  %v6611_v43 = vpop.eup %6610  ;;  %v2579_v45 = vmul.f32 0.5, %v6609_v37 }
 0x113   :  { %5915 = vmatpush3.bf16.msra.mxu1 %v6345_v2  ;;  %5930 = vmatprep.mubr.bf16.mxu1 %v2735_v6  ;;  %v6613_v29 = vpop.eup %6612  ;;  %v2580_v25 = vmul.f32 0.5, %v6611_v43  ;;  %v6362_v43 = vld [vmem:[%s9603_s2 + $0x8] sm:$0xff]  }
 0x114   :  { %5916 = vmatprep.subr.bf16.mxu1 %v6347_v9  ;;  %v6615_v33 = vpop.eup %6614  ;;  %v2729_v50 = vmul.f32 0.5, %v6613_v29  ;;  %v2583_v12 = vadd.f32 0.5, %v2579_v45  ;;  %v2871_v29 = vsub.f32 %v8194_v15, %v8041_v42 }
 0x115   :  { %5897 = vmatpush3.bf16.msra.mxu0 %v6346_v5  ;;  %v6617_v7 = vpop.eup %6616  ;;  %v2730_v0 = vmul.f32 0.5, %v6615_v33  ;;  %v2584_v17 = vadd.f32 0.5, %v2580_v25  ;;  %v6363_v33 = vld [vmem:[%s9603_s2 + $0x8] sm:$0xff]  }
 0x116   :  { %5898 = vmatprep.subr.bf16.mxu0 %v6348_v19  ;;  %v6619_v14 = vpop.eup %6618  ;;  %v2877_v59 = vmul.f32 0.5, %v6617_v7  ;;  %v2733_v28 = vadd.f32 0.5, %v2729_v50  ;;  %v8321_v7 = vstv %s8286_s25  ;;  %6624 = vtanh.f32 %v2871_v29  ;;  %v6371_v25 = vld [vmem:[%s9603_s2 + $0x28] sm:$0xff]   ;;  %v937_v50 = vld [vmem:[%s9604_s3 + $0xa0] sm:$0xff]  ;;  %v6375_v29 = vld [vmem:[%s9603_s2 + $0x38] sm:$0xff]  }
 0x117   :  { %5917 = vmatpush3.bf16.msra.mxu1 %v6347_v9  ;;  %v6621_v22 = vpop.eup %6620  ;;  %v2878_v61 = vmul.f32 0.5, %v6619_v14  ;;  %v6359_v9 = vld [vmem:[%s9603_s2 + $0x38] sm:$0xff]   ;;  %v6364_v14 = vld [vmem:[%s9603_s2 + $0x10] sm:$0xff]  }
 0x118   :  { %5918 = vmatprep.subr.bf16.mxu1 %v6349_v60  ;;  %v6623_v39 = vpop.eup %6622  ;;  %v3027_v4 = vmul.f32 0.5, %v6621_v22  ;;  %v2881_v24 = vadd.f32 0.5, %v2877_v59  ;;  %v6365_v22 = vld [vmem:[%s9603_s2 + $0x10] sm:$0xff]  }
 0x119   :  { %5899 = vmatpush3.bf16.msra.mxu0 %v6348_v19  ;;  %v3028_v5 = vmul.f32 0.5, %v6623_v39  ;;  %v6367_v39 = vld [vmem:[%s9603_s2 + $0x18] sm:$0xff]   ;;  %v6372_v59 = vld [vmem:[%s9603_s2 + $0x30] sm:$0xff]  }
 0x11a   :  { %5900 = vmatprep.subr.bf16.mxu0 %v6350_v55  ;;  %v3031_v53 = vadd.f32 0.5, %v3027_v4 }
 0x11b   :  { %5919 = vmatpush3.bf16.msra.mxu1 %v6349_v60  ;;  %v2882_v60 = vadd.f32 0.5, %v2878_v61  ;;  %v3032_v32 = vadd.f32 0.5, %v3028_v5 }
 0x11c   :  { %5920 = vmatprep.subr.bf16.mxu1 %v6351_v18 }
 0x11d   :  { %5901 = vmatpush3.bf16.msra.mxu0 %v6350_v55  ;;  %v2734_v55 = vadd.f32 0.5, %v2730_v0  ;;  %v788_v0 = vld [vmem:[%s9604_s3 + $0x88] sm:$0xff] }
 0x11e   :  { %5902 = vmatprep.subr.bf16.mxu0 %v6352_v58 }
 0x11f   :  { %5921 = vmatpush3.bf16.msra.mxu1 %v6351_v18  ;;  %v2586_v18 = vpack.c.bf16 %v2584_v17, %v2583_v12  ;;  %v2736_v37 = vpack.c.bf16 %v2734_v55, %v2733_v28  ;;  %v938_v28 = vld [vmem:[%s9604_s3 + $0xa8] sm:$0xff]  ;;  %v6374_v55 = vld [vmem:[%s9603_s2 + $0x38] sm:$0xff]  }
 0x120   :  { %5922 = vmatprep.subr.bf16.mxu1 %v6353_v11 }
 0x121   :  { %5903 = vmatpush3.bf16.msra.mxu0 %v6352_v58  ;;  %v6361_v58 = vld [vmem:[%s9603_s2] sm:$0xff]  }
 0x122   :  { %5904 = vmatprep.subr.bf16.mxu0 %v6354_v23 }
 0x123   :  { %5923 = vmatpush3.bf16.msra.mxu1 %v6353_v11  ;;  %v5632_v35 = vpop.f32.mrb[4].mxu0  ;;  %v2885_v11 = vpack.c.bf16 %v2882_v60, %v2881_v24 }
 0x124   :  { %v606_v40 = vadd.f32 %v5632_v35, %v489_v10  ;;  %v589_v51 = vpop.f32.mrb[5].mxu0  ;;  %5924 = vmatprep.subr.bf16.mxu1 %v6355_v13  ;;  %v3021_v10 = vsub.f32 %v8203_v27, %v8041_v42  ;;  %v3170_v35 = vsub.f32 %v8321_v7, %v7981_v20 }
 0x125   :  { %v5652_v49 = vpop.f32.mrb[4].mxu1  ;;  %v604_v52 = vadd.f32 %v589_v51, %v487_v30  ;;  %v5633_v54 = vpop.f32.mrb[6].mxu0  ;;  %5905 = vmatpush3.bf16.msra.mxu0 %v6354_v23  ;;  %v3035_v23 = vpack.c.bf16 %v3032_v32, %v3031_v53  ;;  %v3022_v30 = vsub.f32 %v8203_v27, %v8046_v26  ;;  %v6728_v27 = vld [vmem:[%s9602_s1] sm:$0xff] }
 0x126   :  { %610 = vst.msk [vmem:[%s9604_s3 + $0x50] sm:$0xff] %vm32_vm0, %v606_v40  ;;  %v756_v62 = vadd.f32 %v5652_v49, %v639_v36  ;;  %v739_v41 = vpop.f32.mrb[5].mxu1  ;;  %v607_v44 = vadd.f32 %v5633_v54, %v490_v38  ;;  %v592_v63 = vpop.f32.mrb[7].mxu0  ;;  %5906 = vmatprep.subr.bf16.mxu0 %v6356_v34  ;;  %v6368_v40 = vld [vmem:[%s9603_s2 + $0x20] sm:$0xff]  }
 0x127   :  { %608 = vst.msk [vmem:[%s9604_s3 + $0x40] sm:$0xff] %vm32_vm0, %v604_v52  ;;  %v754_v1 = vadd.f32 %v739_v41, %v637_v56  ;;  %v5653_v2 = vpop.f32.mrb[6].mxu1  ;;  %5925 = vmatpush3.bf16.msra.mxu1 %v6355_v13  ;;  %v605_v3 = vadd.f32 %v592_v63, %v488_v31  ;;  %v2872_v13 = vsub.f32 %v8194_v15, %v8046_v26  ;;  %v6625_v51 = vpop.eup %6624  ;;  %v6370_v31 = vld [vmem:[%s9603_s2 + $0x28] sm:$0xff]   ;;  %v789_v52 = vld [vmem:[%s9604_s3 + $0x90] sm:$0xff] }
 0x128   :  { %760 = vst.msk [vmem:[%s9604_s3 + $0x70] sm:$0xff] %vm32_vm0, %v756_v62  ;;  %611 = vst.msk [vmem:[%s9604_s3 + $0x58] sm:$0xff] %vm32_vm0, %v607_v44  ;;  %v757_v6 = vadd.f32 %v5653_v2, %v640_v57  ;;  %v742_v8 = vpop.f32.mrb[7].mxu1  ;;  %5926 = vmatprep.subr.bf16.mxu1 %v6357_v21  ;;  %v3169_v15 = vsub.f32 %v8321_v7, %v7971_v16  ;;  %v6366_v16 = vld [vmem:[%s9603_s2 + $0x18] sm:$0xff]   ;;  %v787_v57 = vld [vmem:[%s9604_s3 + $0x80] sm:$0xff]  ;;  %v2879_v2 = vmul.f32 0.5, %v6625_v51 }
 0x129   :  { %758 = vst.msk [vmem:[%s9604_s3 + $0x60] sm:$0xff] %vm32_vm0, %v754_v1  ;;  %609 = vst.msk [vmem:[%s9604_s3 + $0x48] sm:$0xff] %vm32_vm0, %v605_v3  ;;  %v755_v19 = vadd.f32 %v742_v8, %v638_v46  ;;  %5907 = vmatpush3.bf16.msra.mxu0 %v6356_v34  ;;  %v8330_v34 = vstv %s5155_s6  ;;  %6626 = vtanh.f32 %v2872_v13  ;;  %v939_v41 = vld [vmem:[%s9604_s3 + $0xb0] sm:$0xff] }
 0x12a   :  { %761 = vst.msk [vmem:[%s9604_s3 + $0x78] sm:$0xff] %vm32_vm0, %v757_v6  ;;  %5908 = vmatprep.subr.bf16.mxu0 %v6358_v48  ;;  %6628 = vtanh.f32 %v3021_v10  ;;  %v3319_v36 = vsub.f32 %v8330_v34, %v6728_v27  ;;  %v3320_v38 = vsub.f32 %v8330_v34, %v7981_v20  ;;  %v6369_v20 = vld [vmem:[%s9603_s2 + $0x20] sm:$0xff]   ;;  %v790_v44 = vld [vmem:[%s9604_s3 + $0x98] sm:$0xff]  ;;  %v6373_v1 = vld [vmem:[%s9603_s2 + $0x30] sm:$0xff]  }
 0x12b   :  { %759 = vst.msk [vmem:[%s9604_s3 + $0x68] sm:$0xff] %vm32_vm0, %v755_v19  ;;  %5927 = vmatpush3.bf16.msra.mxu1 %v6357_v21  ;;  %6630 = vtanh.f32 %v3022_v30  ;;  %v940_v8 = vld [vmem:[%s9604_s3 + $0xb8] sm:$0xff] }
 0x12c   :  { %5928 = vmatprep.subr.bf16.mxu1 %v6359_v9  ;;  %6632 = vtanh.f32 %v3169_v15 }
 0x12d   :  { %5909 = vmatpush3.bf16.msra.mxu0 %v6358_v48  ;;  %6634 = vtanh.f32 %v3170_v35  ;;  %v6376_v35 = vld [vmem:[%s9603_s2] sm:$0xff]  }
 0x12e   :  { %5934 = vmatprep.subr.bf16.mxu0 %v6360_v47  ;;  %6636 = vtanh.f32 %v3319_v36 }
 0x12f   :  { %5929 = vmatpush3.bf16.msra.mxu1 %v6359_v9  ;;  %6638 = vtanh.f32 %v3320_v38  ;;  %v6377_v38 = vld [vmem:[%s9603_s2] sm:$0xff]  }
 0x130   :  { %5911 = vmatmul.mubr.bf16.vlgmr.msra.gmra.mrb[32].mxu0 %v2586_v18  ;;  %5954 = vmatprep.subr.bf16.mxu1 %v6361_v58 }
 0x131   :  { %5935 = vmatpush3.bf16.msra.mxu0 %v6360_v47  ;;  %5950 = vmatprep.mubr.bf16.mxu0 %v2885_v11 }
 0x132   :  { %5931 = vmatmul.mubr.bf16.vlgmr.msra.gmra.mrb[32].mxu1 %v2736_v37  ;;  %5936 = vmatprep.subr.bf16.mxu0 %v6362_v43 }
 0x133   :  { %5955 = vmatpush3.bf16.msra.mxu1 %v6361_v58  ;;  %5970 = vmatprep.mubr.bf16.mxu1 %v3035_v23  ;;  %v6627_v56 = vpop.eup %6626 }
 0x134   :  { %5956 = vmatprep.subr.bf16.mxu1 %v6363_v33  ;;  %v6629_v21 = vpop.eup %6628  ;;  %v2880_v3 = vmul.f32 0.5, %v6627_v56  ;;  %v3171_v56 = vsub.f32 %v8321_v7, %v8041_v42  ;;  %v6729_v42 = vld [vmem:[%s9602_s1 + $0x10] sm:$0xff] }
 0x135   :  { %5937 = vmatpush3.bf16.msra.mxu0 %v6362_v43  ;;  %v6631_v45 = vpop.eup %6630  ;;  %v3029_v47 = vmul.f32 0.5, %v6629_v21  ;;  %v3172_v21 = vsub.f32 %v8321_v7, %v8046_v26  ;;  %v6380_v26 = vld [vmem:[%s9603_s2 + $0x10] sm:$0xff]   ;;  %v6730_v7 = vld [vmem:[%s9602_s1 + $0x18] sm:$0xff] }
 0x136   :  { %5938 = vmatprep.subr.bf16.mxu0 %v6364_v14  ;;  %v6633_v49 = vpop.eup %6632  ;;  %v3030_v53 = vmul.f32 0.5, %v6631_v45  ;;  %v2884_v13 = vadd.f32 0.5, %v2880_v3  ;;  %v8454_v45 = vld [vmem:[%s9602_s1] sm:$0xff]  ;;  %6640 = vtanh.f32 %v3171_v56 }
 0x137   :  { %5957 = vmatpush3.bf16.msra.mxu1 %v6363_v33  ;;  %v6635_v54 = vpop.eup %6634  ;;  %v3177_v9 = vmul.f32 0.5, %v6633_v49  ;;  %v2883_v33 = vadd.f32 0.5, %v2879_v2  ;;  %v3033_v15 = vadd.f32 0.5, %v3029_v47  ;;  %v3321_v49 = vsub.f32 %v8330_v34, %v6729_v42 }
 0x138   :  { %5958 = vmatprep.subr.bf16.mxu1 %v6365_v22  ;;  %v6637_v61 = vpop.eup %6636  ;;  %v3178_v12 = vmul.f32 0.5, %v6635_v54  ;;  %v3322_v54 = vsub.f32 %v8330_v34, %v6730_v7  ;;  %6642 = vtanh.f32 %v3172_v21 }
 0x139   :  { %5939 = vmatpush3.bf16.msra.mxu0 %v6364_v14  ;;  %v6639_v63 = vpop.eup %6638  ;;  %v3327_v11 = vmul.f32 0.5, %v6637_v61  ;;  %v3181_v14 = vadd.f32 0.5, %v3177_v9  ;;  %v6381_v61 = vld [vmem:[%s9603_s2 + $0x10] sm:$0xff]   ;;  %6644 = vtanh.f32 %v3321_v49  ;;  %v1087_v9 = vld [vmem:[%s9604_s3 + $0xc0] sm:$0xff] }
 0x13a   :  { %5940 = vmatprep.subr.bf16.mxu0 %v6366_v16  ;;  %v3328_v37 = vmul.f32 0.5, %v6639_v63  ;;  %v3182_v30 = vadd.f32 0.5, %v3178_v12  ;;  %6646 = vtanh.f32 %v3322_v54  ;;  %v6383_v63 = vld [vmem:[%s9603_s2 + $0x18] sm:$0xff]   ;;  %v6388_v12 = vld [vmem:[%s9603_s2 + $0x30] sm:$0xff]  }
 0x13b   :  { %5959 = vmatpush3.bf16.msra.mxu1 %v6365_v22  ;;  %v3034_v22 = vadd.f32 0.5, %v3030_v53  ;;  %v3331_v27 = vadd.f32 0.5, %v3327_v11  ;;  %v1237_v53 = vld [vmem:[%s9604_s3 + $0xe0] sm:$0xff] }
 0x13c   :  { %5960 = vmatprep.subr.bf16.mxu1 %v6367_v39  ;;  %v3332_v36 = vadd.f32 0.5, %v3328_v37 }
 0x13d   :  { %5941 = vmatpush3.bf16.msra.mxu0 %v6366_v16  ;;  %v2886_v16 = vpack.c.bf16 %v2884_v13, %v2883_v33 }
 0x13e   :  { %5942 = vmatprep.subr.bf16.mxu0 %v6368_v40  ;;  %v3335_v51 = vpack.c.bf16 %v3332_v36, %v3331_v27 }
 0x13f   :  { %5961 = vmatpush3.bf16.msra.mxu1 %v6367_v39  ;;  %v3185_v39 = vpack.c.bf16 %v3182_v30, %v3181_v14 }
 0x140   :  { %5962 = vmatprep.subr.bf16.mxu1 %v6369_v20 }
 0x141   :  { %5943 = vmatpush3.bf16.msra.mxu0 %v6368_v40  ;;  %v3036_v40 = vpack.c.bf16 %v3034_v22, %v3033_v15  ;;  %v1238_v22 = vld [vmem:[%s9604_s3 + $0xe8] sm:$0xff] }
 0x142   :  { %5944 = vmatprep.subr.bf16.mxu0 %v6370_v31 }
 0x143   :  { %5963 = vmatpush3.bf16.msra.mxu1 %v6369_v20  ;;  %v5672_v62 = vpop.f32.mrb[8].mxu0  ;;  %v6378_v20 = vld [vmem:[%s9603_s2 + $0x8] sm:$0xff]  }
 0x144   :  { %v906_v46 = vadd.f32 %v5672_v62, %v789_v52  ;;  %v889_v48 = vpop.f32.mrb[9].mxu0  ;;  %5964 = vmatprep.subr.bf16.mxu1 %v6371_v25  ;;  %v8466_v52 = vld [vmem:[%s9602_s1 + $0x8] sm:$0xff] }
 0x145   :  { %v5692_v4 = vpop.f32.mrb[8].mxu1  ;;  %v904_v5 = vadd.f32 %v889_v48, %v787_v57  ;;  %v5673_v6 = vpop.f32.mrb[10].mxu0  ;;  %5945 = vmatpush3.bf16.msra.mxu0 %v6370_v31  ;;  %v6379_v31 = vld [vmem:[%s9603_s2 + $0x8] sm:$0xff]   ;;  %v8476_v57 = vstv %s8432_s19  ;;  %v6385_v48 = vld [vmem:[%s9603_s2 + $0x20] sm:$0xff]  }
 0x146   :  { %910 = vst.msk [vmem:[%s9604_s3 + $0x90] sm:$0xff] %vm32_vm0, %v906_v46  ;;  %v1056_v17 = vadd.f32 %v5692_v4, %v939_v41  ;;  %v1039_v19 = vpop.f32.mrb[9].mxu1  ;;  %v907_v24 = vadd.f32 %v5673_v6, %v790_v44  ;;  %v892_v60 = vpop.f32.mrb[11].mxu0  ;;  %5946 = vmatprep.subr.bf16.mxu0 %v6372_v59  ;;  %v3619_v34 = vsub.f32 %v8476_v57, %v8454_v45  ;;  %v6382_v41 = vld [vmem:[%s9603_s2 + $0x18] sm:$0xff]   ;;  %v6384_v46 = vld [vmem:[%s9603_s2 + $0x20] sm:$0xff]   ;;  %v6387_v4 = vld [vmem:[%s9603_s2 + $0x28] sm:$0xff]  }
 0x147   :  { %908 = vst.msk [vmem:[%s9604_s3 + $0x80] sm:$0xff] %vm32_vm0, %v904_v5  ;;  %v1054_v32 = vadd.f32 %v1039_v19, %v937_v50  ;;  %v5693_v18 = vpop.f32.mrb[10].mxu1  ;;  %5965 = vmatpush3.bf16.msra.mxu1 %v6371_v25  ;;  %v905_v58 = vadd.f32 %v892_v60, %v788_v0  ;;  %v8457_v25 = vstv %s8415_s10  ;;  %v3620_v44 = vsub.f32 %v8476_v57, %v8466_v52  ;;  %v6641_v50 = vpop.eup %6640  ;;  %v1089_v6 = vld [vmem:[%s9604_s3 + $0xd0] sm:$0xff]  ;;  %v1090_v60 = vld [vmem:[%s9604_s3 + $0xd8] sm:$0xff] }
 0x148   :  { %1060 = vst.msk [vmem:[%s9604_s3 + $0xb0] sm:$0xff] %vm32_vm0, %v1056_v17  ;;  %911 = vst.msk [vmem:[%s9604_s3 + $0x98] sm:$0xff] %vm32_vm0, %v907_v24  ;;  %v1057_v43 = vadd.f32 %v5693_v18, %v940_v8  ;;  %v1042_v23 = vpop.f32.mrb[11].mxu1  ;;  %5966 = vmatprep.subr.bf16.mxu1 %v6373_v1  ;;  %v3470_v62 = vsub.f32 %v8457_v25, %v8466_v52  ;;  %v6643_v0 = vpop.eup %6642  ;;  %v1239_v24 = vld [vmem:[%s9604_s3 + $0xf0] sm:$0xff] }
 0x149   :  { %1058 = vst.msk [vmem:[%s9604_s3 + $0xa0] sm:$0xff] %vm32_vm0, %v1054_v32  ;;  %909 = vst.msk [vmem:[%s9604_s3 + $0x88] sm:$0xff] %vm32_vm0, %v905_v58  ;;  %v1055_v10 = vadd.f32 %v1042_v23, %v938_v28  ;;  %5947 = vmatpush3.bf16.msra.mxu0 %v6372_v59  ;;  %v3469_v59 = vsub.f32 %v8457_v25, %v8454_v45  ;;  %v6645_v2 = vpop.eup %6644  ;;  %v1088_v32 = vld [vmem:[%s9604_s3 + $0xc8] sm:$0xff]  ;;  %v6389_v18 = vld [vmem:[%s9603_s2 + $0x30] sm:$0xff]   ;;  %v3179_v58 = vmul.f32 0.5, %v6641_v50  ;;  %v3180_v11 = vmul.f32 0.5, %v6643_v0 }
 0x14a   :  { %1061 = vst.msk [vmem:[%s9604_s3 + $0xb8] sm:$0xff] %vm32_vm0, %v1057_v43  ;;  %5948 = vmatprep.subr.bf16.mxu0 %v6374_v55  ;;  %v6647_v3 = vpop.eup %6646  ;;  %v3329_v27 = vmul.f32 0.5, %v6645_v2  ;;  %v6394_v0 = vld [vmem:[%s9603_s2 + $0x8] sm:$0xff]  }
 0x14b   :  { %1059 = vst.msk [vmem:[%s9604_s3 + $0xa8] sm:$0xff] %vm32_vm0, %v1055_v10  ;;  %5967 = vmatpush3.bf16.msra.mxu1 %v6373_v1  ;;  %6648 = vtanh.f32 %v3469_v59  ;;  %v6386_v1 = vld [vmem:[%s9603_s2 + $0x28] sm:$0xff]   ;;  %v3330_v36 = vmul.f32 0.5, %v6647_v3  ;;  %v3183_v21 = vadd.f32 0.5, %v3179_v58  ;;  %v3184_v42 = vadd.f32 0.5, %v3180_v11 }
 0x14c   :  { %5968 = vmatprep.subr.bf16.mxu1 %v6375_v29  ;;  %6650 = vtanh.f32 %v3470_v62  ;;  %v3333_v54 = vadd.f32 0.5, %v3329_v27  ;;  %v6395_v3 = vld [vmem:[%s9603_s2 + $0x8] sm:$0xff]  }
 0x14d   :  { %5949 = vmatpush3.bf16.msra.mxu0 %v6374_v55  ;;  %6652 = vtanh.f32 %v3619_v34  ;;  %v3334_v59 = vadd.f32 0.5, %v3330_v36  ;;  %v1537_v36 = vld [vmem:[%s9604_s3 + $0x120] sm:$0xff] }
 0x14e   :  { %5974 = vmatprep.subr.bf16.mxu0 %v6376_v35  ;;  %6654 = vtanh.f32 %v3620_v44  ;;  %v6393_v44 = vld [vmem:[%s9603_s2] sm:$0xff]  }
 0x14f   :  { %5969 = vmatpush3.bf16.msra.mxu1 %v6375_v29  ;;  %v1240_v29 = vld [vmem:[%s9604_s3 + $0xf8] sm:$0xff]  ;;  %v3336_v50 = vpack.c.bf16 %v3334_v59, %v3333_v54  ;;  %v1538_v59 = vld [vmem:[%s9604_s3 + $0x128] sm:$0xff] }
 0x150   :  { %5951 = vmatmul.mubr.bf16.vlgmr.msra.gmra.mrb[36].mxu0 %v2886_v16  ;;  %5994 = vmatprep.subr.bf16.mxu1 %v6377_v38 }
 0x151   :  { %5975 = vmatpush3.bf16.msra.mxu0 %v6376_v35  ;;  %5990 = vmatprep.mubr.bf16.mxu0 %v3185_v39  ;;  %v6390_v35 = vld [vmem:[%s9603_s2 + $0x38] sm:$0xff]  }
 0x152   :  { %5971 = vmatmul.mubr.bf16.vlgmr.msra.gmra.mrb[36].mxu1 %v3036_v40  ;;  %5976 = vmatprep.subr.bf16.mxu0 %v6378_v20 }
 0x153   :  { %5995 = vmatpush3.bf16.msra.mxu1 %v6377_v38  ;;  %6010 = vmatprep.mubr.bf16.mxu1 %v3335_v51 }
 0x154   :  { %5996 = vmatprep.subr.bf16.mxu1 %v6379_v31 }
 0x155   :  { %5977 = vmatpush3.bf16.msra.mxu0 %v6378_v20  ;;  %v6649_v5 = vpop.eup %6648 }
 0x156   :  { %5978 = vmatprep.subr.bf16.mxu0 %v6380_v26  ;;  %v6651_v8 = vpop.eup %6650  ;;  %v3477_v33 = vmul.f32 0.5, %v6649_v5  ;;  %v8604_v5 = vstv %s8559_s27 }
 0x157   :  { %5997 = vmatpush3.bf16.msra.mxu1 %v6379_v31  ;;  %v6653_v17 = vpop.eup %6652  ;;  %v3478_v13 = vmul.f32 0.5, %v6651_v8  ;;  %v6391_v31 = vld [vmem:[%s9603_s2 + $0x38] sm:$0xff]   ;;  %v6396_v8 = vld [vmem:[%s9603_s2 + $0x10] sm:$0xff]  }
 0x158   :  { %5998 = vmatprep.subr.bf16.mxu1 %v6381_v61  ;;  %v6655_v28 = vpop.eup %6654  ;;  %v3627_v40 = vmul.f32 0.5, %v6653_v17  ;;  %v6397_v17 = vld [vmem:[%s9603_s2 + $0x10] sm:$0xff]  }
 0x159   :  { %5979 = vmatpush3.bf16.msra.mxu0 %v6380_v26  ;;  %v3628_v20 = vmul.f32 0.5, %v6655_v28  ;;  %v3481_v26 = vadd.f32 0.5, %v3477_v33  ;;  %v3482_v7 = vadd.f32 0.5, %v3478_v13  ;;  %v6399_v28 = vld [vmem:[%s9603_s2 + $0x18] sm:$0xff]   ;;  %v1387_v33 = vld [vmem:[%s9604_s3 + $0x100] sm:$0xff]  ;;  %v6404_v13 = vld [vmem:[%s9603_s2 + $0x30] sm:$0xff]  }
 0x15a   :  { %5980 = vmatprep.subr.bf16.mxu0 %v6382_v41  ;;  %v3631_v62 = vadd.f32 0.5, %v3627_v40 }
 0x15b   :  { %5999 = vmatpush3.bf16.msra.mxu1 %v6381_v61  ;;  %v6392_v61 = vld [vmem:[%s9603_s2] sm:$0xff]   ;;  %v3632_v34 = vadd.f32 0.5, %v3628_v20 }
 0x15c   :  { %6000 = vmatprep.subr.bf16.mxu1 %v6383_v63 }
 0x15d   :  { %5981 = vmatpush3.bf16.msra.mxu0 %v6382_v41  ;;  %v3186_v41 = vpack.c.bf16 %v3184_v42, %v3183_v21 }
 0x15e   :  { %5982 = vmatprep.subr.bf16.mxu0 %v6384_v46 }
 0x15f   :  { %6001 = vmatpush3.bf16.msra.mxu1 %v6383_v63  ;;  %v8586_v63 = vld [vmem:[%s9602_s1 + $0x10] sm:$0xff] }
 0x160   :  { %6002 = vmatprep.subr.bf16.mxu1 %v6385_v48  ;;  %v3471_v2 = vsub.f32 %v8457_v25, %v8586_v63 }
 0x161   :  { %5983 = vmatpush3.bf16.msra.mxu0 %v6384_v46  ;;  %v3485_v46 = vpack.c.bf16 %v3482_v7, %v3481_v26 }
 0x162   :  { %5984 = vmatprep.subr.bf16.mxu0 %v6386_v1  ;;  %6656 = vtanh.f32 %v3471_v2 }
 0x163   :  { %6003 = vmatpush3.bf16.msra.mxu1 %v6385_v48  ;;  %v5712_v19 = vpop.f32.mrb[12].mxu0  ;;  %v8591_v48 = vld [vmem:[%s9602_s1 + $0x18] sm:$0xff] }
 0x164   :  { %v1206_v55 = vadd.f32 %v5712_v19, %v1089_v6  ;;  %v1189_v47 = vpop.f32.mrb[13].mxu0  ;;  %6004 = vmatprep.subr.bf16.mxu1 %v6387_v4  ;;  %v3621_v6 = vsub.f32 %v8476_v57, %v8586_v63  ;;  %v3770_v19 = vsub.f32 %v8604_v5, %v8466_v52 }
 0x165   :  { %v5732_v37 = vpop.f32.mrb[12].mxu1  ;;  %v1204_v43 = vadd.f32 %v1189_v47, %v1087_v9  ;;  %v5713_v23 = vpop.f32.mrb[14].mxu0  ;;  %5985 = vmatpush3.bf16.msra.mxu0 %v6386_v1  ;;  %v3635_v1 = vpack.c.bf16 %v3632_v34, %v3631_v62  ;;  %v3622_v9 = vsub.f32 %v8476_v57, %v8591_v48  ;;  %v6401_v47 = vld [vmem:[%s9603_s2 + $0x20] sm:$0xff]  }
 0x166   :  { %1210 = vst.msk [vmem:[%s9604_s3 + $0xd0] sm:$0xff] %vm32_vm0, %v1206_v55  ;;  %v1356_v10 = vadd.f32 %v5732_v37, %v1239_v24  ;;  %v1339_v14 = vpop.f32.mrb[13].mxu1  ;;  %v1207_v30 = vadd.f32 %v5713_v23, %v1090_v60  ;;  %v1192_v15 = vpop.f32.mrb[15].mxu0  ;;  %5986 = vmatprep.subr.bf16.mxu0 %v6388_v12  ;;  %v6398_v24 = vld [vmem:[%s9603_s2 + $0x18] sm:$0xff]   ;;  %v6400_v55 = vld [vmem:[%s9603_s2 + $0x20] sm:$0xff]   ;;  %v6403_v37 = vld [vmem:[%s9603_s2 + $0x28] sm:$0xff]  }
 0x167   :  { %1208 = vst.msk [vmem:[%s9604_s3 + $0xc0] sm:$0xff] %vm32_vm0, %v1204_v43  ;;  %v1354_v16 = vadd.f32 %v1339_v14, %v1237_v53  ;;  %v5733_v38 = vpop.f32.mrb[14].mxu1  ;;  %6005 = vmatpush3.bf16.msra.mxu1 %v6387_v4  ;;  %v1205_v39 = vadd.f32 %v1192_v15, %v1088_v32  ;;  %v3472_v4 = vsub.f32 %v8457_v25, %v8591_v48  ;;  %v1389_v23 = vld [vmem:[%s9604_s3 + $0x110] sm:$0xff]  ;;  %v1390_v15 = vld [vmem:[%s9604_s3 + $0x118] sm:$0xff] }
 0x168   :  { %1360 = vst.msk [vmem:[%s9604_s3 + $0xf0] sm:$0xff] %vm32_vm0, %v1356_v10  ;;  %1211 = vst.msk [vmem:[%s9604_s3 + $0xd8] sm:$0xff] %vm32_vm0, %v1207_v30  ;;  %v1357_v51 = vadd.f32 %v5733_v38, %v1240_v29  ;;  %v1342_v56 = vpop.f32.mrb[15].mxu1  ;;  %6006 = vmatprep.subr.bf16.mxu1 %v6389_v18  ;;  %v3769_v25 = vsub.f32 %v8604_v5, %v8454_v45  ;;  %v1539_v30 = vld [vmem:[%s9604_s3 + $0x130] sm:$0xff] }
 0x169   :  { %1358 = vst.msk [vmem:[%s9604_s3 + $0xe0] sm:$0xff] %vm32_vm0, %v1354_v16  ;;  %1209 = vst.msk [vmem:[%s9604_s3 + $0xc8] sm:$0xff] %vm32_vm0, %v1205_v39  ;;  %v1355_v49 = vadd.f32 %v1342_v56, %v1238_v22  ;;  %5987 = vmatpush3.bf16.msra.mxu0 %v6388_v12  ;;  %v8613_v12 = vstv %s5191_s9  ;;  %6658 = vtanh.f32 %v3472_v4  ;;  %v1388_v16 = vld [vmem:[%s9604_s3 + $0x108] sm:$0xff] }
 0x16a   :  { %1361 = vst.msk [vmem:[%s9604_s3 + $0xf8] sm:$0xff] %vm32_vm0, %v1357_v51  ;;  %5988 = vmatprep.subr.bf16.mxu0 %v6390_v35  ;;  %6660 = vtanh.f32 %v3621_v6  ;;  %v3919_v57 = vsub.f32 %v8613_v12, %v8454_v45  ;;  %v3920_v60 = vsub.f32 %v8613_v12, %v8466_v52  ;;  %v6405_v38 = vld [vmem:[%s9603_s2 + $0x30] sm:$0xff]  }
 0x16b   :  { %1359 = vst.msk [vmem:[%s9604_s3 + $0xe8] sm:$0xff] %vm32_vm0, %v1355_v49  ;;  %6007 = vmatpush3.bf16.msra.mxu1 %v6389_v18  ;;  %6662 = vtanh.f32 %v3622_v9  ;;  %v6402_v18 = vld [vmem:[%s9603_s2 + $0x28] sm:$0xff]  }
 0x16c   :  { %6008 = vmatprep.subr.bf16.mxu1 %v6391_v31  ;;  %6664 = vtanh.f32 %v3769_v25  ;;  %v6657_v53 = vpop.eup %6656 }
 0x16d   :  { %5989 = vmatpush3.bf16.msra.mxu0 %v6390_v35  ;;  %6666 = vtanh.f32 %v3770_v19  ;;  %v3479_v39 = vmul.f32 0.5, %v6657_v53 }
 0x16e   :  { %6014 = vmatprep.subr.bf16.mxu0 %v6392_v61  ;;  %6668 = vtanh.f32 %v3919_v57  ;;  %v6408_v57 = vld [vmem:[%s9603_s2] sm:$0xff]  }
 0x16f   :  { %6009 = vmatpush3.bf16.msra.mxu1 %v6391_v31  ;;  %6670 = vtanh.f32 %v3920_v60  ;;  %v1540_v31 = vld [vmem:[%s9604_s3 + $0x138] sm:$0xff]  ;;  %v3483_v4 = vadd.f32 0.5, %v3479_v39 }
 0x170   :  { %5991 = vmatmul.mubr.bf16.vlgmr.msra.gmra.mrb[40].mxu0 %v3186_v41  ;;  %6034 = vmatprep.subr.bf16.mxu1 %v6393_v44 }
 0x171   :  { %6015 = vmatpush3.bf16.msra.mxu0 %v6392_v61  ;;  %6030 = vmatprep.mubr.bf16.mxu0 %v3485_v46  ;;  %v6406_v61 = vld [vmem:[%s9603_s2 + $0x38] sm:$0xff]  }
 0x172   :  { %6011 = vmatmul.mubr.bf16.vlgmr.msra.gmra.mrb[40].mxu1 %v3336_v50  ;;  %6016 = vmatprep.subr.bf16.mxu0 %v6394_v0 }
 0x173   :  { %6035 = vmatpush3.bf16.msra.mxu1 %v6393_v44  ;;  %6050 = vmatprep.mubr.bf16.mxu1 %v3635_v1  ;;  %v6659_v32 = vpop.eup %6658 }
 0x174   :  { %6036 = vmatprep.subr.bf16.mxu1 %v6395_v3  ;;  %v6661_v58 = vpop.eup %6660  ;;  %v3480_v40 = vmul.f32 0.5, %v6659_v32  ;;  %v6410_v32 = vld [vmem:[%s9603_s2 + $0x8] sm:$0xff]  }
 0x175   :  { %6017 = vmatpush3.bf16.msra.mxu0 %v6394_v0  ;;  %v6663_v11 = vpop.eup %6662  ;;  %v3629_v62 = vmul.f32 0.5, %v6661_v58  ;;  %v3771_v58 = vsub.f32 %v8604_v5, %v8586_v63 }
 0x176   :  { %6018 = vmatprep.subr.bf16.mxu0 %v6396_v8  ;;  %v6665_v43 = vpop.eup %6664  ;;  %v3630_v34 = vmul.f32 0.5, %v6663_v11  ;;  %v3484_v6 = vadd.f32 0.5, %v3480_v40  ;;  %v6411_v11 = vld [vmem:[%s9603_s2 + $0x8] sm:$0xff]  }
 0x177   :  { %6037 = vmatpush3.bf16.msra.mxu1 %v6395_v3  ;;  %v6667_v29 = vpop.eup %6666  ;;  %v3777_v21 = vmul.f32 0.5, %v6665_v43  ;;  %v6407_v3 = vld [vmem:[%s9603_s2 + $0x38] sm:$0xff]   ;;  %v8731_v43 = vstv %s8696_s14  ;;  %6672 = vtanh.f32 %v3771_v58 }
 0x178   :  { %6038 = vmatprep.subr.bf16.mxu1 %v6397_v17  ;;  %v6669_v10 = vpop.eup %6668  ;;  %v3778_v42 = vmul.f32 0.5, %v6667_v29  ;;  %v3634_v19 = vadd.f32 0.5, %v3630_v34  ;;  %v6412_v29 = vld [vmem:[%s9603_s2 + $0x10] sm:$0xff]   ;;  %v1837_v34 = vld [vmem:[%s9604_s3 + $0x160] sm:$0xff] }
 0x179   :  { %6019 = vmatpush3.bf16.msra.mxu0 %v6396_v8  ;;  %v6671_v22 = vpop.eup %6670  ;;  %v3927_v50 = vmul.f32 0.5, %v6669_v10  ;;  %v3781_v9 = vadd.f32 0.5, %v3777_v21  ;;  %v6413_v10 = vld [vmem:[%s9603_s2 + $0x10] sm:$0xff]   ;;  %v1687_v21 = vld [vmem:[%s9604_s3 + $0x140] sm:$0xff] }
 0x17a   :  { %6020 = vmatprep.subr.bf16.mxu0 %v6398_v24  ;;  %v3928_v0 = vmul.f32 0.5, %v6671_v22  ;;  %v3782_v25 = vadd.f32 0.5, %v3778_v42  ;;  %v6415_v22 = vld [vmem:[%s9603_s2 + $0x18] sm:$0xff]   ;;  %v6420_v42 = vld [vmem:[%s9603_s2 + $0x30] sm:$0xff]  }
 0x17b   :  { %6039 = vmatpush3.bf16.msra.mxu1 %v6397_v17  ;;  %v3633_v17 = vadd.f32 0.5, %v3629_v62 }
 0x17c   :  { %6040 = vmatprep.subr.bf16.mxu1 %v6399_v28  ;;  %v3932_v60 = vadd.f32 0.5, %v3928_v0 }
 0x17d   :  { %6021 = vmatpush3.bf16.msra.mxu0 %v6398_v24  ;;  %v3931_v24 = vadd.f32 0.5, %v3927_v50  ;;  %v3636_v53 = vpack.c.bf16 %v3634_v19, %v3633_v17  ;;  %v1838_v19 = vld [vmem:[%s9604_s3 + $0x168] sm:$0xff] }
 0x17e   :  { %6022 = vmatprep.subr.bf16.mxu0 %v6400_v55 }
 0x17f   :  { %6041 = vmatpush3.bf16.msra.mxu1 %v6399_v28  ;;  %v3486_v28 = vpack.c.bf16 %v3484_v6, %v3483_v4 }
 0x180   :  { %6042 = vmatprep.subr.bf16.mxu1 %v6401_v47 }
 0x181   :  { %6023 = vmatpush3.bf16.msra.mxu0 %v6400_v55  ;;  %v6409_v55 = vld [vmem:[%s9603_s2] sm:$0xff]  }
 0x182   :  { %6024 = vmatprep.subr.bf16.mxu0 %v6402_v18 }
 0x183   :  { %6043 = vmatpush3.bf16.msra.mxu1 %v6401_v47  ;;  %v5752_v14 = vpop.f32.mrb[16].mxu0  ;;  %v3785_v47 = vpack.c.bf16 %v3782_v25, %v3781_v9 }
 0x184   :  { %v1506_v35 = vadd.f32 %v5752_v14, %v1389_v23  ;;  %v1489_v27 = vpop.f32.mrb[17].mxu0  ;;  %6044 = vmatprep.subr.bf16.mxu1 %v6403_v37  ;;  %v3921_v23 = vsub.f32 %v8613_v12, %v8586_v63  ;;  %v4070_v14 = vsub.f32 %v8731_v43, %v8466_v52 }
 0x185   :  { %v5772_v20 = vpop.f32.mrb[16].mxu1  ;;  %v1504_v51 = vadd.f32 %v1489_v27, %v1387_v33  ;;  %v5753_v56 = vpop.f32.mrb[18].mxu0  ;;  %6025 = vmatpush3.bf16.msra.mxu0 %v6402_v18  ;;  %v3935_v18 = vpack.c.bf16 %v3932_v60, %v3931_v24  ;;  %v3922_v33 = vsub.f32 %v8613_v12, %v8591_v48  ;;  %v6417_v27 = vld [vmem:[%s9603_s2 + $0x20] sm:$0xff]  }
 0x186   :  { %1510 = vst.msk [vmem:[%s9604_s3 + $0x110] sm:$0xff] %vm32_vm0, %v1506_v35  ;;  %v1656_v49 = vadd.f32 %v5772_v20, %v1539_v30  ;;  %v1639_v26 = vpop.f32.mrb[17].mxu1  ;;  %v1507_v7 = vadd.f32 %v5753_v56, %v1390_v15  ;;  %v1492_v54 = vpop.f32.mrb[19].mxu0  ;;  %6026 = vmatprep.subr.bf16.mxu0 %v6404_v13  ;;  %v6414_v30 = vld [vmem:[%s9603_s2 + $0x18] sm:$0xff]   ;;  %v6416_v35 = vld [vmem:[%s9603_s2 + $0x20] sm:$0xff]   ;;  %v6419_v20 = vld [vmem:[%s9603_s2 + $0x28] sm:$0xff]  }
 0x187   :  { %1508 = vst.msk [vmem:[%s9604_s3 + $0x100] sm:$0xff] %vm32_vm0, %v1504_v51  ;;  %v1654_v41 = vadd.f32 %v1639_v26, %v1537_v36  ;;  %v5773_v44 = vpop.f32.mrb[18].mxu1  ;;  %6045 = vmatpush3.bf16.msra.mxu1 %v6403_v37  ;;  %v1505_v46 = vadd.f32 %v1492_v54, %v1388_v16  ;;  %v3772_v37 = vsub.f32 %v8604_v5, %v8591_v48  ;;  %v6673_v36 = vpop.eup %6672  ;;  %v1689_v56 = vld [vmem:[%s9604_s3 + $0x150] sm:$0xff]  ;;  %v1690_v54 = vld [vmem:[%s9604_s3 + $0x158] sm:$0xff] }
 0x188   :  { %1660 = vst.msk [vmem:[%s9604_s3 + $0x130] sm:$0xff] %vm32_vm0, %v1656_v49  ;;  %1511 = vst.msk [vmem:[%s9604_s3 + $0x118] sm:$0xff] %vm32_vm0, %v1507_v7  ;;  %v1657_v1 = vadd.f32 %v5773_v44, %v1540_v31  ;;  %v1642_v2 = vpop.f32.mrb[19].mxu1  ;;  %6046 = vmatprep.subr.bf16.mxu1 %v6405_v38  ;;  %v4069_v5 = vsub.f32 %v8731_v43, %v8454_v45  ;;  %v1839_v7 = vld [vmem:[%s9604_s3 + $0x170] sm:$0xff] }
 0x189   :  { %1658 = vst.msk [vmem:[%s9604_s3 + $0x120] sm:$0xff] %vm32_vm0, %v1654_v41  ;;  %1509 = vst.msk [vmem:[%s9604_s3 + $0x108] sm:$0xff] %vm32_vm0, %v1505_v46  ;;  %v1655_v8 = vadd.f32 %v1642_v2, %v1538_v59  ;;  %6027 = vmatpush3.bf16.msra.mxu0 %v6404_v13  ;;  %v8740_v13 = vstv %s5209_s22  ;;  %6674 = vtanh.f32 %v3772_v37  ;;  %v1688_v41 = vld [vmem:[%s9604_s3 + $0x148] sm:$0xff]  ;;  %v3779_v46 = vmul.f32 0.5, %v6673_v36 }
 0x18a   :  { %1661 = vst.msk [vmem:[%s9604_s3 + $0x138] sm:$0xff] %vm32_vm0, %v1657_v1  ;;  %6028 = vmatprep.subr.bf16.mxu0 %v6406_v61  ;;  %6676 = vtanh.f32 %v3921_v23  ;;  %v4219_v12 = vsub.f32 %v8740_v13, %v8454_v45  ;;  %v4220_v15 = vsub.f32 %v8740_v13, %v8466_v52  ;;  %v6421_v44 = vld [vmem:[%s9603_s2 + $0x30] sm:$0xff]  }
 0x18b   :  { %1659 = vst.msk [vmem:[%s9604_s3 + $0x128] sm:$0xff] %vm32_vm0, %v1655_v8  ;;  %6047 = vmatpush3.bf16.msra.mxu1 %v6405_v38  ;;  %6678 = vtanh.f32 %v3922_v33  ;;  %v6418_v38 = vld [vmem:[%s9603_s2 + $0x28] sm:$0xff]   ;;  %v3783_v37 = vadd.f32 0.5, %v3779_v46 }
 0x18c   :  { %6048 = vmatprep.subr.bf16.mxu1 %v6407_v3  ;;  %6680 = vtanh.f32 %v4069_v5  ;;  %v6435_v46 = vld [vmem:[%s9603_s2 + $0x28] sm:$0xff]  }
 0x18d   :  { %6029 = vmatpush3.bf16.msra.mxu0 %v6406_v61  ;;  %6682 = vtanh.f32 %v4070_v14 }
 0x18e   :  { %6054 = vmatprep.subr.bf16.mxu0 %v6408_v57  ;;  %6684 = vtanh.f32 %v4219_v12  ;;  %v6424_v12 = vld [vmem:[%s9603_s2] sm:$0xff]  }
 0x18f   :  { %6049 = vmatpush3.bf16.msra.mxu1 %v6407_v3  ;;  %6686 = vtanh.f32 %v4220_v15  ;;  %v1840_v3 = vld [vmem:[%s9604_s3 + $0x178] sm:$0xff] }
 0x190   :  { %6031 = vmatmul.mubr.bf16.vlgmr.msra.gmra.mrb[44].mxu0 %v3486_v28  ;;  %6074 = vmatprep.subr.bf16.mxu1 %v6409_v55 }
 0x191   :  { %6055 = vmatpush3.bf16.msra.mxu0 %v6408_v57  ;;  %6070 = vmatprep.mubr.bf16.mxu0 %v3785_v47  ;;  %v6422_v57 = vld [vmem:[%s9603_s2 + $0x38] sm:$0xff]  }
 0x192   :  { %6051 = vmatmul.mubr.bf16.vlgmr.msra.gmra.mrb[44].mxu1 %v3636_v53  ;;  %6056 = vmatprep.subr.bf16.mxu0 %v6410_v32 }
 0x193   :  { %6075 = vmatpush3.bf16.msra.mxu1 %v6409_v55  ;;  %6090 = vmatprep.mubr.bf16.mxu1 %v3935_v18  ;;  %v6675_v16 = vpop.eup %6674 }
 0x194   :  { %6076 = vmatprep.subr.bf16.mxu1 %v6411_v11  ;;  %v6677_v39 = vpop.eup %6676  ;;  %v3780_v50 = vmul.f32 0.5, %v6675_v16  ;;  %v6426_v16 = vld [vmem:[%s9603_s2 + $0x8] sm:$0xff]  }
 0x195   :  { %6057 = vmatpush3.bf16.msra.mxu0 %v6410_v32  ;;  %v6679_v40 = vpop.eup %6678  ;;  %v3929_v24 = vmul.f32 0.5, %v6677_v39  ;;  %v4071_v39 = vsub.f32 %v8731_v43, %v8586_v63 }
 0x196   :  { %6058 = vmatprep.subr.bf16.mxu0 %v6412_v29  ;;  %v6681_v51 = vpop.eup %6680  ;;  %v3930_v60 = vmul.f32 0.5, %v6679_v40  ;;  %v3784_v23 = vadd.f32 0.5, %v3780_v50  ;;  %v6427_v40 = vld [vmem:[%s9603_s2 + $0x8] sm:$0xff]  }
 0x197   :  { %6077 = vmatpush3.bf16.msra.mxu1 %v6411_v11  ;;  %v6683_v31 = vpop.eup %6682  ;;  %v4077_v4 = vmul.f32 0.5, %v6681_v51  ;;  %v6423_v11 = vld [vmem:[%s9603_s2 + $0x38] sm:$0xff]   ;;  %v8858_v51 = vstv %s8823_s23  ;;  %6688 = vtanh.f32 %v4071_v39 }
 0x198   :  { %6078 = vmatprep.subr.bf16.mxu1 %v6413_v10  ;;  %v6685_v49 = vpop.eup %6684  ;;  %v4078_v6 = vmul.f32 0.5, %v6683_v31  ;;  %v3934_v14 = vadd.f32 0.5, %v3930_v60  ;;  %v6428_v31 = vld [vmem:[%s9603_s2 + $0x10] sm:$0xff]  }
 0x199   :  { %6059 = vmatpush3.bf16.msra.mxu0 %v6412_v29  ;;  %v6687_v59 = vpop.eup %6686  ;;  %v4227_v53 = vmul.f32 0.5, %v6685_v49  ;;  %v4081_v33 = vadd.f32 0.5, %v4077_v4  ;;  %v6429_v49 = vld [vmem:[%s9603_s2 + $0x10] sm:$0xff]  }
 0x19a   :  { %6060 = vmatprep.subr.bf16.mxu0 %v6414_v30  ;;  %v4228_v32 = vmul.f32 0.5, %v6687_v59  ;;  %v4082_v5 = vadd.f32 0.5, %v4078_v6  ;;  %v6431_v59 = vld [vmem:[%s9603_s2 + $0x18] sm:$0xff]   ;;  %v6437_v60 = vld [vmem:[%s9603_s2 + $0x30] sm:$0xff]  }
 0x19b   :  { %6079 = vmatpush3.bf16.msra.mxu1 %v6413_v10  ;;  %v3933_v10 = vadd.f32 0.5, %v3929_v24  ;;  %v1988_v24 = vld [vmem:[%s9604_s3 + $0x188] sm:$0xff] }
 0x19c   :  { %6080 = vmatprep.subr.bf16.mxu1 %v6415_v22  ;;  %v4232_v15 = vadd.f32 0.5, %v4228_v32 }
 0x19d   :  { %6061 = vmatpush3.bf16.msra.mxu0 %v6414_v30  ;;  %v4231_v30 = vadd.f32 0.5, %v4227_v53  ;;  %v3936_v36 = vpack.c.bf16 %v3934_v14, %v3933_v10  ;;  %v6438_v10 = vld [vmem:[%s9603_s2 + $0x38] sm:$0xff]  }
 0x19e   :  { %6062 = vmatprep.subr.bf16.mxu0 %v6416_v35 }
 0x19f   :  { %6081 = vmatpush3.bf16.msra.mxu1 %v6415_v22  ;;  %v3786_v22 = vpack.c.bf16 %v3784_v23, %v3783_v37 }
 0x1a0   :  { %6082 = vmatprep.subr.bf16.mxu1 %v6417_v27 }
 0x1a1   :  { %6063 = vmatpush3.bf16.msra.mxu0 %v6416_v35  ;;  %v6425_v35 = vld [vmem:[%s9603_s2] sm:$0xff]  }
 0x1a2   :  { %6064 = vmatprep.subr.bf16.mxu0 %v6418_v38 }
 0x1a3   :  { %6083 = vmatpush3.bf16.msra.mxu1 %v6417_v27  ;;  %v5792_v26 = vpop.f32.mrb[20].mxu0  ;;  %v4085_v27 = vpack.c.bf16 %v4082_v5, %v4081_v33  ;;  %v2138_v5 = vld [vmem:[%s9604_s3 + $0x1a8] sm:$0xff] }
 0x1a4   :  { %v1806_v61 = vadd.f32 %v5792_v26, %v1689_v56  ;;  %v1789_v62 = vpop.f32.mrb[21].mxu0  ;;  %6084 = vmatprep.subr.bf16.mxu1 %v6419_v20  ;;  %v4221_v56 = vsub.f32 %v8740_v13, %v8586_v63  ;;  %v4370_v26 = vsub.f32 %v8858_v51, %v8466_v52 }
 0x1a5   :  { %v5812_v0 = vpop.f32.mrb[20].mxu1  ;;  %v1804_v1 = vadd.f32 %v1789_v62, %v1687_v21  ;;  %v5793_v2 = vpop.f32.mrb[22].mxu0  ;;  %6065 = vmatpush3.bf16.msra.mxu0 %v6418_v38  ;;  %v4235_v38 = vpack.c.bf16 %v4232_v15, %v4231_v30  ;;  %v4222_v21 = vsub.f32 %v8740_v13, %v8591_v48 }
 0x1a6   :  { %1810 = vst.msk [vmem:[%s9604_s3 + $0x150] sm:$0xff] %vm32_vm0, %v1806_v61  ;;  %v1956_v8 = vadd.f32 %v5812_v0, %v1839_v7  ;;  %v1939_v9 = vpop.f32.mrb[21].mxu1  ;;  %v1807_v25 = vadd.f32 %v5793_v2, %v1690_v54  ;;  %v1792_v17 = vpop.f32.mrb[23].mxu0  ;;  %6066 = vmatprep.subr.bf16.mxu0 %v6420_v42  ;;  %v6430_v7 = vld [vmem:[%s9603_s2 + $0x18] sm:$0xff]   ;;  %v1989_v0 = vld [vmem:[%s9604_s3 + $0x190] sm:$0xff]  ;;  %v1987_v2 = vld [vmem:[%s9604_s3 + $0x180] sm:$0xff] }
 0x1a7   :  { %1808 = vst.msk [vmem:[%s9604_s3 + $0x140] sm:$0xff] %vm32_vm0, %v1804_v1  ;;  %v1954_v28 = vadd.f32 %v1939_v9, %v1837_v34  ;;  %v5813_v55 = vpop.f32.mrb[22].mxu1  ;;  %6085 = vmatpush3.bf16.msra.mxu1 %v6419_v20  ;;  %v1805_v47 = vadd.f32 %v1792_v17, %v1688_v41  ;;  %v4072_v20 = vsub.f32 %v8731_v43, %v8591_v48  ;;  %v6689_v61 = vpop.eup %6688  ;;  %v6434_v34 = vld [vmem:[%s9603_s2 + $0x28] sm:$0xff]   ;;  %v1990_v9 = vld [vmem:[%s9604_s3 + $0x198] sm:$0xff] }
 0x1a8   :  { %1960 = vst.msk [vmem:[%s9604_s3 + $0x170] sm:$0xff] %vm32_vm0, %v1956_v8  ;;  %1811 = vst.msk [vmem:[%s9604_s3 + $0x158] sm:$0xff] %vm32_vm0, %v1807_v25  ;;  %v1957_v18 = vadd.f32 %v5813_v55, %v1840_v3  ;;  %v1942_v58 = vpop.f32.mrb[23].mxu1  ;;  %6086 = vmatprep.subr.bf16.mxu1 %v6421_v44  ;;  %v4369_v43 = vsub.f32 %v8858_v51, %v8454_v45  ;;  %v6436_v3 = vld [vmem:[%s9603_s2 + $0x30] sm:$0xff]  }
 0x1a9   :  { %1958 = vst.msk [vmem:[%s9604_s3 + $0x160] sm:$0xff] %vm32_vm0, %v1954_v28  ;;  %1809 = vst.msk [vmem:[%s9604_s3 + $0x148] sm:$0xff] %vm32_vm0, %v1805_v47  ;;  %v1955_v29 = vadd.f32 %v1942_v58, %v1838_v19  ;;  %6067 = vmatpush3.bf16.msra.mxu0 %v6420_v42  ;;  %v8867_v42 = vstv %s5227_s4  ;;  %6690 = vtanh.f32 %v4072_v20  ;;  %v2139_v8 = vld [vmem:[%s9604_s3 + $0x1b0] sm:$0xff]  ;;  %v4079_v28 = vmul.f32 0.5, %v6689_v61 }
 0x1aa   :  { %1961 = vst.msk [vmem:[%s9604_s3 + $0x178] sm:$0xff] %vm32_vm0, %v1957_v18  ;;  %6068 = vmatprep.subr.bf16.mxu0 %v6422_v57  ;;  %6692 = vtanh.f32 %v4221_v56  ;;  %v4519_v13 = vsub.f32 %v8867_v42, %v8454_v45  ;;  %v4520_v54 = vsub.f32 %v8867_v42, %v8466_v52  ;;  %v6432_v45 = vld [vmem:[%s9603_s2 + $0x20] sm:$0xff]   ;;  %v2140_v18 = vld [vmem:[%s9604_s3 + $0x1b8] sm:$0xff] }
 0x1ab   :  { %1959 = vst.msk [vmem:[%s9604_s3 + $0x168] sm:$0xff] %vm32_vm0, %v1955_v29  ;;  %6087 = vmatpush3.bf16.msra.mxu1 %v6421_v44  ;;  %6694 = vtanh.f32 %v4222_v21  ;;  %v6433_v52 = vld [vmem:[%s9603_s2 + $0x20] sm:$0xff]   ;;  %v4083_v39 = vadd.f32 0.5, %v4079_v28  ;;  %v6451_v28 = vld [vmem:[%s9603_s2 + $0x28] sm:$0xff]  }
 0x1ac   :  { %6088 = vmatprep.subr.bf16.mxu1 %v6423_v11  ;;  %6696 = vtanh.f32 %v4369_v43 }
 0x1ad   :  { %6069 = vmatpush3.bf16.msra.mxu0 %v6422_v57  ;;  %6698 = vtanh.f32 %v4370_v26  ;;  %v2137_v57 = vld [vmem:[%s9604_s3 + $0x1a0] sm:$0xff] }
 0x1ae   :  { %6094 = vmatprep.subr.bf16.mxu0 %v6424_v12  ;;  %6700 = vtanh.f32 %v4519_v13 }
 0x1af   :  { %6089 = vmatpush3.bf16.msra.mxu1 %v6423_v11  ;;  %6702 = vtanh.f32 %v4520_v54  ;;  %v6441_v54 = vld [vmem:[%s9603_s2] sm:$0xff]  }
 0x1b0   :  { %6071 = vmatmul.mubr.bf16.vlgmr.msra.gmra.mrb[48].mxu0 %v3786_v22  ;;  %6114 = vmatprep.subr.bf16.mxu1 %v6425_v35 }
 0x1b1   :  { %6095 = vmatpush3.bf16.msra.mxu0 %v6424_v12  ;;  %6110 = vmatprep.mubr.bf16.mxu0 %v4085_v27 }
 0x1b2   :  { %6091 = vmatmul.mubr.bf16.vlgmr.msra.gmra.mrb[48].mxu1 %v3936_v36  ;;  %6096 = vmatprep.subr.bf16.mxu0 %v6426_v16 }
 0x1b3   :  { %6115 = vmatpush3.bf16.msra.mxu1 %v6425_v35  ;;  %6130 = vmatprep.mubr.bf16.mxu1 %v4235_v38  ;;  %v6691_v62 = vpop.eup %6690  ;;  %v6439_v38 = vld [vmem:[%s9603_s2 + $0x38] sm:$0xff]  }
 0x1b4   :  { %6116 = vmatprep.subr.bf16.mxu1 %v6427_v40  ;;  %v6693_v41 = vpop.eup %6692  ;;  %v4080_v55 = vmul.f32 0.5, %v6691_v62  ;;  %v4371_v62 = vsub.f32 %v8858_v51, %v8586_v63 }
 0x1b5   :  { %6097 = vmatpush3.bf16.msra.mxu0 %v6426_v16  ;;  %v6695_v44 = vpop.eup %6694  ;;  %v4229_v14 = vmul.f32 0.5, %v6693_v41  ;;  %v4372_v41 = vsub.f32 %v8858_v51, %v8591_v48  ;;  %v6444_v51 = vld [vmem:[%s9603_s2 + $0x10] sm:$0xff]  }
 0x1b6   :  { %6098 = vmatprep.subr.bf16.mxu0 %v6428_v31  ;;  %v6697_v50 = vpop.eup %6696  ;;  %v4230_v12 = vmul.f32 0.5, %v6695_v44  ;;  %v4664_v44 = vld [vmem:[%s9602_s1] sm:$0xff]  ;;  %6704 = vtanh.f32 %v4371_v62 }
 0x1b7   :  { %6117 = vmatpush3.bf16.msra.mxu1 %v6427_v40  ;;  %v6699_v1 = vpop.eup %6698  ;;  %v4377_v58 = vmul.f32 0.5, %v6697_v50  ;;  %v4084_v40 = vadd.f32 0.5, %v4080_v55  ;;  %v4233_v21 = vadd.f32 0.5, %v4229_v14  ;;  %v4521_v50 = vsub.f32 %v8867_v42, %v8586_v63  ;;  %v2288_v14 = vld [vmem:[%s9604_s3 + $0x1c8] sm:$0xff] }
 0x1b8   :  { %6118 = vmatprep.subr.bf16.mxu1 %v6429_v49  ;;  %v6701_v4 = vpop.eup %6700  ;;  %v4378_v11 = vmul.f32 0.5, %v6699_v1  ;;  %v4234_v43 = vadd.f32 0.5, %v4230_v12  ;;  %v4522_v1 = vsub.f32 %v8867_v42, %v8591_v48  ;;  %6706 = vtanh.f32 %v4372_v41  ;;  %v6446_v48 = vld [vmem:[%s9603_s2 + $0x18] sm:$0xff]   ;;  %v6453_v12 = vld [vmem:[%s9603_s2 + $0x30] sm:$0xff]  }
 0x1b9   :  { %6099 = vmatpush3.bf16.msra.mxu0 %v6428_v31  ;;  %v6703_v25 = vpop.eup %6702  ;;  %v4527_v35 = vmul.f32 0.5, %v6701_v4  ;;  %v4381_v56 = vadd.f32 0.5, %v4377_v58  ;;  %6708 = vtanh.f32 %v4521_v50 }
 0x1ba   :  { %6100 = vmatprep.subr.bf16.mxu0 %v6430_v7  ;;  %v4528_v27 = vmul.f32 0.5, %v6703_v25  ;;  %v4382_v31 = vadd.f32 0.5, %v4378_v11  ;;  %6710 = vtanh.f32 %v4522_v1  ;;  %v6449_v25 = vld [vmem:[%s9603_s2 + $0x20] sm:$0xff]  }
 0x1bb   :  { %6119 = vmatpush3.bf16.msra.mxu1 %v6429_v49  ;;  %v6440_v49 = vld [vmem:[%s9603_s2] sm:$0xff]   ;;  %v4531_v26 = vadd.f32 0.5, %v4527_v35 }
 0x1bc   :  { %6120 = vmatprep.subr.bf16.mxu1 %v6431_v59  ;;  %v4532_v13 = vadd.f32 0.5, %v4528_v27  ;;  %v6456_v1 = vld [vmem:[%s9603_s2] sm:$0xff]  }
 0x1bd   :  { %6101 = vmatpush3.bf16.msra.mxu0 %v6430_v7  ;;  %v4086_v7 = vpack.c.bf16 %v4084_v40, %v4083_v39 }
 0x1be   :  { %6102 = vmatprep.subr.bf16.mxu0 %v6432_v45  ;;  %v4535_v61 = vpack.c.bf16 %v4532_v13, %v4531_v26 }
 0x1bf   :  { %6121 = vmatpush3.bf16.msra.mxu1 %v6431_v59  ;;  %v4385_v59 = vpack.c.bf16 %v4382_v31, %v4381_v56  ;;  %v2438_v31 = vld [vmem:[%s9604_s3 + $0x1e8] sm:$0xff] }
 0x1c0   :  { %6122 = vmatprep.subr.bf16.mxu1 %v6433_v52 }
 0x1c1   :  { %6103 = vmatpush3.bf16.msra.mxu0 %v6432_v45  ;;  %v4236_v45 = vpack.c.bf16 %v4234_v43, %v4233_v21  ;;  %v6454_v21 = vld [vmem:[%s9603_s2 + $0x38] sm:$0xff]  }
 0x1c2   :  { %6104 = vmatprep.subr.bf16.mxu0 %v6434_v34 }
 0x1c3   :  { %6123 = vmatpush3.bf16.msra.mxu1 %v6433_v52  ;;  %v5832_v6 = vpop.f32.mrb[24].mxu0  ;;  %v6442_v52 = vld [vmem:[%s9603_s2 + $0x8] sm:$0xff]  }
 0x1c4   :  { %v2106_v17 = vadd.f32 %v5832_v6, %v1989_v0  ;;  %v2089_v19 = vpop.f32.mrb[25].mxu0  ;;  %6124 = vmatprep.subr.bf16.mxu1 %v6435_v46  ;;  %v4665_v0 = vld [vmem:[%s9602_s1 + $0x8] sm:$0xff] }
 0x1c5   :  { %v5852_v47 = vpop.f32.mrb[24].mxu1  ;;  %v2104_v53 = vadd.f32 %v2089_v19, %v1987_v2  ;;  %v5833_v32 = vpop.f32.mrb[26].mxu0  ;;  %6105 = vmatpush3.bf16.msra.mxu0 %v6434_v34  ;;  %v6443_v34 = vld [vmem:[%s9603_s2 + $0x8] sm:$0xff]   ;;  %v9000_v2 = vstv %s5245_s15 }
 0x1c6   :  { %2110 = vst.msk [vmem:[%s9604_s3 + $0x190] sm:$0xff] %vm32_vm0, %v2106_v17  ;;  %v2256_v37 = vadd.f32 %v5852_v47, %v2139_v8  ;;  %v2239_v23 = vpop.f32.mrb[25].mxu1  ;;  %v2107_v29 = vadd.f32 %v5833_v32, %v1990_v9  ;;  %v2092_v33 = vpop.f32.mrb[27].mxu0  ;;  %6106 = vmatprep.subr.bf16.mxu0 %v6436_v3  ;;  %v4819_v6 = vsub.f32 %v9000_v2, %v4664_v44  ;;  %v6447_v8 = vld [vmem:[%s9603_s2 + $0x18] sm:$0xff]   ;;  %v6448_v9 = vld [vmem:[%s9603_s2 + $0x20] sm:$0xff]   ;;  %v2289_v47 = vld [vmem:[%s9604_s3 + $0x1d0] sm:$0xff] }
 0x1c7   :  { %2108 = vst.msk [vmem:[%s9604_s3 + $0x180] sm:$0xff] %vm32_vm0, %v2104_v53  ;;  %v2254_v30 = vadd.f32 %v2239_v23, %v2137_v57  ;;  %v5853_v15 = vpop.f32.mrb[26].mxu1  ;;  %6125 = vmatpush3.bf16.msra.mxu1 %v6435_v46  ;;  %v2105_v22 = vadd.f32 %v2092_v33, %v1988_v24  ;;  %v8988_v46 = vstv %s8950_s5  ;;  %v4820_v42 = vsub.f32 %v9000_v2, %v4665_v0  ;;  %v6705_v17 = vpop.eup %6704  ;;  %v6450_v57 = vld [vmem:[%s9603_s2 + $0x28] sm:$0xff]   ;;  %v2287_v32 = vld [vmem:[%s9604_s3 + $0x1c0] sm:$0xff] }
 0x1c8   :  { %2260 = vst.msk [vmem:[%s9604_s3 + $0x1b0] sm:$0xff] %vm32_vm0, %v2256_v37  ;;  %2111 = vst.msk [vmem:[%s9604_s3 + $0x198] sm:$0xff] %vm32_vm0, %v2107_v29  ;;  %v2257_v36 = vadd.f32 %v5853_v15, %v2140_v18  ;;  %v2242_v16 = vpop.f32.mrb[27].mxu1  ;;  %6126 = vmatprep.subr.bf16.mxu1 %v6437_v60  ;;  %v4669_v63 = vsub.f32 %v8988_v46, %v4664_v44  ;;  %v4670_v4 = vsub.f32 %v8988_v46, %v4665_v0  ;;  %v6707_v19 = vpop.eup %6706  ;;  %v6452_v18 = vld [vmem:[%s9603_s2 + $0x30] sm:$0xff]   ;;  %v2290_v23 = vld [vmem:[%s9604_s3 + $0x1d8] sm:$0xff] }
 0x1c9   :  { %2258 = vst.msk [vmem:[%s9604_s3 + $0x1a0] sm:$0xff] %vm32_vm0, %v2254_v30  ;;  %2109 = vst.msk [vmem:[%s9604_s3 + $0x188] sm:$0xff] %vm32_vm0, %v2105_v22  ;;  %v2255_v20 = vadd.f32 %v2242_v16, %v2138_v5  ;;  %6107 = vmatpush3.bf16.msra.mxu0 %v6436_v3  ;;  %v6445_v3 = vld [vmem:[%s9603_s2 + $0x10] sm:$0xff]   ;;  %v6709_v24 = vpop.eup %6708  ;;  %v4379_v30 = vmul.f32 0.5, %v6705_v17  ;;  %v4380_v15 = vmul.f32 0.5, %v6707_v19  ;;  %v6459_v17 = vld [vmem:[%s9603_s2 + $0x8] sm:$0xff]  }
 0x1ca   :  { %2261 = vst.msk [vmem:[%s9604_s3 + $0x1b8] sm:$0xff] %vm32_vm0, %v2257_v36  ;;  %6108 = vmatprep.subr.bf16.mxu0 %v6438_v10  ;;  %6712 = vtanh.f32 %v4669_v63  ;;  %v2439_v37 = vld [vmem:[%s9604_s3 + $0x1f0] sm:$0xff]  ;;  %v2440_v36 = vld [vmem:[%s9604_s3 + $0x1f8] sm:$0xff]  ;;  %v4529_v43 = vmul.f32 0.5, %v6709_v24 }
 0x1cb   :  { %2259 = vst.msk [vmem:[%s9604_s3 + $0x1a8] sm:$0xff] %vm32_vm0, %v2255_v20  ;;  %6127 = vmatpush3.bf16.msra.mxu1 %v6437_v60  ;;  %6714 = vtanh.f32 %v4670_v4  ;;  %v6711_v60 = vpop.eup %6710  ;;  %v4383_v62 = vadd.f32 0.5, %v4379_v30  ;;  %v4667_v19 = vld [vmem:[%s9602_s1 + $0x18] sm:$0xff] }
 0x1cc   :  { %6128 = vmatprep.subr.bf16.mxu1 %v6439_v38  ;;  %6716 = vtanh.f32 %v4819_v6  ;;  %v4533_v0 = vadd.f32 0.5, %v4529_v43  ;;  %v6457_v6 = vld [vmem:[%s9603_s2] sm:$0xff]   ;;  %v2590_v30 = vld [vmem:[%s9604_s3 + $0x218] sm:$0xff] }
 0x1cd   :  { %6109 = vmatpush3.bf16.msra.mxu0 %v6438_v10  ;;  %6718 = vtanh.f32 %v4820_v42  ;;  %v2437_v10 = vld [vmem:[%s9604_s3 + $0x1e0] sm:$0xff] }
 0x1ce   :  { %6134 = vmatprep.subr.bf16.mxu0 %v6440_v49 }
 0x1cf   :  { %6129 = vmatpush3.bf16.msra.mxu1 %v6439_v38 }
 0x1d0   :  { %6111 = vmatmul.mubr.bf16.vlgmr.msra.gmra.mrb[52].mxu0 %v4086_v7  ;;  %6154 = vmatprep.subr.bf16.mxu1 %v6441_v54 }
 0x1d1   :  { %6135 = vmatpush3.bf16.msra.mxu0 %v6440_v49  ;;  %6150 = vmatprep.mubr.bf16.mxu0 %v4385_v59  ;;  %v4530_v49 = vmul.f32 0.5, %v6711_v60  ;;  %v4672_v60 = vsub.f32 %v8988_v46, %v4667_v19 }
 0x1d2   :  { %6131 = vmatmul.mubr.bf16.vlgmr.msra.gmra.mrb[52].mxu1 %v4236_v45  ;;  %6136 = vmatprep.subr.bf16.mxu0 %v6442_v52 }
 0x1d3   :  { %6155 = vmatpush3.bf16.msra.mxu1 %v6441_v54  ;;  %6170 = vmatprep.mubr.bf16.mxu1 %v4535_v61  ;;  %v6455_v61 = vld [vmem:[%s9603_s2 + $0x38] sm:$0xff]  }
 0x1d4   :  { %6156 = vmatprep.subr.bf16.mxu1 %v6443_v34  ;;  %v6713_v55 = vpop.eup %6712 }
 0x1d5   :  { %6137 = vmatpush3.bf16.msra.mxu0 %v6442_v52  ;;  %v6715_v53 = vpop.eup %6714  ;;  %v4677_v16 = vmul.f32 0.5, %v6713_v55 }
 0x1d6   :  { %6138 = vmatprep.subr.bf16.mxu0 %v6444_v51  ;;  %v6717_v58 = vpop.eup %6716  ;;  %v4678_v38 = vmul.f32 0.5, %v6715_v53  ;;  %v6462_v53 = vld [vmem:[%s9603_s2 + $0x18] sm:$0xff]  }
 0x1d7   :  { %6157 = vmatpush3.bf16.msra.mxu1 %v6443_v34  ;;  %v6719_v29 = vpop.eup %6718  ;;  %v4827_v54 = vmul.f32 0.5, %v6717_v58  ;;  %v4384_v34 = vadd.f32 0.5, %v4380_v15  ;;  %v4681_v44 = vadd.f32 0.5, %v4677_v16 }
 0x1d8   :  { %6158 = vmatprep.subr.bf16.mxu1 %v6445_v3  ;;  %v4828_v59 = vmul.f32 0.5, %v6719_v29  ;;  %v4682_v50 = vadd.f32 0.5, %v4678_v38 }
 0x1d9   :  { %6139 = vmatpush3.bf16.msra.mxu0 %v6444_v51  ;;  %v4534_v51 = vadd.f32 0.5, %v4530_v49  ;;  %v4831_v63 = vadd.f32 0.5, %v4827_v54  ;;  %v4386_v4 = vpack.c.bf16 %v4384_v34, %v4383_v62  ;;  %v6471_v34 = vld [vmem:[%s9603_s2 + $0x38] sm:$0xff]  }
 0x1da   :  { %6140 = vmatprep.subr.bf16.mxu0 %v6446_v48 }
 0x1db   :  { %6159 = vmatpush3.bf16.msra.mxu1 %v6445_v3  ;;  %v4832_v3 = vadd.f32 0.5, %v4828_v59  ;;  %v4536_v42 = vpack.c.bf16 %v4534_v51, %v4533_v0 }
 0x1dc   :  { %6160 = vmatprep.subr.bf16.mxu1 %v6447_v8 }
 0x1dd   :  { %6141 = vmatpush3.bf16.msra.mxu0 %v6446_v48  ;;  %v4685_v48 = vpack.c.bf16 %v4682_v50, %v4681_v44 }
 0x1de   :  { %6142 = vmatprep.subr.bf16.mxu0 %v6448_v9 }
 0x1df   :  { %6161 = vmatpush3.bf16.msra.mxu1 %v6447_v8  ;;  %v6458_v8 = vld [vmem:[%s9603_s2 + $0x8] sm:$0xff]  }
 0x1e0   :  { %6162 = vmatprep.subr.bf16.mxu1 %v6449_v25 }
 0x1e1   :  { %6143 = vmatpush3.bf16.msra.mxu0 %v6448_v9  ;;  %v4835_v9 = vpack.c.bf16 %v4832_v3, %v4831_v63  ;;  %v2889_v3 = vld [vmem:[%s9604_s3 + $0x250] sm:$0xff] }
 0x1e2   :  { %6144 = vmatprep.subr.bf16.mxu0 %v6450_v57 }
 0x1e3   :  { %6163 = vmatpush3.bf16.msra.mxu1 %v6449_v25  ;;  %v5872_v11 = vpop.f32.mrb[28].mxu0  ;;  %v4666_v25 = vld [vmem:[%s9602_s1 + $0x10] sm:$0xff] }
 0x1e4   :  { %v2406_v33 = vadd.f32 %v5872_v11, %v2289_v47  ;;  %v2389_v5 = vpop.f32.mrb[29].mxu0  ;;  %6164 = vmatprep.subr.bf16.mxu1 %v6451_v28  ;;  %v4671_v24 = vsub.f32 %v8988_v46, %v4666_v25  ;;  %v4821_v55 = vsub.f32 %v9000_v2, %v4666_v25  ;;  %v4822_v47 = vsub.f32 %v9000_v2, %v4667_v19  ;;  %v6463_v46 = vld [vmem:[%s9603_s2 + $0x18] sm:$0xff]   ;;  %v6464_v2 = vld [vmem:[%s9603_s2 + $0x20] sm:$0xff]   ;;  %v6467_v11 = vld [vmem:[%s9603_s2 + $0x28] sm:$0xff]  }
 0x1e5   :  { %v5892_v22 = vpop.f32.mrb[28].mxu1  ;;  %v2404_v35 = vadd.f32 %v2389_v5, %v2287_v32  ;;  %v5873_v27 = vpop.f32.mrb[30].mxu0  ;;  %6145 = vmatpush3.bf16.msra.mxu0 %v6450_v57  ;;  %v6460_v57 = vld [vmem:[%s9603_s2 + $0x10] sm:$0xff]   ;;  %v6465_v32 = vld [vmem:[%s9603_s2 + $0x20] sm:$0xff]  }
 0x1e6   :  { %2410 = vst.msk [vmem:[%s9604_s3 + $0x1d0] sm:$0xff] %vm32_vm0, %v2406_v33  ;;  %v2556_v39 = vadd.f32 %v5892_v22, %v2439_v37  ;;  %v2539_v40 = vpop.f32.mrb[29].mxu1  ;;  %v2407_v20 = vadd.f32 %v5873_v27, %v2290_v23  ;;  %v2392_v56 = vpop.f32.mrb[31].mxu0  ;;  %6146 = vmatprep.subr.bf16.mxu0 %v6452_v18  ;;  %6720 = vtanh.f32 %v4671_v24  ;;  %v2589_v23 = vld [vmem:[%s9604_s3 + $0x210] sm:$0xff]  ;;  %v2587_v33 = vld [vmem:[%s9604_s3 + $0x200] sm:$0xff]  ;;  %v2588_v27 = vld [vmem:[%s9604_s3 + $0x208] sm:$0xff] }
 0x1e7   :  { %2408 = vst.msk [vmem:[%s9604_s3 + $0x1c0] sm:$0xff] %vm32_vm0, %v2404_v35  ;;  %v2554_v26 = vadd.f32 %v2539_v40, %v2437_v10  ;;  %v5893_v13 = vpop.f32.mrb[30].mxu1  ;;  %6165 = vmatpush3.bf16.msra.mxu1 %v6451_v28  ;;  %v2405_v7 = vadd.f32 %v2392_v56, %v2288_v14  ;;  %v6461_v28 = vld [vmem:[%s9603_s2 + $0x10] sm:$0xff]   ;;  %6722 = vtanh.f32 %v4672_v60  ;;  %v2737_v35 = vld [vmem:[%s9604_s3 + $0x220] sm:$0xff]  ;;  %v2740_v56 = vld [vmem:[%s9604_s3 + $0x238] sm:$0xff] }
 0x1e8   :  { %2560 = vst.msk [vmem:[%s9604_s3 + $0x1f0] sm:$0xff] %vm32_vm0, %v2556_v39  ;;  %2411 = vst.msk [vmem:[%s9604_s3 + $0x1d8] sm:$0xff] %vm32_vm0, %v2407_v20  ;;  %v2557_v45 = vadd.f32 %v5893_v13, %v2440_v36  ;;  %v2542_v52 = vpop.f32.mrb[31].mxu1  ;;  %6166 = vmatprep.subr.bf16.mxu1 %v6453_v12  ;;  %6724 = vtanh.f32 %v4821_v55  ;;  %v6468_v5 = vld [vmem:[%s9603_s2 + $0x30] sm:$0xff]   ;;  %v6470_v13 = vld [vmem:[%s9603_s2 + $0x38] sm:$0xff]  }
 0x1e9   :  { %2558 = vst.msk [vmem:[%s9604_s3 + $0x1e0] sm:$0xff] %vm32_vm0, %v2554_v26  ;;  %2409 = vst.msk [vmem:[%s9604_s3 + $0x1c8] sm:$0xff] %vm32_vm0, %v2405_v7  ;;  %v2555_v41 = vadd.f32 %v2542_v52, %v2438_v31  ;;  %6147 = vmatpush3.bf16.msra.mxu0 %v6452_v18  ;;  %6726 = vtanh.f32 %v4822_v47  ;;  %v6466_v18 = vld [vmem:[%s9603_s2 + $0x28] sm:$0xff]   ;;  %v6469_v36 = vld [vmem:[%s9603_s2 + $0x30] sm:$0xff]  }
 0x1ea   :  { %2561 = vst.msk [vmem:[%s9604_s3 + $0x1f8] sm:$0xff] %vm32_vm0, %v2557_v45  ;;  %6148 = vmatprep.subr.bf16.mxu0 %v6454_v21  ;;  %v2738_v26 = vld [vmem:[%s9604_s3 + $0x228] sm:$0xff]  ;;  %v3037_v25 = vld [vmem:[%s9604_s3 + $0x260] sm:$0xff]  ;;  %v3040_v60 = vld [vmem:[%s9604_s3 + $0x278] sm:$0xff] }
 0x1eb   :  { %2559 = vst.msk [vmem:[%s9604_s3 + $0x1e8] sm:$0xff] %vm32_vm0, %v2555_v41  ;;  %6167 = vmatpush3.bf16.msra.mxu1 %v6453_v12  ;;  %v2739_v12 = vld [vmem:[%s9604_s3 + $0x230] sm:$0xff] }
 0x1ec   :  { %6168 = vmatprep.subr.bf16.mxu1 %v6455_v61 }
 0x1ed   :  { %6149 = vmatpush3.bf16.msra.mxu0 %v6454_v21 }
 0x1ee   :  { %6174 = vmatprep.subr.bf16.mxu0 %v6456_v1 }
 0x1ef   :  { %6169 = vmatpush3.bf16.msra.mxu1 %v6455_v61 }
 0x1f0   :  { %6151 = vmatmul.mubr.bf16.vlgmr.msra.gmra.mrb[56].mxu0 %v4386_v4  ;;  %6194 = vmatprep.subr.bf16.mxu1 %v6457_v6  ;;  %v6721_v58 = vpop.eup %6720  ;;  %v2887_v4 = vld [vmem:[%s9604_s3 + $0x240] sm:$0xff] }
 0x1f1   :  { %6175 = vmatpush3.bf16.msra.mxu0 %v6456_v1  ;;  %6190 = vmatprep.mubr.bf16.mxu0 %v4685_v48  ;;  %v6723_v37 = vpop.eup %6722  ;;  %v4679_v16 = vmul.f32 0.5, %v6721_v58  ;;  %v3039_v48 = vld [vmem:[%s9604_s3 + $0x270] sm:$0xff] }
 0x1f2   :  { %6171 = vmatmul.mubr.bf16.vlgmr.msra.gmra.mrb[56].mxu1 %v4536_v42  ;;  %6176 = vmatprep.subr.bf16.mxu0 %v6458_v8  ;;  %v6725_v29 = vpop.eup %6724  ;;  %v4680_v38 = vmul.f32 0.5, %v6723_v37  ;;  %v2890_v42 = vld [vmem:[%s9604_s3 + $0x258] sm:$0xff] }
 0x1f3   :  { %6195 = vmatpush3.bf16.msra.mxu1 %v6457_v6  ;;  %6210 = vmatprep.mubr.bf16.mxu1 %v4835_v9  ;;  %v6727_v10 = vpop.eup %6726  ;;  %v4829_v7 = vmul.f32 0.5, %v6725_v29  ;;  %v4683_v41 = vadd.f32 0.5, %v4679_v16  ;;  %v3187_v29 = vld [vmem:[%s9604_s3 + $0x280] sm:$0xff] }
 0x1f4   :  { %6196 = vmatprep.subr.bf16.mxu1 %v6459_v17  ;;  %v4830_v54 = vmul.f32 0.5, %v6727_v10  ;;  %v4684_v44 = vadd.f32 0.5, %v4680_v38  ;;  %v3190_v10 = vld [vmem:[%s9604_s3 + $0x298] sm:$0xff] }
 0x1f5   :  { %6177 = vmatpush3.bf16.msra.mxu0 %v6458_v8  ;;  %v4833_v0 = vadd.f32 0.5, %v4829_v7  ;;  %v3487_v7 = vld [vmem:[%s9604_s3 + $0x2c0] sm:$0xff] }
 0x1f6   :  { %6178 = vmatprep.subr.bf16.mxu0 %v6460_v57  ;;  %v4834_v51 = vadd.f32 0.5, %v4830_v54  ;;  %v4686_v1 = vpack.c.bf16 %v4684_v44, %v4683_v41 }
 0x1f7   :  { %6197 = vmatpush3.bf16.msra.mxu1 %v6459_v17  ;;  %v2888_v17 = vld [vmem:[%s9604_s3 + $0x248] sm:$0xff] }
 0x1f8   :  { %6198 = vmatprep.subr.bf16.mxu1 %v6461_v28  ;;  %v4836_v63 = vpack.c.bf16 %v4834_v51, %v4833_v0  ;;  %v3640_v0 = vld [vmem:[%s9604_s3 + $0x2f8] sm:$0xff] }
 0x1f9   :  { %6179 = vmatpush3.bf16.msra.mxu0 %v6460_v57 }
 0x1fa   :  { %6180 = vmatprep.subr.bf16.mxu0 %v6462_v53 }
 0x1fb   :  { %6199 = vmatpush3.bf16.msra.mxu1 %v6461_v28 }
 0x1fc   :  { %6200 = vmatprep.subr.bf16.mxu1 %v6463_v46 }
 0x1fd   :  { %6181 = vmatpush3.bf16.msra.mxu0 %v6462_v53 }
 0x1fe   :  { %6182 = vmatprep.subr.bf16.mxu0 %v6464_v2 }
 0x1ff   :  { %6201 = vmatpush3.bf16.msra.mxu1 %v6463_v46  ;;  %v3038_v46 = vld [vmem:[%s9604_s3 + $0x268] sm:$0xff] }
 0x200   :  { %6202 = vmatprep.subr.bf16.mxu1 %v6465_v32 }
 0x201   :  { %6183 = vmatpush3.bf16.msra.mxu0 %v6464_v2 }
 0x202   :  { %6184 = vmatprep.subr.bf16.mxu0 %v6466_v18 }
 0x203   :  { %6203 = vmatpush3.bf16.msra.mxu1 %v6465_v32  ;;  %v5912_v14 = vpop.f32.mrb[32].mxu0 }
 0x204   :  { %v2706_v15 = vadd.f32 %v5912_v14, %v2589_v23  ;;  %v2689_v22 = vpop.f32.mrb[33].mxu0  ;;  %6204 = vmatprep.subr.bf16.mxu1 %v6467_v11  ;;  %v3189_v23 = vld [vmem:[%s9604_s3 + $0x290] sm:$0xff] }
 0x205   :  { %v5932_v39 = vpop.f32.mrb[32].mxu1  ;;  %v2704_v40 = vadd.f32 %v2689_v22, %v2587_v33  ;;  %v5913_v20 = vpop.f32.mrb[34].mxu0  ;;  %6185 = vmatpush3.bf16.msra.mxu0 %v6466_v18 }
 0x206   :  { %2710 = vst.msk [vmem:[%s9604_s3 + $0x210] sm:$0xff] %vm32_vm0, %v2706_v15  ;;  %v2856_v31 = vadd.f32 %v5932_v39, %v2739_v12  ;;  %v2839_v21 = vpop.f32.mrb[33].mxu1  ;;  %v2707_v43 = vadd.f32 %v5913_v20, %v2590_v30  ;;  %v2692_v49 = vpop.f32.mrb[35].mxu0  ;;  %6186 = vmatprep.subr.bf16.mxu0 %v6468_v5  ;;  %v3337_v30 = vld [vmem:[%s9604_s3 + $0x2a0] sm:$0xff]  ;;  %v3188_v15 = vld [vmem:[%s9604_s3 + $0x288] sm:$0xff] }
 0x207   :  { %2708 = vst.msk [vmem:[%s9604_s3 + $0x200] sm:$0xff] %vm32_vm0, %v2704_v40  ;;  %v2854_v59 = vadd.f32 %v2839_v21, %v2737_v35  ;;  %v5933_v45 = vpop.f32.mrb[34].mxu1  ;;  %6205 = vmatpush3.bf16.msra.mxu1 %v6467_v11  ;;  %v2705_v52 = vadd.f32 %v2692_v49, %v2588_v27  ;;  %v3338_v20 = vld [vmem:[%s9604_s3 + $0x2a8] sm:$0xff] }
 0x208   :  { %2860 = vst.msk [vmem:[%s9604_s3 + $0x230] sm:$0xff] %vm32_vm0, %v2856_v31  ;;  %2711 = vst.msk [vmem:[%s9604_s3 + $0x218] sm:$0xff] %vm32_vm0, %v2707_v43  ;;  %v2857_v61 = vadd.f32 %v5933_v45, %v2740_v56  ;;  %v2842_v62 = vpop.f32.mrb[35].mxu1  ;;  %6206 = vmatprep.subr.bf16.mxu1 %v6469_v36  ;;  %v3490_v45 = vld [vmem:[%s9604_s3 + $0x2d8] sm:$0xff] }
 0x209   :  { %2858 = vst.msk [vmem:[%s9604_s3 + $0x220] sm:$0xff] %vm32_vm0, %v2854_v59  ;;  %2709 = vst.msk [vmem:[%s9604_s3 + $0x208] sm:$0xff] %vm32_vm0, %v2705_v52  ;;  %v2855_v50 = vadd.f32 %v2842_v62, %v2738_v26  ;;  %6187 = vmatpush3.bf16.msra.mxu0 %v6468_v5  ;;  %v3339_v5 = vld [vmem:[%s9604_s3 + $0x2b0] sm:$0xff]  ;;  %v3637_v62 = vld [vmem:[%s9604_s3 + $0x2e0] sm:$0xff] }
 0x20a   :  { %2861 = vst.msk [vmem:[%s9604_s3 + $0x238] sm:$0xff] %vm32_vm0, %v2857_v61  ;;  %6188 = vmatprep.subr.bf16.mxu0 %v6470_v13  ;;  %v3639_v59 = vld [vmem:[%s9604_s3 + $0x2f0] sm:$0xff] }
 0x20b   :  { %2859 = vst.msk [vmem:[%s9604_s3 + $0x228] sm:$0xff] %vm32_vm0, %v2855_v50  ;;  %6207 = vmatpush3.bf16.msra.mxu1 %v6469_v36  ;;  %v3340_v36 = vld [vmem:[%s9604_s3 + $0x2b8] sm:$0xff] }
 0x20c   :  { %6208 = vmatprep.subr.bf16.mxu1 %v6471_v34 }
 0x20d   :  { %6189 = vmatpush3.bf16.msra.mxu0 %v6470_v13  ;;  %v3489_v13 = vld [vmem:[%s9604_s3 + $0x2d0] sm:$0xff] }
 0x20f   :  { %6209 = vmatpush3.bf16.msra.mxu1 %v6471_v34  ;;  %v3488_v34 = vld [vmem:[%s9604_s3 + $0x2c8] sm:$0xff] }
 0x210   :  { %6191 = vmatmul.mubr.bf16.vlgmr.msra.gmra.mrb[60].mxu0 %v4686_v1 }
 0x212   :  { %6211 = vmatmul.mubr.bf16.vlgmr.msra.gmra.mrb[60].mxu1 %v4836_v63 }
 0x223   :  { %v5952_v6 = vpop.f32.mrb[36].mxu0 }
 0x224   :  { %v3006_v8 = vadd.f32 %v5952_v6, %v2889_v3  ;;  %v2989_v9 = vpop.f32.mrb[37].mxu0 }
 0x225   :  { %v5972_v19 = vpop.f32.mrb[36].mxu1  ;;  %v3004_v57 = vadd.f32 %v2989_v9, %v2887_v4  ;;  %v5953_v24 = vpop.f32.mrb[38].mxu0  ;;  %v3638_v4 = vld [vmem:[%s9604_s3 + $0x2e8] sm:$0xff] }
 0x226   :  { %3010 = vst.msk [vmem:[%s9604_s3 + $0x250] sm:$0xff] %vm32_vm0, %v3006_v8  ;;  %v3156_v28 = vadd.f32 %v5972_v19, %v3039_v48  ;;  %v3139_v55 = vpop.f32.mrb[37].mxu1  ;;  %v3007_v47 = vadd.f32 %v5953_v24, %v2890_v42  ;;  %v2992_v53 = vpop.f32.mrb[39].mxu0  ;;  %v3787_v19 = vld [vmem:[%s9604_s3 + $0x300] sm:$0xff]  ;;  %v3939_v24 = vld [vmem:[%s9604_s3 + $0x330] sm:$0xff] }
 0x227   :  { %3008 = vst.msk [vmem:[%s9604_s3 + $0x240] sm:$0xff] %vm32_vm0, %v3004_v57  ;;  %v3154_v2 = vadd.f32 %v3139_v55, %v3037_v25  ;;  %v5973_v32 = vpop.f32.mrb[38].mxu1  ;;  %v3005_v18 = vadd.f32 %v2992_v53, %v2888_v17  ;;  %v3789_v17 = vld [vmem:[%s9604_s3 + $0x310] sm:$0xff]  ;;  %v3788_v53 = vld [vmem:[%s9604_s3 + $0x308] sm:$0xff] }
 0x228   :  { %3160 = vst.msk [vmem:[%s9604_s3 + $0x270] sm:$0xff] %vm32_vm0, %v3156_v28  ;;  %3011 = vst.msk [vmem:[%s9604_s3 + $0x258] sm:$0xff] %vm32_vm0, %v3007_v47  ;;  %v3157_v58 = vadd.f32 %v5973_v32, %v3040_v60  ;;  %v3142_v11 = vpop.f32.mrb[39].mxu1  ;;  %v3790_v60 = vld [vmem:[%s9604_s3 + $0x318] sm:$0xff]  ;;  %v3937_v47 = vld [vmem:[%s9604_s3 + $0x320] sm:$0xff] }
 0x229   :  { %3158 = vst.msk [vmem:[%s9604_s3 + $0x260] sm:$0xff] %vm32_vm0, %v3154_v2  ;;  %3009 = vst.msk [vmem:[%s9604_s3 + $0x248] sm:$0xff] %vm32_vm0, %v3005_v18  ;;  %v3155_v37 = vadd.f32 %v3142_v11, %v3038_v46  ;;  %v3940_v18 = vld [vmem:[%s9604_s3 + $0x338] sm:$0xff] }
 0x22a   :  { %3161 = vst.msk [vmem:[%s9604_s3 + $0x278] sm:$0xff] %vm32_vm0, %v3157_v58 }
 0x22b   :  { %3159 = vst.msk [vmem:[%s9604_s3 + $0x268] sm:$0xff] %vm32_vm0, %v3155_v37 }
 0x243   :  { %v5992_v33 = vpop.f32.mrb[40].mxu0 }
 0x244   :  { %v3306_v14 = vadd.f32 %v5992_v33, %v3189_v23  ;;  %v3289_v12 = vpop.f32.mrb[41].mxu0 }
 0x245   :  { %v6012_v22 = vpop.f32.mrb[40].mxu1  ;;  %v3304_v35 = vadd.f32 %v3289_v12, %v3187_v29  ;;  %v5993_v27 = vpop.f32.mrb[42].mxu0  ;;  %v3938_v29 = vld [vmem:[%s9604_s3 + $0x328] sm:$0xff] }
 0x246   :  { %3310 = vst.msk [vmem:[%s9604_s3 + $0x290] sm:$0xff] %vm32_vm0, %v3306_v14  ;;  %v3456_v16 = vadd.f32 %v6012_v22, %v3339_v5  ;;  %v3439_v38 = vpop.f32.mrb[41].mxu1  ;;  %v3307_v39 = vadd.f32 %v5993_v27, %v3190_v10  ;;  %v3292_v40 = vpop.f32.mrb[43].mxu0  ;;  %v4087_v22 = vld [vmem:[%s9604_s3 + $0x340] sm:$0xff]  ;;  %v4239_v27 = vld [vmem:[%s9604_s3 + $0x370] sm:$0xff] }
 0x247   :  { %3308 = vst.msk [vmem:[%s9604_s3 + $0x280] sm:$0xff] %vm32_vm0, %v3304_v35  ;;  %v3454_v56 = vadd.f32 %v3439_v38, %v3337_v30  ;;  %v6013_v31 = vpop.f32.mrb[42].mxu1  ;;  %v3305_v21 = vadd.f32 %v3292_v40, %v3188_v15  ;;  %v4089_v15 = vld [vmem:[%s9604_s3 + $0x350] sm:$0xff]  ;;  %v4088_v40 = vld [vmem:[%s9604_s3 + $0x348] sm:$0xff] }
 0x248   :  { %3460 = vst.msk [vmem:[%s9604_s3 + $0x2b0] sm:$0xff] %vm32_vm0, %v3456_v16  ;;  %3311 = vst.msk [vmem:[%s9604_s3 + $0x298] sm:$0xff] %vm32_vm0, %v3307_v39  ;;  %v3457_v43 = vadd.f32 %v6013_v31, %v3340_v36  ;;  %v3442_v49 = vpop.f32.mrb[43].mxu1  ;;  %v4090_v36 = vld [vmem:[%s9604_s3 + $0x358] sm:$0xff]  ;;  %v4237_v39 = vld [vmem:[%s9604_s3 + $0x360] sm:$0xff] }
 0x249   :  { %3458 = vst.msk [vmem:[%s9604_s3 + $0x2a0] sm:$0xff] %vm32_vm0, %v3454_v56  ;;  %3309 = vst.msk [vmem:[%s9604_s3 + $0x288] sm:$0xff] %vm32_vm0, %v3305_v21  ;;  %v3455_v26 = vadd.f32 %v3442_v49, %v3338_v20  ;;  %v4240_v21 = vld [vmem:[%s9604_s3 + $0x378] sm:$0xff] }
 0x24a   :  { %3461 = vst.msk [vmem:[%s9604_s3 + $0x2b8] sm:$0xff] %vm32_vm0, %v3457_v43 }
 0x24b   :  { %3459 = vst.msk [vmem:[%s9604_s3 + $0x2a8] sm:$0xff] %vm32_vm0, %v3455_v26 }
 0x263   :  { %v6032_v54 = vpop.f32.mrb[44].mxu0 }
 0x264   :  { %v3606_v52 = vadd.f32 %v6032_v54, %v3489_v13  ;;  %v3589_v61 = vpop.f32.mrb[45].mxu0 }
 0x265   :  { %v6052_v41 = vpop.f32.mrb[44].mxu1  ;;  %v3604_v44 = vadd.f32 %v3589_v61, %v3487_v7  ;;  %v6033_v50 = vpop.f32.mrb[46].mxu0  ;;  %v4238_v7 = vld [vmem:[%s9604_s3 + $0x368] sm:$0xff] }
 0x266   :  { %3610 = vst.msk [vmem:[%s9604_s3 + $0x2d0] sm:$0xff] %vm32_vm0, %v3606_v52  ;;  %v3756_v51 = vadd.f32 %v6052_v41, %v3639_v59  ;;  %v3739_v1 = vpop.f32.mrb[45].mxu1  ;;  %v3607_v63 = vadd.f32 %v6033_v50, %v3490_v45  ;;  %v3592_v3 = vpop.f32.mrb[47].mxu0  ;;  %v4387_v41 = vld [vmem:[%s9604_s3 + $0x380] sm:$0xff]  ;;  %v4539_v50 = vld [vmem:[%s9604_s3 + $0x3b0] sm:$0xff] }
 0x267   :  { %3608 = vst.msk [vmem:[%s9604_s3 + $0x2c0] sm:$0xff] %vm32_vm0, %v3604_v44  ;;  %v3754_v6 = vadd.f32 %v3739_v1, %v3637_v62  ;;  %v6053_v48 = vpop.f32.mrb[46].mxu1  ;;  %v3605_v42 = vadd.f32 %v3592_v3, %v3488_v34  ;;  %v4389_v34 = vld [vmem:[%s9604_s3 + $0x390] sm:$0xff]  ;;  %v4388_v3 = vld [vmem:[%s9604_s3 + $0x388] sm:$0xff] }
 0x268   :  { %3760 = vst.msk [vmem:[%s9604_s3 + $0x2f0] sm:$0xff] %vm32_vm0, %v3756_v51  ;;  %3611 = vst.msk [vmem:[%s9604_s3 + $0x2d8] sm:$0xff] %vm32_vm0, %v3607_v63  ;;  %v3757_v8 = vadd.f32 %v6053_v48, %v3640_v0  ;;  %v3742_v9 = vpop.f32.mrb[47].mxu1  ;;  %v4390_v0 = vld [vmem:[%s9604_s3 + $0x398] sm:$0xff]  ;;  %v4537_v63 = vld [vmem:[%s9604_s3 + $0x3a0] sm:$0xff] }
 0x269   :  { %3758 = vst.msk [vmem:[%s9604_s3 + $0x2e0] sm:$0xff] %vm32_vm0, %v3754_v6  ;;  %3609 = vst.msk [vmem:[%s9604_s3 + $0x2c8] sm:$0xff] %vm32_vm0, %v3605_v42  ;;  %v3755_v25 = vadd.f32 %v3742_v9, %v3638_v4  ;;  %v4540_v42 = vld [vmem:[%s9604_s3 + $0x3b8] sm:$0xff] }
 0x26a   :  { %3761 = vst.msk [vmem:[%s9604_s3 + $0x2f8] sm:$0xff] %vm32_vm0, %v3757_v8 }
 0x26b   :  { %3759 = vst.msk [vmem:[%s9604_s3 + $0x2e8] sm:$0xff] %vm32_vm0, %v3755_v25 }
 0x283   :  { %v6072_v57 = vpop.f32.mrb[48].mxu0 }
 0x284   :  { %v3906_v28 = vadd.f32 %v6072_v57, %v3789_v17  ;;  %v3889_v55 = vpop.f32.mrb[49].mxu0 }
 0x285   :  { %v6092_v46 = vpop.f32.mrb[48].mxu1  ;;  %v3904_v2 = vadd.f32 %v3889_v55, %v3787_v19  ;;  %v6073_v32 = vpop.f32.mrb[50].mxu0  ;;  %v4538_v19 = vld [vmem:[%s9604_s3 + $0x3a8] sm:$0xff] }
 0x286   :  { %3910 = vst.msk [vmem:[%s9604_s3 + $0x310] sm:$0xff] %vm32_vm0, %v3906_v28  ;;  %v4056_v58 = vadd.f32 %v6092_v46, %v3939_v24  ;;  %v4039_v11 = vpop.f32.mrb[49].mxu1  ;;  %v3907_v37 = vadd.f32 %v6073_v32, %v3790_v60  ;;  %v3892_v23 = vpop.f32.mrb[51].mxu0  ;;  %v4687_v46 = vld [vmem:[%s9604_s3 + $0x3c0] sm:$0xff]  ;;  %v4839_v32 = vld [vmem:[%s9604_s3 + $0x3f0] sm:$0xff] }
 0x287   :  { %3908 = vst.msk [vmem:[%s9604_s3 + $0x300] sm:$0xff] %vm32_vm0, %v3904_v2  ;;  %v4054_v33 = vadd.f32 %v4039_v11, %v3937_v47  ;;  %v6093_v5 = vpop.f32.mrb[50].mxu1  ;;  %v3905_v10 = vadd.f32 %v3892_v23, %v3788_v53  ;;  %v4689_v53 = vld [vmem:[%s9604_s3 + $0x3d0] sm:$0xff]  ;;  %v4688_v23 = vld [vmem:[%s9604_s3 + $0x3c8] sm:$0xff] }
 0x288   :  { %4060 = vst.msk [vmem:[%s9604_s3 + $0x330] sm:$0xff] %vm32_vm0, %v4056_v58  ;;  %3911 = vst.msk [vmem:[%s9604_s3 + $0x318] sm:$0xff] %vm32_vm0, %v3907_v37  ;;  %v4057_v14 = vadd.f32 %v6093_v5, %v3940_v18  ;;  %v4042_v12 = vpop.f32.mrb[51].mxu1  ;;  %v4690_v18 = vld [vmem:[%s9604_s3 + $0x3d8] sm:$0xff]  ;;  %v4837_v37 = vld [vmem:[%s9604_s3 + $0x3e0] sm:$0xff] }
 0x289   :  { %4058 = vst.msk [vmem:[%s9604_s3 + $0x320] sm:$0xff] %vm32_vm0, %v4054_v33  ;;  %3909 = vst.msk [vmem:[%s9604_s3 + $0x308] sm:$0xff] %vm32_vm0, %v3905_v10  ;;  %v4055_v30 = vadd.f32 %v4042_v12, %v3938_v29  ;;  %v4840_v10 = vld [vmem:[%s9604_s3 + $0x3f8] sm:$0xff] }
 0x28a   :  { %4061 = vst.msk [vmem:[%s9604_s3 + $0x338] sm:$0xff] %vm32_vm0, %v4057_v14 }
 0x28b   :  { %4059 = vst.msk [vmem:[%s9604_s3 + $0x328] sm:$0xff] %vm32_vm0, %v4055_v30 }
 0x2a3   :  { %v6112_v35 = vpop.f32.mrb[52].mxu0 }
 0x2a4   :  { %v4206_v16 = vadd.f32 %v6112_v35, %v4089_v15  ;;  %v4189_v38 = vpop.f32.mrb[53].mxu0 }
 0x2a5   :  { %v6132_v20 = vpop.f32.mrb[52].mxu1  ;;  %v4204_v56 = vadd.f32 %v4189_v38, %v4087_v22  ;;  %v6113_v31 = vpop.f32.mrb[54].mxu0  ;;  %v4838_v22 = vld [vmem:[%s9604_s3 + $0x3e8] sm:$0xff] }
 0x2a6   :  { %4210 = vst.msk [vmem:[%s9604_s3 + $0x350] sm:$0xff] %vm32_vm0, %v4206_v16  ;;  %v4356_v43 = vadd.f32 %v6132_v20, %v4239_v27  ;;  %v4339_v49 = vpop.f32.mrb[53].mxu1  ;;  %v4207_v26 = vadd.f32 %v6113_v31, %v4090_v36  ;;  %v4192_v13 = vpop.f32.mrb[55].mxu0 }
 0x2a7   :  { %4208 = vst.msk [vmem:[%s9604_s3 + $0x340] sm:$0xff] %vm32_vm0, %v4204_v56  ;;  %v4354_v54 = vadd.f32 %v4339_v49, %v4237_v39  ;;  %v6133_v59 = vpop.f32.mrb[54].mxu1  ;;  %v4205_v45 = vadd.f32 %v4192_v13, %v4088_v40 }
 0x2a8   :  { %4360 = vst.msk [vmem:[%s9604_s3 + $0x370] sm:$0xff] %vm32_vm0, %v4356_v43  ;;  %4211 = vst.msk [vmem:[%s9604_s3 + $0x358] sm:$0xff] %vm32_vm0, %v4207_v26  ;;  %v4357_v52 = vadd.f32 %v6133_v59, %v4240_v21  ;;  %v4342_v61 = vpop.f32.mrb[55].mxu1 }
 0x2a9   :  { %4358 = vst.msk [vmem:[%s9604_s3 + $0x360] sm:$0xff] %vm32_vm0, %v4354_v54  ;;  %4209 = vst.msk [vmem:[%s9604_s3 + $0x348] sm:$0xff] %vm32_vm0, %v4205_v45  ;;  %v4355_v62 = vadd.f32 %v4342_v61, %v4238_v7 }
 0x2aa   :  { %4361 = vst.msk [vmem:[%s9604_s3 + $0x378] sm:$0xff] %vm32_vm0, %v4357_v52 }
 0x2ab   :  { %4359 = vst.msk [vmem:[%s9604_s3 + $0x368] sm:$0xff] %vm32_vm0, %v4355_v62 }
 0x2c3   :  { %v6152_v44 = vpop.f32.mrb[56].mxu0 }
 0x2c4   :  { %v4506_v51 = vadd.f32 %v6152_v44, %v4389_v34  ;;  %v4489_v1 = vpop.f32.mrb[57].mxu0 }
 0x2c5   :  { %v6172_v4 = vpop.f32.mrb[56].mxu1  ;;  %v4504_v6 = vadd.f32 %v4489_v1, %v4387_v41  ;;  %v6153_v48 = vpop.f32.mrb[58].mxu0 }
 0x2c6   :  { %4510 = vst.msk [vmem:[%s9604_s3 + $0x390] sm:$0xff] %vm32_vm0, %v4506_v51  ;;  %v4656_v8 = vadd.f32 %v6172_v4, %v4539_v50  ;;  %v4639_v9 = vpop.f32.mrb[57].mxu1  ;;  %v4507_v25 = vadd.f32 %v6153_v48, %v4390_v0  ;;  %v4492_v17 = vpop.f32.mrb[59].mxu0 }
 0x2c7   :  { %4508 = vst.msk [vmem:[%s9604_s3 + $0x380] sm:$0xff] %vm32_vm0, %v4504_v6  ;;  %v4654_v57 = vadd.f32 %v4639_v9, %v4537_v63  ;;  %v6173_v24 = vpop.f32.mrb[58].mxu1  ;;  %v4505_v60 = vadd.f32 %v4492_v17, %v4388_v3 }
 0x2c8   :  { %4660 = vst.msk [vmem:[%s9604_s3 + $0x3b0] sm:$0xff] %vm32_vm0, %v4656_v8  ;;  %4511 = vst.msk [vmem:[%s9604_s3 + $0x398] sm:$0xff] %vm32_vm0, %v4507_v25  ;;  %v4657_v28 = vadd.f32 %v6173_v24, %v4540_v42  ;;  %v4642_v55 = vpop.f32.mrb[59].mxu1 }
 0x2c9   :  { %4658 = vst.msk [vmem:[%s9604_s3 + $0x3a0] sm:$0xff] %vm32_vm0, %v4654_v57  ;;  %4509 = vst.msk [vmem:[%s9604_s3 + $0x388] sm:$0xff] %vm32_vm0, %v4505_v60  ;;  %v4655_v47 = vadd.f32 %v4642_v55, %v4538_v19 }
 0x2ca   :  { %4661 = vst.msk [vmem:[%s9604_s3 + $0x3b8] sm:$0xff] %vm32_vm0, %v4657_v28 }
 0x2cb   :  { %4659 = vst.msk [vmem:[%s9604_s3 + $0x3a8] sm:$0xff] %vm32_vm0, %v4655_v47 }
 0x2e3   :  { %v6192_v2 = vpop.f32.mrb[60].mxu0 }
 0x2e4   :  { %v4806_v58 = vadd.f32 %v6192_v2, %v4689_v53  ;;  %v4789_v11 = vpop.f32.mrb[61].mxu0 }
 0x2e5   :  { %v6212_v29 = vpop.f32.mrb[60].mxu1  ;;  %v4804_v33 = vadd.f32 %v4789_v11, %v4687_v46  ;;  %v6193_v5 = vpop.f32.mrb[62].mxu0 }
 0x2e6   :  { %4810 = vst.msk [vmem:[%s9604_s3 + $0x3d0] sm:$0xff] %vm32_vm0, %v4806_v58  ;;  %v4956_v14 = vadd.f32 %v6212_v29, %v4839_v32  ;;  %v4939_v12 = vpop.f32.mrb[61].mxu1  ;;  %v4807_v30 = vadd.f32 %v6193_v5, %v4690_v18  ;;  %v4792_v15 = vpop.f32.mrb[63].mxu0 }
 0x2e7   :  { %4808 = vst.msk [vmem:[%s9604_s3 + $0x3c0] sm:$0xff] %vm32_vm0, %v4804_v33  ;;  %v4954_v35 = vadd.f32 %v4939_v12, %v4837_v37  ;;  %v6213_v27 = vpop.f32.mrb[62].mxu1  ;;  %v4805_v36 = vadd.f32 %v4792_v15, %v4688_v23 }
 0x2e8   :  { %4960 = vst.msk [vmem:[%s9604_s3 + $0x3f0] sm:$0xff] %vm32_vm0, %v4956_v14  ;;  %4811 = vst.msk [vmem:[%s9604_s3 + $0x3d8] sm:$0xff] %vm32_vm0, %v4807_v30  ;;  %v4957_v16 = vadd.f32 %v6213_v27, %v4840_v10  ;;  %v4942_v38 = vpop.f32.mrb[63].mxu1 }
 0x2e9   :  { %4958 = vst.msk [vmem:[%s9604_s3 + $0x3e0] sm:$0xff] %vm32_vm0, %v4954_v35  ;;  %4809 = vst.msk [vmem:[%s9604_s3 + $0x3c8] sm:$0xff] %vm32_vm0, %v4805_v36  ;;  %v4955_v39 = vadd.f32 %v4942_v38, %v4838_v22 }
 0x2ea   :  { %4961 = vst.msk [vmem:[%s9604_s3 + $0x3f8] sm:$0xff] %vm32_vm0, %v4957_v16 }
 0x2eb   :  { %4959 = vst.msk [vmem:[%s9604_s3 + $0x3e8] sm:$0xff] %vm32_vm0, %v4955_v39 }
 0x2ec   :  { %4966 = vsyncpa [#allocation3], 1 }

</bundles_post_ra>
